<compile_context>
chip_gen: v7x
topology: tpu7x:2x2x1
jax: 0.10.0
libtpu: 0.0.40
codegen_flags: <defaults>
</compile_context>

<pallas_src>
import functools
import math

import jax
import jax.numpy as jnp
from jax import lax
from jax.experimental import pallas as pl
from jax.experimental.pallas import tpu as pltpu


def _layer_norm(x, gamma, beta, eps=1e-5):
    mu = jnp.mean(x, axis=-1, keepdims=True)
    var = jnp.mean((x - mu) ** 2, axis=-1, keepdims=True)
    return (x - mu) * lax.rsqrt(var + eps) * gamma + beta


def encoder_layer_kernel(
    # per-(batch, q-tile) blocks
    xq_ref, xf_ref, bias_ref,
    # resident weights (pre-fused / pre-scaled / bf16 in the wrapper)
    wq_ref, bq_ref, wkv_ref, bkv_ref,
    mk_ref, mv_ref, wo_ref, bo_ref,
    g_ref, be_ref, w1_ref, b1_ref, w2_ref, b2_ref,
    # output
    out_ref,
    *, n_heads,
):
    f32, bf16 = jnp.float32, jnp.bfloat16

    xq = xq_ref[0]                          # (TQ, H) f32  query rows of this tile
    xf = xf_ref[0]                          # (S,  H) f32  full sequence (keys/values)
    TQ, H = xq.shape
    S = xf.shape[0]
    d = H // n_heads

    xq16 = xq.astype(bf16)
    xf16 = xf.astype(bf16)

    # --- fused, lane-dense projections (full K=H contraction) ----------------
    q = jnp.dot(xq16, wq_ref[...], preferred_element_type=f32) + bq_ref[...]     # (TQ, H)
    kv = jnp.dot(xf16, wkv_ref[...], preferred_element_type=f32) + bkv_ref[...]  # (S, 2H)
    q16 = q.astype(bf16)
    k16 = kv[:, :H].astype(bf16)
    v16 = kv[:, H:].astype(bf16)

    bias = bias_ref[0]                      # (1, S)  additive key-mask bias (0 / -1e20)
    mk16 = mk_ref[...]                      # (M, H)  bf16, sqrt(head_dim) pre-applied
    mv16 = mv_ref[...]                      # (M, H)  bf16, sqrt(mem)      pre-applied

    # --- per-head attention: static lane slices, joint softmax over real+mem ---
    ctx_heads = []
    for h in range(n_heads):                # static unroll; MXU work == batched einsum
        sl = slice(h * d, (h + 1) * d)
        qh = q16[:, sl]                     # (TQ, d)
        e_r = jnp.einsum('qd,kd->qk', qh, k16[:, sl],
                         preferred_element_type=f32) + bias          # (TQ, S)
        e_m = jnp.einsum('qd,md->qm', qh, mk16[:, sl],
                         preferred_element_type=f32)                 # (TQ, M)
        m = jnp.maximum(jnp.max(e_r, axis=-1, keepdims=True),
                        jnp.max(e_m, axis=-1, keepdims=True))        # (TQ, 1)
        p_r = jnp.exp(e_r - m)
        p_m = jnp.exp(e_m - m)
        inv = pl.reciprocal(jnp.sum(p_r, axis=-1, keepdims=True) +
                            jnp.sum(p_m, axis=-1, keepdims=True), approx=True)
        ctx_heads.append(
            jnp.einsum('qk,kd->qd', (p_r * inv).astype(bf16), v16[:, sl],
                       preferred_element_type=f32) +
            jnp.einsum('qm,md->qd', (p_m * inv).astype(bf16), mv16[:, sl],
                       preferred_element_type=f32))                  # (TQ, d)

    # merge heads into one lane-contiguous slab -> ONE full-K output projection
    ctx = jnp.concatenate(ctx_heads, axis=-1)                        # (TQ, H)
    attn = jnp.dot(ctx.astype(bf16), wo_ref[...],
                   preferred_element_type=f32) + bo_ref[...]         # (TQ, H)

    # --- residual + LayerNorm (f32) -------------------------------------------
    gamma = g_ref[...]
    beta = be_ref[...]
    r1 = _layer_norm(xq + attn, gamma, beta)

    # --- position-wise feed-forward --------------------------------------------
    h1 = jnp.maximum(
        jnp.dot(r1.astype(bf16), w1_ref[...], preferred_element_type=f32) + b1_ref[...],
        0.0)
    ff = jnp.dot(h1.astype(bf16), w2_ref[...], preferred_element_type=f32) + b2_ref[...]

    # --- residual + LayerNorm (same params, as in the module) ------------------
    out_ref[0] = _layer_norm(r1 + ff, gamma, beta).astype(out_ref.dtype)


def encoder_layer_pallas(src, mask, params, *, n_heads, mem, q_tile=128,
                         single_buffer_weights=True):
    B, S, H = src.shape
    assert H % n_heads == 0
    d = H // n_heads
    pf_dim = params["w1"].shape[1]
    scale = math.sqrt(d)
    f32, bf16 = jnp.float32, jnp.bfloat16

    TQ = min(q_tile, S)
    assert S % TQ == 0, "query tile must divide the sequence length"
    nq = S // TQ

    # ---- wrapper-side weight preparation (done once, outside the kernel) -------
    wq = (params["wq"] / scale).astype(bf16)                 # 1/sqrt(head_dim) folded
    bq = (params["bq"] / scale).astype(f32)
    wkv = jnp.concatenate([params["wk"], params["wv"]], axis=1).astype(bf16)   # (H, 2H)
    bkv = jnp.concatenate([params["bk"], params["bv"]], axis=1).astype(f32)    # (1, 2H)
    mk = (params["m_k"] * scale).astype(bf16)                # sqrt(head_dim) pre-applied
    mv = (params["m_v"] * math.sqrt(mem)).astype(bf16)       # sqrt(mem)      pre-applied
    wo = params["wo"].astype(bf16)
    # additive key-mask bias: 0 where keep, -1e20 where masked (memory slots unmasked)
    bias = ((mask.astype(f32) - 1.0) * 1e20).reshape(B, 1, S)

    kernel = functools.partial(encoder_layer_kernel, n_heads=n_heads)

    def build(single_buffer):
        wkwargs = {"pipeline_mode": pl.Buffered(1)} if single_buffer else {}

        def wspec(shape):                 # constant-index (resident) weight block
            return pl.BlockSpec(shape, lambda b, qi: (0,) * len(shape), **wkwargs)

        in_specs = [
            pl.BlockSpec((1, TQ, H), lambda b, qi: (b, qi, 0)),   # query tile
            pl.BlockSpec((1, S, H), lambda b, qi: (b, 0, 0)),     # full sequence (K/V)
            pl.BlockSpec((1, 1, S), lambda b, qi: (b, 0, 0)),     # additive mask bias
            wspec((H, H)), wspec((1, H)),                         # wq, bq (scaled)
            wspec((H, 2 * H)), wspec((1, 2 * H)),                 # wkv, bkv (fused)
            wspec((mem, H)), wspec((mem, H)),                     # m_k, m_v (scaled)
            wspec((H, H)), wspec((1, H)),                         # wo, bo
            wspec((1, H)), wspec((1, H)),                         # ln gamma, beta
            wspec((H, pf_dim)), wspec((1, pf_dim)),               # w1, b1
            wspec((pf_dim, H)), wspec((1, H)),                    # w2, b2
        ]
        return pl.pallas_call(
            kernel,
            out_shape=jax.ShapeDtypeStruct((B, S, H), jnp.float32),
            grid_spec=pltpu.PrefetchScalarGridSpec(
                num_scalar_prefetch=0,
                grid=(B, nq),                        # both axes parallel -> feeds 2 TCs
                in_specs=in_specs,
                out_specs=pl.BlockSpec((1, TQ, H), lambda b, qi: (b, qi, 0)),
            ),
            compiler_params=pltpu.CompilerParams(
                dimension_semantics=("parallel", "parallel"),
                # ~48 MiB: safe on v7x (64 MiB physical); v5e/v6e (128 MiB) can go
                # higher once tiles grow — re-derive per generation.
                vmem_limit_bytes=48 * 1024 * 1024,
            ),
        )

    args = (src, src, bias,
            wq, bq, wkv, bkv, mk, mv, wo, params["bo"],
            params["ln_g"], params["ln_b"],
            params["w1"].astype(bf16), params["b1"],
            params["w2"].astype(bf16), params["b2"])

    if single_buffer_weights:
        try:
            return build(True)(*args)
        except Exception:
            # pl.Buffered(1) (single-buffered resident weights) unsupported on this
            # jax version -> fall back to default double-buffering (same semantics).
            pass
    return build(False)(*args)


# ------------------------------ pure-JAX reference ----------------------------
def encoder_layer_ref(src, mask, p, *, n_heads, mem):
    B, S, H = src.shape
    hd = H // n_heads

    def lin(x, w, b):
        return x @ w + b

    q = lin(src, p["wq"], p["bq"])
    k = lin(src, p["wk"], p["bk"])
    v = lin(src, p["wv"], p["bv"])
    m_k = math.sqrt(hd) * jnp.broadcast_to(p["m_k"], (B, mem, H))
    m_v = math.sqrt(mem) * jnp.broadcast_to(p["m_v"], (B, mem, H))
    kc = jnp.concatenate([k, m_k], axis=1)
    vc = jnp.concatenate([v, m_v], axis=1)

    def split(x):  # (B, L, H) -> (B, nh, L, hd)
        return x.reshape(B, -1, n_heads, hd).transpose(0, 2, 1, 3)

    Q, K, V = split(q), split(kc), split(vc)
    energy = jnp.einsum("bhqd,bhkd->bhqk", Q, K) / math.sqrt(hd)
    fmask = jnp.concatenate(
        [mask, jnp.ones((B, mem), mask.dtype)], axis=1)[:, None, None, :]
    energy = jnp.where(fmask == 0.0, -1e20, energy)
    attn = jax.nn.softmax(energy, axis=-1)
    x = jnp.einsum("bhqk,bhkd->bhqd", attn, V)
    x = x.transpose(0, 2, 1, 3).reshape(B, S, H)
    x = lin(x, p["wo"], p["bo"])

    def ln(y):
        mu = y.mean(-1, keepdims=True)
        var = ((y - mu) ** 2).mean(-1, keepdims=True)
        return (y - mu) / jnp.sqrt(var + 1e-5) * p["ln_g"] + p["ln_b"]

    r1 = ln(src + x)
    ff = lin(jnp.maximum(lin(r1, p["w1"], p["b1"]), 0.0), p["w2"], p["b2"])
    return ln(r1 + ff)


# ------------------------------------ main -------------------------------------
if __name__ == "__main__":
    B, S, H = 2, 8, 32
    N_HEADS, PF_DIM, MEM = 4, 64, 8
    HEAD_DIM = H // N_HEADS

    key = jax.random.PRNGKey(0)
    ks = jax.random.split(key, 16)

    def nrm(k, shape, scale=0.1):
        return (scale * jax.random.normal(k, shape)).astype(jnp.float32)

    params = {
        "wq": nrm(ks[0], (H, H)), "bq": nrm(ks[1], (1, H)),
        "wk": nrm(ks[2], (H, H)), "bk": nrm(ks[3], (1, H)),
        "wv": nrm(ks[4], (H, H)), "bv": nrm(ks[5], (1, H)),
        "wo": nrm(ks[6], (H, H)), "bo": nrm(ks[7], (1, H)),
        # nn.init.normal_(m_k, 0, 1/head_dim) / normal_(m_v, 0, 1/m)
        "m_k": (jax.random.normal(ks[8], (MEM, H)) / HEAD_DIM).astype(jnp.float32),
        "m_v": (jax.random.normal(ks[9], (MEM, H)) / MEM).astype(jnp.float32),
        "ln_g": jnp.ones((1, H), jnp.float32),
        "ln_b": jnp.zeros((1, H), jnp.float32),
        "w1": nrm(ks[10], (H, PF_DIM)), "b1": nrm(ks[11], (1, PF_DIM)),
        "w2": nrm(ks[12], (PF_DIM, H)), "b2": nrm(ks[13], (1, H)),
    }

    src = jax.random.normal(ks[14], (B, S, H), dtype=jnp.float32)
    # mask: 1 = keep, 0 = masked key; mask out last 2 positions of batch 1
    mask = jnp.ones((B, S), jnp.float32).at[1, -2:].set(0.0)

    out = encoder_layer_pallas(src, mask, params, n_heads=N_HEADS, mem=MEM)
    out = jax.block_until_ready(out)

    ref = encoder_layer_ref(src, mask, params, n_heads=N_HEADS, mem=MEM)
    assert out.shape == (B, S, H)
    # bf16 MXU inputs + approx reciprocal => slightly looser tolerance vs f32 reference
    assert jnp.allclose(out, ref, atol=3e-2, rtol=3e-2), (
        float(jnp.max(jnp.abs(out - ref))))

    print("KERNEL_OK")
</pallas_src>

<mosaic_0001>
module attributes {stable_mosaic.version = 11 : i64} {
  func.func @encoder_layer_kernel(%arg0: i32, %arg1: i32, %arg2: memref<1x8x32xf32, #tpu.memory_space<vmem>>, %arg3: memref<1x8x32xf32, #tpu.memory_space<vmem>>, %arg4: memref<1x1x8xf32, #tpu.memory_space<vmem>>, %arg5: memref<32x32xbf16, #tpu.memory_space<vmem>>, %arg6: memref<1x32xf32, #tpu.memory_space<vmem>>, %arg7: memref<32x64xbf16, #tpu.memory_space<vmem>>, %arg8: memref<1x64xf32, #tpu.memory_space<vmem>>, %arg9: memref<8x32xbf16, #tpu.memory_space<vmem>>, %arg10: memref<8x32xbf16, #tpu.memory_space<vmem>>, %arg11: memref<32x32xbf16, #tpu.memory_space<vmem>>, %arg12: memref<1x32xf32, #tpu.memory_space<vmem>>, %arg13: memref<1x32xf32, #tpu.memory_space<vmem>>, %arg14: memref<1x32xf32, #tpu.memory_space<vmem>>, %arg15: memref<32x64xbf16, #tpu.memory_space<vmem>>, %arg16: memref<1x64xf32, #tpu.memory_space<vmem>>, %arg17: memref<64x32xbf16, #tpu.memory_space<vmem>>, %arg18: memref<1x32xf32, #tpu.memory_space<vmem>>, %arg19: memref<1x8x32xf32, #tpu.memory_space<vmem>>) attributes {dimension_semantics = [#tpu.dimension_semantics<parallel>, #tpu.dimension_semantics<parallel>], iteration_bounds = array<i64: 2, 1>, scalar_prefetch = 0 : i64, scratch_operands = 0 : i64, tpu.core_type = #tpu.core_type<tc>, window_params = [{transform_indices = @transform_0, window_bounds = array<i64: 1, 8, 32>}, {transform_indices = @transform_1, window_bounds = array<i64: 1, 8, 32>}, {transform_indices = @transform_2, window_bounds = array<i64: 1, 1, 8>}, {pipeline_mode = #tpu.pipeline_mode<synchronous>, transform_indices = @transform_3, window_bounds = array<i64: 32, 32>}, {pipeline_mode = #tpu.pipeline_mode<synchronous>, transform_indices = @transform_4, window_bounds = array<i64: 1, 32>}, {pipeline_mode = #tpu.pipeline_mode<synchronous>, transform_indices = @transform_5, window_bounds = array<i64: 32, 64>}, {pipeline_mode = #tpu.pipeline_mode<synchronous>, transform_indices = @transform_6, window_bounds = array<i64: 1, 64>}, {pipeline_mode = #tpu.pipeline_mode<synchronous>, transform_indices = @transform_7, window_bounds = array<i64: 8, 32>}, {pipeline_mode = #tpu.pipeline_mode<synchronous>, transform_indices = @transform_8, window_bounds = array<i64: 8, 32>}, {pipeline_mode = #tpu.pipeline_mode<synchronous>, transform_indices = @transform_9, window_bounds = array<i64: 32, 32>}, {pipeline_mode = #tpu.pipeline_mode<synchronous>, transform_indices = @transform_10, window_bounds = array<i64: 1, 32>}, {pipeline_mode = #tpu.pipeline_mode<synchronous>, transform_indices = @transform_11, window_bounds = array<i64: 1, 32>}, {pipeline_mode = #tpu.pipeline_mode<synchronous>, transform_indices = @transform_12, window_bounds = array<i64: 1, 32>}, {pipeline_mode = #tpu.pipeline_mode<synchronous>, transform_indices = @transform_13, window_bounds = array<i64: 32, 64>}, {pipeline_mode = #tpu.pipeline_mode<synchronous>, transform_indices = @transform_14, window_bounds = array<i64: 1, 64>}, {pipeline_mode = #tpu.pipeline_mode<synchronous>, transform_indices = @transform_15, window_bounds = array<i64: 64, 32>}, {pipeline_mode = #tpu.pipeline_mode<synchronous>, transform_indices = @transform_16, window_bounds = array<i64: 1, 32>}, {transform_indices = @transform_17, window_bounds = array<i64: 1, 8, 32>}]} {
    %c0 = arith.constant 0 : index
    %c0_0 = arith.constant 0 : index
    %c0_1 = arith.constant 0 : index
    %0 = vector.load %arg2[%c0, %c0_0, %c0_1] : memref<1x8x32xf32, #tpu.memory_space<vmem>>, vector<1x8x32xf32>
    %1 = vector.shape_cast %0 : vector<1x8x32xf32> to vector<8x32xf32>
    %c0_2 = arith.constant 0 : index
    %c0_3 = arith.constant 0 : index
    %c0_4 = arith.constant 0 : index
    %2 = vector.load %arg3[%c0_2, %c0_3, %c0_4] : memref<1x8x32xf32, #tpu.memory_space<vmem>>, vector<1x8x32xf32>
    %3 = vector.shape_cast %2 : vector<1x8x32xf32> to vector<8x32xf32>
    %4 = arith.truncf %1 : vector<8x32xf32> to vector<8x32xbf16>
    %5 = arith.truncf %3 : vector<8x32xf32> to vector<8x32xbf16>
    %c0_5 = arith.constant 0 : index
    %c0_6 = arith.constant 0 : index
    %6 = vector.load %arg5[%c0_5, %c0_6] : memref<32x32xbf16, #tpu.memory_space<vmem>>, vector<32x32xbf16>
    %cst = arith.constant dense<0.000000e+00> : vector<8x32xf32>
    %7 = tpu.matmul %4, %6, %cst {dimension_numbers = #tpu.dot_dimension_numbers<[1], [0], [0], [1], [0, 0, 1, 1], [], []>} : vector<8x32xbf16>, vector<32x32xbf16>, vector<8x32xf32> -> vector<8x32xf32>
    %c0_7 = arith.constant 0 : index
    %c0_8 = arith.constant 0 : index
    %8 = vector.load %arg6[%c0_7, %c0_8] : memref<1x32xf32, #tpu.memory_space<vmem>>, vector<1x32xf32>
    %9 = vector.broadcast %8 : vector<1x32xf32> to vector<8x32xf32>
    %10 = arith.addf %7, %9 : vector<8x32xf32>
    %c0_9 = arith.constant 0 : index
    %c0_10 = arith.constant 0 : index
    %11 = vector.load %arg7[%c0_9, %c0_10] : memref<32x64xbf16, #tpu.memory_space<vmem>>, vector<32x64xbf16>
    %cst_11 = arith.constant dense<0.000000e+00> : vector<8x64xf32>
    %12 = tpu.matmul %5, %11, %cst_11 {dimension_numbers = #tpu.dot_dimension_numbers<[1], [0], [0], [1], [0, 0, 1, 1], [], []>} : vector<8x32xbf16>, vector<32x64xbf16>, vector<8x64xf32> -> vector<8x64xf32>
    %c0_12 = arith.constant 0 : index
    %c0_13 = arith.constant 0 : index
    %13 = vector.load %arg8[%c0_12, %c0_13] : memref<1x64xf32, #tpu.memory_space<vmem>>, vector<1x64xf32>
    %14 = vector.broadcast %13 : vector<1x64xf32> to vector<8x64xf32>
    %15 = arith.addf %12, %14 : vector<8x64xf32>
    %16 = arith.truncf %10 : vector<8x32xf32> to vector<8x32xbf16>
    %17 = vector.extract_strided_slice %15 {offsets = [0, 0], sizes = [8, 32], strides = [1, 1]} : vector<8x64xf32> to vector<8x32xf32>
    %18 = arith.truncf %17 : vector<8x32xf32> to vector<8x32xbf16>
    %19 = vector.extract_strided_slice %15 {offsets = [0, 32], sizes = [8, 32], strides = [1, 1]} : vector<8x64xf32> to vector<8x32xf32>
    %20 = arith.truncf %19 : vector<8x32xf32> to vector<8x32xbf16>
    %c0_14 = arith.constant 0 : index
    %c0_15 = arith.constant 0 : index
    %c0_16 = arith.constant 0 : index
    %21 = vector.load %arg4[%c0_14, %c0_15, %c0_16] : memref<1x1x8xf32, #tpu.memory_space<vmem>>, vector<1x1x8xf32>
    %22 = vector.shape_cast %21 : vector<1x1x8xf32> to vector<1x8xf32>
    %c0_17 = arith.constant 0 : index
    %c0_18 = arith.constant 0 : index
    %23 = vector.load %arg9[%c0_17, %c0_18] : memref<8x32xbf16, #tpu.memory_space<vmem>>, vector<8x32xbf16>
    %c0_19 = arith.constant 0 : index
    %c0_20 = arith.constant 0 : index
    %24 = vector.load %arg10[%c0_19, %c0_20] : memref<8x32xbf16, #tpu.memory_space<vmem>>, vector<8x32xbf16>
    %25 = vector.extract_strided_slice %16 {offsets = [0, 0], sizes = [8, 8], strides = [1, 1]} : vector<8x32xbf16> to vector<8x8xbf16>
    %26 = vector.extract_strided_slice %18 {offsets = [0, 0], sizes = [8, 8], strides = [1, 1]} : vector<8x32xbf16> to vector<8x8xbf16>
    "tpu.trace_start"() <{level = 10 : i32, message = "qd,kd->qk"}> : () -> ()
    %cst_21 = arith.constant dense<0.000000e+00> : vector<8x8xf32>
    %27 = tpu.matmul %25, %26, %cst_21 {dimension_numbers = #tpu.dot_dimension_numbers<[1], [1], [0], [0], [0, 0, 1, 0], [], []>} : vector<8x8xbf16>, vector<8x8xbf16>, vector<8x8xf32> -> vector<8x8xf32>
    "tpu.trace_stop"() : () -> ()
    %28 = vector.broadcast %22 : vector<1x8xf32> to vector<8x8xf32>
    %29 = arith.addf %27, %28 : vector<8x8xf32>
    %30 = vector.extract_strided_slice %23 {offsets = [0, 0], sizes = [8, 8], strides = [1, 1]} : vector<8x32xbf16> to vector<8x8xbf16>
    "tpu.trace_start"() <{level = 10 : i32, message = "qd,md->qm"}> : () -> ()
    %cst_22 = arith.constant dense<0.000000e+00> : vector<8x8xf32>
    %31 = tpu.matmul %25, %30, %cst_22 {dimension_numbers = #tpu.dot_dimension_numbers<[1], [1], [0], [0], [0, 0, 1, 0], [], []>} : vector<8x8xbf16>, vector<8x8xbf16>, vector<8x8xf32> -> vector<8x8xf32>
    "tpu.trace_stop"() : () -> ()
    %cst_23 = arith.constant dense<0xFF800000> : vector<8xf32>
    %32 = vector.multi_reduction <maximumf>, %29, %cst_23 [1] : vector<8x8xf32> to vector<8xf32>
    %33 = vector.shape_cast %32 : vector<8xf32> to vector<8x1xf32>
    %cst_24 = arith.constant dense<0xFF800000> : vector<8xf32>
    %34 = vector.multi_reduction <maximumf>, %31, %cst_24 [1] : vector<8x8xf32> to vector<8xf32>
    %35 = vector.shape_cast %34 : vector<8xf32> to vector<8x1xf32>
    %36 = arith.maximumf %33, %35 : vector<8x1xf32>
    %37 = vector.broadcast %36 : vector<8x1xf32> to vector<8x8xf32>
    %38 = arith.subf %29, %37 : vector<8x8xf32>
    %39 = math.exp %38 : vector<8x8xf32>
    %40 = vector.broadcast %36 : vector<8x1xf32> to vector<8x8xf32>
    %41 = arith.subf %31, %40 : vector<8x8xf32>
    %42 = math.exp %41 : vector<8x8xf32>
    %cst_25 = arith.constant dense<0.000000e+00> : vector<8xf32>
    %43 = vector.multi_reduction <add>, %39, %cst_25 [1] : vector<8x8xf32> to vector<8xf32>
    %44 = vector.shape_cast %43 : vector<8xf32> to vector<8x1xf32>
    %cst_26 = arith.constant dense<0.000000e+00> : vector<8xf32>
    %45 = vector.multi_reduction <add>, %42, %cst_26 [1] : vector<8x8xf32> to vector<8xf32>
    %46 = vector.shape_cast %45 : vector<8xf32> to vector<8x1xf32>
    %47 = arith.addf %44, %46 : vector<8x1xf32>
    %48 = tpu.reciprocal %47 {approx = true} : vector<8x1xf32> -> vector<8x1xf32>
    %49 = vector.broadcast %48 : vector<8x1xf32> to vector<8x8xf32>
    %50 = arith.mulf %39, %49 : vector<8x8xf32>
    %51 = arith.truncf %50 : vector<8x8xf32> to vector<8x8xbf16>
    %52 = vector.extract_strided_slice %20 {offsets = [0, 0], sizes = [8, 8], strides = [1, 1]} : vector<8x32xbf16> to vector<8x8xbf16>
    "tpu.trace_start"() <{level = 10 : i32, message = "qk,kd->qd"}> : () -> ()
    %cst_27 = arith.constant dense<0.000000e+00> : vector<8x8xf32>
    %53 = tpu.matmul %51, %52, %cst_27 {dimension_numbers = #tpu.dot_dimension_numbers<[1], [0], [0], [1], [0, 0, 1, 1], [], []>} : vector<8x8xbf16>, vector<8x8xbf16>, vector<8x8xf32> -> vector<8x8xf32>
    "tpu.trace_stop"() : () -> ()
    %54 = vector.broadcast %48 : vector<8x1xf32> to vector<8x8xf32>
    %55 = arith.mulf %42, %54 : vector<8x8xf32>
    %56 = arith.truncf %55 : vector<8x8xf32> to vector<8x8xbf16>
    %57 = vector.extract_strided_slice %24 {offsets = [0, 0], sizes = [8, 8], strides = [1, 1]} : vector<8x32xbf16> to vector<8x8xbf16>
    "tpu.trace_start"() <{level = 10 : i32, message = "qm,md->qd"}> : () -> ()
    %cst_28 = arith.constant dense<0.000000e+00> : vector<8x8xf32>
    %58 = tpu.matmul %56, %57, %cst_28 {dimension_numbers = #tpu.dot_dimension_numbers<[1], [0], [0], [1], [0, 0, 1, 1], [], []>} : vector<8x8xbf16>, vector<8x8xbf16>, vector<8x8xf32> -> vector<8x8xf32>
    "tpu.trace_stop"() : () -> ()
    %59 = arith.addf %53, %58 : vector<8x8xf32>
    %60 = vector.extract_strided_slice %16 {offsets = [0, 8], sizes = [8, 8], strides = [1, 1]} : vector<8x32xbf16> to vector<8x8xbf16>
    %61 = vector.extract_strided_slice %18 {offsets = [0, 8], sizes = [8, 8], strides = [1, 1]} : vector<8x32xbf16> to vector<8x8xbf16>
    "tpu.trace_start"() <{level = 10 : i32, message = "qd,kd->qk"}> : () -> ()
    %cst_29 = arith.constant dense<0.000000e+00> : vector<8x8xf32>
    %62 = tpu.matmul %60, %61, %cst_29 {dimension_numbers = #tpu.dot_dimension_numbers<[1], [1], [0], [0], [0, 0, 1, 0], [], []>} : vector<8x8xbf16>, vector<8x8xbf16>, vector<8x8xf32> -> vector<8x8xf32>
    "tpu.trace_stop"() : () -> ()
    %63 = vector.broadcast %22 : vector<1x8xf32> to vector<8x8xf32>
    %64 = arith.addf %62, %63 : vector<8x8xf32>
    %65 = vector.extract_strided_slice %23 {offsets = [0, 8], sizes = [8, 8], strides = [1, 1]} : vector<8x32xbf16> to vector<8x8xbf16>
    "tpu.trace_start"() <{level = 10 : i32, message = "qd,md->qm"}> : () -> ()
    %cst_30 = arith.constant dense<0.000000e+00> : vector<8x8xf32>
    %66 = tpu.matmul %60, %65, %cst_30 {dimension_numbers = #tpu.dot_dimension_numbers<[1], [1], [0], [0], [0, 0, 1, 0], [], []>} : vector<8x8xbf16>, vector<8x8xbf16>, vector<8x8xf32> -> vector<8x8xf32>
    "tpu.trace_stop"() : () -> ()
    %cst_31 = arith.constant dense<0xFF800000> : vector<8xf32>
    %67 = vector.multi_reduction <maximumf>, %64, %cst_31 [1] : vector<8x8xf32> to vector<8xf32>
    %68 = vector.shape_cast %67 : vector<8xf32> to vector<8x1xf32>
    %cst_32 = arith.constant dense<0xFF800000> : vector<8xf32>
    %69 = vector.multi_reduction <maximumf>, %66, %cst_32 [1] : vector<8x8xf32> to vector<8xf32>
    %70 = vector.shape_cast %69 : vector<8xf32> to vector<8x1xf32>
    %71 = arith.maximumf %68, %70 : vector<8x1xf32>
    %72 = vector.broadcast %71 : vector<8x1xf32> to vector<8x8xf32>
    %73 = arith.subf %64, %72 : vector<8x8xf32>
    %74 = math.exp %73 : vector<8x8xf32>
    %75 = vector.broadcast %71 : vector<8x1xf32> to vector<8x8xf32>
    %76 = arith.subf %66, %75 : vector<8x8xf32>
    %77 = math.exp %76 : vector<8x8xf32>
    %cst_33 = arith.constant dense<0.000000e+00> : vector<8xf32>
    %78 = vector.multi_reduction <add>, %74, %cst_33 [1] : vector<8x8xf32> to vector<8xf32>
    %79 = vector.shape_cast %78 : vector<8xf32> to vector<8x1xf32>
    %cst_34 = arith.constant dense<0.000000e+00> : vector<8xf32>
    %80 = vector.multi_reduction <add>, %77, %cst_34 [1] : vector<8x8xf32> to vector<8xf32>
    %81 = vector.shape_cast %80 : vector<8xf32> to vector<8x1xf32>
    %82 = arith.addf %79, %81 : vector<8x1xf32>
    %83 = tpu.reciprocal %82 {approx = true} : vector<8x1xf32> -> vector<8x1xf32>
    %84 = vector.broadcast %83 : vector<8x1xf32> to vector<8x8xf32>
    %85 = arith.mulf %74, %84 : vector<8x8xf32>
    %86 = arith.truncf %85 : vector<8x8xf32> to vector<8x8xbf16>
    %87 = vector.extract_strided_slice %20 {offsets = [0, 8], sizes = [8, 8], strides = [1, 1]} : vector<8x32xbf16> to vector<8x8xbf16>
    "tpu.trace_start"() <{level = 10 : i32, message = "qk,kd->qd"}> : () -> ()
    %cst_35 = arith.constant dense<0.000000e+00> : vector<8x8xf32>
    %88 = tpu.matmul %86, %87, %cst_35 {dimension_numbers = #tpu.dot_dimension_numbers<[1], [0], [0], [1], [0, 0, 1, 1], [], []>} : vector<8x8xbf16>, vector<8x8xbf16>, vector<8x8xf32> -> vector<8x8xf32>
    "tpu.trace_stop"() : () -> ()
    %89 = vector.broadcast %83 : vector<8x1xf32> to vector<8x8xf32>
    %90 = arith.mulf %77, %89 : vector<8x8xf32>
    %91 = arith.truncf %90 : vector<8x8xf32> to vector<8x8xbf16>
    %92 = vector.extract_strided_slice %24 {offsets = [0, 8], sizes = [8, 8], strides = [1, 1]} : vector<8x32xbf16> to vector<8x8xbf16>
    "tpu.trace_start"() <{level = 10 : i32, message = "qm,md->qd"}> : () -> ()
    %cst_36 = arith.constant dense<0.000000e+00> : vector<8x8xf32>
    %93 = tpu.matmul %91, %92, %cst_36 {dimension_numbers = #tpu.dot_dimension_numbers<[1], [0], [0], [1], [0, 0, 1, 1], [], []>} : vector<8x8xbf16>, vector<8x8xbf16>, vector<8x8xf32> -> vector<8x8xf32>
    "tpu.trace_stop"() : () -> ()
    %94 = arith.addf %88, %93 : vector<8x8xf32>
    %95 = vector.extract_strided_slice %16 {offsets = [0, 16], sizes = [8, 8], strides = [1, 1]} : vector<8x32xbf16> to vector<8x8xbf16>
    %96 = vector.extract_strided_slice %18 {offsets = [0, 16], sizes = [8, 8], strides = [1, 1]} : vector<8x32xbf16> to vector<8x8xbf16>
    "tpu.trace_start"() <{level = 10 : i32, message = "qd,kd->qk"}> : () -> ()
    %cst_37 = arith.constant dense<0.000000e+00> : vector<8x8xf32>
    %97 = tpu.matmul %95, %96, %cst_37 {dimension_numbers = #tpu.dot_dimension_numbers<[1], [1], [0], [0], [0, 0, 1, 0], [], []>} : vector<8x8xbf16>, vector<8x8xbf16>, vector<8x8xf32> -> vector<8x8xf32>
    "tpu.trace_stop"() : () -> ()
    %98 = vector.broadcast %22 : vector<1x8xf32> to vector<8x8xf32>
    %99 = arith.addf %97, %98 : vector<8x8xf32>
    %100 = vector.extract_strided_slice %23 {offsets = [0, 16], sizes = [8, 8], strides = [1, 1]} : vector<8x32xbf16> to vector<8x8xbf16>
    "tpu.trace_start"() <{level = 10 : i32, message = "qd,md->qm"}> : () -> ()
    %cst_38 = arith.constant dense<0.000000e+00> : vector<8x8xf32>
    %101 = tpu.matmul %95, %100, %cst_38 {dimension_numbers = #tpu.dot_dimension_numbers<[1], [1], [0], [0], [0, 0, 1, 0], [], []>} : vector<8x8xbf16>, vector<8x8xbf16>, vector<8x8xf32> -> vector<8x8xf32>
    "tpu.trace_stop"() : () -> ()
    %cst_39 = arith.constant dense<0xFF800000> : vector<8xf32>
    %102 = vector.multi_reduction <maximumf>, %99, %cst_39 [1] : vector<8x8xf32> to vector<8xf32>
    %103 = vector.shape_cast %102 : vector<8xf32> to vector<8x1xf32>
    %cst_40 = arith.constant dense<0xFF800000> : vector<8xf32>
    %104 = vector.multi_reduction <maximumf>, %101, %cst_40 [1] : vector<8x8xf32> to vector<8xf32>
    %105 = vector.shape_cast %104 : vector<8xf32> to vector<8x1xf32>
    %106 = arith.maximumf %103, %105 : vector<8x1xf32>
    %107 = vector.broadcast %106 : vector<8x1xf32> to vector<8x8xf32>
    %108 = arith.subf %99, %107 : vector<8x8xf32>
    %109 = math.exp %108 : vector<8x8xf32>
    %110 = vector.broadcast %106 : vector<8x1xf32> to vector<8x8xf32>
    %111 = arith.subf %101, %110 : vector<8x8xf32>
    %112 = math.exp %111 : vector<8x8xf32>
    %cst_41 = arith.constant dense<0.000000e+00> : vector<8xf32>
    %113 = vector.multi_reduction <add>, %109, %cst_41 [1] : vector<8x8xf32> to vector<8xf32>
    %114 = vector.shape_cast %113 : vector<8xf32> to vector<8x1xf32>
    %cst_42 = arith.constant dense<0.000000e+00> : vector<8xf32>
    %115 = vector.multi_reduction <add>, %112, %cst_42 [1] : vector<8x8xf32> to vector<8xf32>
    %116 = vector.shape_cast %115 : vector<8xf32> to vector<8x1xf32>
    %117 = arith.addf %114, %116 : vector<8x1xf32>
    %118 = tpu.reciprocal %117 {approx = true} : vector<8x1xf32> -> vector<8x1xf32>
    %119 = vector.broadcast %118 : vector<8x1xf32> to vector<8x8xf32>
    %120 = arith.mulf %109, %119 : vector<8x8xf32>
    %121 = arith.truncf %120 : vector<8x8xf32> to vector<8x8xbf16>
    %122 = vector.extract_strided_slice %20 {offsets = [0, 16], sizes = [8, 8], strides = [1, 1]} : vector<8x32xbf16> to vector<8x8xbf16>
    "tpu.trace_start"() <{level = 10 : i32, message = "qk,kd->qd"}> : () -> ()
    %cst_43 = arith.constant dense<0.000000e+00> : vector<8x8xf32>
    %123 = tpu.matmul %121, %122, %cst_43 {dimension_numbers = #tpu.dot_dimension_numbers<[1], [0], [0], [1], [0, 0, 1, 1], [], []>} : vector<8x8xbf16>, vector<8x8xbf16>, vector<8x8xf32> -> vector<8x8xf32>
    "tpu.trace_stop"() : () -> ()
    %124 = vector.broadcast %118 : vector<8x1xf32> to vector<8x8xf32>
    %125 = arith.mulf %112, %124 : vector<8x8xf32>
    %126 = arith.truncf %125 : vector<8x8xf32> to vector<8x8xbf16>
    %127 = vector.extract_strided_slice %24 {offsets = [0, 16], sizes = [8, 8], strides = [1, 1]} : vector<8x32xbf16> to vector<8x8xbf16>
    "tpu.trace_start"() <{level = 10 : i32, message = "qm,md->qd"}> : () -> ()
    %cst_44 = arith.constant dense<0.000000e+00> : vector<8x8xf32>
    %128 = tpu.matmul %126, %127, %cst_44 {dimension_numbers = #tpu.dot_dimension_numbers<[1], [0], [0], [1], [0, 0, 1, 1], [], []>} : vector<8x8xbf16>, vector<8x8xbf16>, vector<8x8xf32> -> vector<8x8xf32>
    "tpu.trace_stop"() : () -> ()
    %129 = arith.addf %123, %128 : vector<8x8xf32>
    %130 = vector.extract_strided_slice %16 {offsets = [0, 24], sizes = [8, 8], strides = [1, 1]} : vector<8x32xbf16> to vector<8x8xbf16>
    %131 = vector.extract_strided_slice %18 {offsets = [0, 24], sizes = [8, 8], strides = [1, 1]} : vector<8x32xbf16> to vector<8x8xbf16>
    "tpu.trace_start"() <{level = 10 : i32, message = "qd,kd->qk"}> : () -> ()
    %cst_45 = arith.constant dense<0.000000e+00> : vector<8x8xf32>
    %132 = tpu.matmul %130, %131, %cst_45 {dimension_numbers = #tpu.dot_dimension_numbers<[1], [1], [0], [0], [0, 0, 1, 0], [], []>} : vector<8x8xbf16>, vector<8x8xbf16>, vector<8x8xf32> -> vector<8x8xf32>
    "tpu.trace_stop"() : () -> ()
    %133 = vector.broadcast %22 : vector<1x8xf32> to vector<8x8xf32>
    %134 = arith.addf %132, %133 : vector<8x8xf32>
    %135 = vector.extract_strided_slice %23 {offsets = [0, 24], sizes = [8, 8], strides = [1, 1]} : vector<8x32xbf16> to vector<8x8xbf16>
    "tpu.trace_start"() <{level = 10 : i32, message = "qd,md->qm"}> : () -> ()
    %cst_46 = arith.constant dense<0.000000e+00> : vector<8x8xf32>
    %136 = tpu.matmul %130, %135, %cst_46 {dimension_numbers = #tpu.dot_dimension_numbers<[1], [1], [0], [0], [0, 0, 1, 0], [], []>} : vector<8x8xbf16>, vector<8x8xbf16>, vector<8x8xf32> -> vector<8x8xf32>
    "tpu.trace_stop"() : () -> ()
    %cst_47 = arith.constant dense<0xFF800000> : vector<8xf32>
    %137 = vector.multi_reduction <maximumf>, %134, %cst_47 [1] : vector<8x8xf32> to vector<8xf32>
    %138 = vector.shape_cast %137 : vector<8xf32> to vector<8x1xf32>
    %cst_48 = arith.constant dense<0xFF800000> : vector<8xf32>
    %139 = vector.multi_reduction <maximumf>, %136, %cst_48 [1] : vector<8x8xf32> to vector<8xf32>
    %140 = vector.shape_cast %139 : vector<8xf32> to vector<8x1xf32>
    %141 = arith.maximumf %138, %140 : vector<8x1xf32>
    %142 = vector.broadcast %141 : vector<8x1xf32> to vector<8x8xf32>
    %143 = arith.subf %134, %142 : vector<8x8xf32>
    %144 = math.exp %143 : vector<8x8xf32>
    %145 = vector.broadcast %141 : vector<8x1xf32> to vector<8x8xf32>
    %146 = arith.subf %136, %145 : vector<8x8xf32>
    %147 = math.exp %146 : vector<8x8xf32>
    %cst_49 = arith.constant dense<0.000000e+00> : vector<8xf32>
    %148 = vector.multi_reduction <add>, %144, %cst_49 [1] : vector<8x8xf32> to vector<8xf32>
    %149 = vector.shape_cast %148 : vector<8xf32> to vector<8x1xf32>
    %cst_50 = arith.constant dense<0.000000e+00> : vector<8xf32>
    %150 = vector.multi_reduction <add>, %147, %cst_50 [1] : vector<8x8xf32> to vector<8xf32>
    %151 = vector.shape_cast %150 : vector<8xf32> to vector<8x1xf32>
    %152 = arith.addf %149, %151 : vector<8x1xf32>
    %153 = tpu.reciprocal %152 {approx = true} : vector<8x1xf32> -> vector<8x1xf32>
    %154 = vector.broadcast %153 : vector<8x1xf32> to vector<8x8xf32>
    %155 = arith.mulf %144, %154 : vector<8x8xf32>
    %156 = arith.truncf %155 : vector<8x8xf32> to vector<8x8xbf16>
    %157 = vector.extract_strided_slice %20 {offsets = [0, 24], sizes = [8, 8], strides = [1, 1]} : vector<8x32xbf16> to vector<8x8xbf16>
    "tpu.trace_start"() <{level = 10 : i32, message = "qk,kd->qd"}> : () -> ()
    %cst_51 = arith.constant dense<0.000000e+00> : vector<8x8xf32>
    %158 = tpu.matmul %156, %157, %cst_51 {dimension_numbers = #tpu.dot_dimension_numbers<[1], [0], [0], [1], [0, 0, 1, 1], [], []>} : vector<8x8xbf16>, vector<8x8xbf16>, vector<8x8xf32> -> vector<8x8xf32>
    "tpu.trace_stop"() : () -> ()
    %159 = vector.broadcast %153 : vector<8x1xf32> to vector<8x8xf32>
    %160 = arith.mulf %147, %159 : vector<8x8xf32>
    %161 = arith.truncf %160 : vector<8x8xf32> to vector<8x8xbf16>
    %162 = vector.extract_strided_slice %24 {offsets = [0, 24], sizes = [8, 8], strides = [1, 1]} : vector<8x32xbf16> to vector<8x8xbf16>
    "tpu.trace_start"() <{level = 10 : i32, message = "qm,md->qd"}> : () -> ()
    %cst_52 = arith.constant dense<0.000000e+00> : vector<8x8xf32>
    %163 = tpu.matmul %161, %162, %cst_52 {dimension_numbers = #tpu.dot_dimension_numbers<[1], [0], [0], [1], [0, 0, 1, 1], [], []>} : vector<8x8xbf16>, vector<8x8xbf16>, vector<8x8xf32> -> vector<8x8xf32>
    "tpu.trace_stop"() : () -> ()
    %164 = arith.addf %158, %163 : vector<8x8xf32>
    %165 = tpu.concatenate %59, %94, %129, %164 in 1 : vector<8x8xf32>, vector<8x8xf32>, vector<8x8xf32>, vector<8x8xf32> -> vector<8x32xf32>
    %166 = arith.truncf %165 : vector<8x32xf32> to vector<8x32xbf16>
    %c0_53 = arith.constant 0 : index
    %c0_54 = arith.constant 0 : index
    %167 = vector.load %arg11[%c0_53, %c0_54] : memref<32x32xbf16, #tpu.memory_space<vmem>>, vector<32x32xbf16>
    %cst_55 = arith.constant dense<0.000000e+00> : vector<8x32xf32>
    %168 = tpu.matmul %166, %167, %cst_55 {dimension_numbers = #tpu.dot_dimension_numbers<[1], [0], [0], [1], [0, 0, 1, 1], [], []>} : vector<8x32xbf16>, vector<32x32xbf16>, vector<8x32xf32> -> vector<8x32xf32>
    %c0_56 = arith.constant 0 : index
    %c0_57 = arith.constant 0 : index
    %169 = vector.load %arg12[%c0_56, %c0_57] : memref<1x32xf32, #tpu.memory_space<vmem>>, vector<1x32xf32>
    %170 = vector.broadcast %169 : vector<1x32xf32> to vector<8x32xf32>
    %171 = arith.addf %168, %170 : vector<8x32xf32>
    %c0_58 = arith.constant 0 : index
    %c0_59 = arith.constant 0 : index
    %172 = vector.load %arg13[%c0_58, %c0_59] : memref<1x32xf32, #tpu.memory_space<vmem>>, vector<1x32xf32>
    %c0_60 = arith.constant 0 : index
    %c0_61 = arith.constant 0 : index
    %173 = vector.load %arg14[%c0_60, %c0_61] : memref<1x32xf32, #tpu.memory_space<vmem>>, vector<1x32xf32>
    %174 = arith.addf %1, %171 : vector<8x32xf32>
    %cst_62 = arith.constant dense<0.000000e+00> : vector<8xf32>
    %175 = vector.multi_reduction <add>, %174, %cst_62 [1] : vector<8x32xf32> to vector<8xf32>
    %176 = vector.shape_cast %175 : vector<8xf32> to vector<8x1xf32>
    %cst_63 = arith.constant 3.200000e+01 : f32
    %177 = vector.broadcast %cst_63 : f32 to vector<8x1xf32>
    %178 = arith.divf %176, %177 : vector<8x1xf32>
    %179 = vector.broadcast %178 : vector<8x1xf32> to vector<8x32xf32>
    %180 = arith.subf %174, %179 : vector<8x32xf32>
    %181 = arith.mulf %180, %180 : vector<8x32xf32>
    %cst_64 = arith.constant dense<0.000000e+00> : vector<8xf32>
    %182 = vector.multi_reduction <add>, %181, %cst_64 [1] : vector<8x32xf32> to vector<8xf32>
    %183 = vector.shape_cast %182 : vector<8xf32> to vector<8x1xf32>
    %cst_65 = arith.constant 3.200000e+01 : f32
    %184 = vector.broadcast %cst_65 : f32 to vector<8x1xf32>
    %185 = arith.divf %183, %184 : vector<8x1xf32>
    %186 = vector.broadcast %178 : vector<8x1xf32> to vector<8x32xf32>
    %187 = arith.subf %174, %186 : vector<8x32xf32>
    %cst_66 = arith.constant 9.99999974E-6 : f32
    %188 = vector.broadcast %cst_66 : f32 to vector<8x1xf32>
    %189 = arith.addf %185, %188 : vector<8x1xf32>
    %190 = math.rsqrt %189 : vector<8x1xf32>
    %191 = vector.broadcast %190 : vector<8x1xf32> to vector<8x32xf32>
    %192 = arith.mulf %187, %191 : vector<8x32xf32>
    %193 = vector.broadcast %172 : vector<1x32xf32> to vector<8x32xf32>
    %194 = arith.mulf %192, %193 : vector<8x32xf32>
    %195 = vector.broadcast %173 : vector<1x32xf32> to vector<8x32xf32>
    %196 = arith.addf %194, %195 : vector<8x32xf32>
    %197 = arith.truncf %196 : vector<8x32xf32> to vector<8x32xbf16>
    %c0_67 = arith.constant 0 : index
    %c0_68 = arith.constant 0 : index
    %198 = vector.load %arg15[%c0_67, %c0_68] : memref<32x64xbf16, #tpu.memory_space<vmem>>, vector<32x64xbf16>
    %cst_69 = arith.constant dense<0.000000e+00> : vector<8x64xf32>
    %199 = tpu.matmul %197, %198, %cst_69 {dimension_numbers = #tpu.dot_dimension_numbers<[1], [0], [0], [1], [0, 0, 1, 1], [], []>} : vector<8x32xbf16>, vector<32x64xbf16>, vector<8x64xf32> -> vector<8x64xf32>
    %c0_70 = arith.constant 0 : index
    %c0_71 = arith.constant 0 : index
    %200 = vector.load %arg16[%c0_70, %c0_71] : memref<1x64xf32, #tpu.memory_space<vmem>>, vector<1x64xf32>
    %201 = vector.broadcast %200 : vector<1x64xf32> to vector<8x64xf32>
    %202 = arith.addf %199, %201 : vector<8x64xf32>
    %cst_72 = arith.constant 0.000000e+00 : f32
    %203 = vector.broadcast %cst_72 : f32 to vector<8x64xf32>
    %204 = arith.maximumf %202, %203 : vector<8x64xf32>
    %205 = arith.truncf %204 : vector<8x64xf32> to vector<8x64xbf16>
    %c0_73 = arith.constant 0 : index
    %c0_74 = arith.constant 0 : index
    %206 = vector.load %arg17[%c0_73, %c0_74] : memref<64x32xbf16, #tpu.memory_space<vmem>>, vector<64x32xbf16>
    %cst_75 = arith.constant dense<0.000000e+00> : vector<8x32xf32>
    %207 = tpu.matmul %205, %206, %cst_75 {dimension_numbers = #tpu.dot_dimension_numbers<[1], [0], [0], [1], [0, 0, 1, 1], [], []>} : vector<8x64xbf16>, vector<64x32xbf16>, vector<8x32xf32> -> vector<8x32xf32>
    %c0_76 = arith.constant 0 : index
    %c0_77 = arith.constant 0 : index
    %208 = vector.load %arg18[%c0_76, %c0_77] : memref<1x32xf32, #tpu.memory_space<vmem>>, vector<1x32xf32>
    %209 = vector.broadcast %208 : vector<1x32xf32> to vector<8x32xf32>
    %210 = arith.addf %207, %209 : vector<8x32xf32>
    %211 = arith.addf %196, %210 : vector<8x32xf32>
    %cst_78 = arith.constant dense<0.000000e+00> : vector<8xf32>
    %212 = vector.multi_reduction <add>, %211, %cst_78 [1] : vector<8x32xf32> to vector<8xf32>
    %213 = vector.shape_cast %212 : vector<8xf32> to vector<8x1xf32>
    %cst_79 = arith.constant 3.200000e+01 : f32
    %214 = vector.broadcast %cst_79 : f32 to vector<8x1xf32>
    %215 = arith.divf %213, %214 : vector<8x1xf32>
    %216 = vector.broadcast %215 : vector<8x1xf32> to vector<8x32xf32>
    %217 = arith.subf %211, %216 : vector<8x32xf32>
    %218 = arith.mulf %217, %217 : vector<8x32xf32>
    %cst_80 = arith.constant dense<0.000000e+00> : vector<8xf32>
    %219 = vector.multi_reduction <add>, %218, %cst_80 [1] : vector<8x32xf32> to vector<8xf32>
    %220 = vector.shape_cast %219 : vector<8xf32> to vector<8x1xf32>
    %cst_81 = arith.constant 3.200000e+01 : f32
    %221 = vector.broadcast %cst_81 : f32 to vector<8x1xf32>
    %222 = arith.divf %220, %221 : vector<8x1xf32>
    %223 = vector.broadcast %215 : vector<8x1xf32> to vector<8x32xf32>
    %224 = arith.subf %211, %223 : vector<8x32xf32>
    %cst_82 = arith.constant 9.99999974E-6 : f32
    %225 = vector.broadcast %cst_82 : f32 to vector<8x1xf32>
    %226 = arith.addf %222, %225 : vector<8x1xf32>
    %227 = math.rsqrt %226 : vector<8x1xf32>
    %228 = vector.broadcast %227 : vector<8x1xf32> to vector<8x32xf32>
    %229 = arith.mulf %224, %228 : vector<8x32xf32>
    %230 = vector.broadcast %172 : vector<1x32xf32> to vector<8x32xf32>
    %231 = arith.mulf %229, %230 : vector<8x32xf32>
    %232 = vector.broadcast %173 : vector<1x32xf32> to vector<8x32xf32>
    %233 = arith.addf %231, %232 : vector<8x32xf32>
    %c0_83 = arith.constant 0 : index
    %c0_84 = arith.constant 0 : index
    %c0_85 = arith.constant 0 : index
    %234 = vector.load %arg19[%c0_83, %c0_84, %c0_85] : memref<1x8x32xf32, #tpu.memory_space<vmem>>, vector<1x8x32xf32>
    %235 = vector.shape_cast %234 : vector<1x8x32xf32> to vector<8x32xf32>
    %236 = vector.shape_cast %233 : vector<8x32xf32> to vector<1x8x32xf32>
    tpu.vector_store %arg19[%c0_83, %c0_84, %c0_85], %236 {strides = array<i32>} : memref<1x8x32xf32, #tpu.memory_space<vmem>>, vector<1x8x32xf32>,
    return
  }
  func.func @transform_0(%arg0: i32, %arg1: i32) -> (i32, i32, i32) {
    %c0_i32 = arith.constant 0 : i32
    %c0_i32_0 = arith.constant 0 : i32
    return %arg0, %arg1, %c0_i32 : i32, i32, i32
  }
  func.func @transform_1(%arg0: i32, %arg1: i32) -> (i32, i32, i32) {
    %c0_i32 = arith.constant 0 : i32
    %c0_i32_0 = arith.constant 0 : i32
    %c0_i32_1 = arith.constant 0 : i32
    return %arg0, %c0_i32, %c0_i32_0 : i32, i32, i32
  }
  func.func @transform_2(%arg0: i32, %arg1: i32) -> (i32, i32, i32) {
    %c0_i32 = arith.constant 0 : i32
    %c0_i32_0 = arith.constant 0 : i32
    %c0_i32_1 = arith.constant 0 : i32
    return %arg0, %c0_i32, %c0_i32_0 : i32, i32, i32
  }
  func.func @transform_3(%arg0: i32, %arg1: i32) -> (i32, i32) {
    %c0_i32 = arith.constant 0 : i32
    %c0_i32_0 = arith.constant 0 : i32
    %c0_i32_1 = arith.constant 0 : i32
    return %c0_i32, %c0_i32_0 : i32, i32
  }
  func.func @transform_4(%arg0: i32, %arg1: i32) -> (i32, i32) {
    %c0_i32 = arith.constant 0 : i32
    %c0_i32_0 = arith.constant 0 : i32
    %c0_i32_1 = arith.constant 0 : i32
    return %c0_i32, %c0_i32_0 : i32, i32
  }
  func.func @transform_5(%arg0: i32, %arg1: i32) -> (i32, i32) {
    %c0_i32 = arith.constant 0 : i32
    %c0_i32_0 = arith.constant 0 : i32
    %c0_i32_1 = arith.constant 0 : i32
    return %c0_i32, %c0_i32_0 : i32, i32
  }
  func.func @transform_6(%arg0: i32, %arg1: i32) -> (i32, i32) {
    %c0_i32 = arith.constant 0 : i32
    %c0_i32_0 = arith.constant 0 : i32
    %c0_i32_1 = arith.constant 0 : i32
    return %c0_i32, %c0_i32_0 : i32, i32
  }
  func.func @transform_7(%arg0: i32, %arg1: i32) -> (i32, i32) {
    %c0_i32 = arith.constant 0 : i32
    %c0_i32_0 = arith.constant 0 : i32
    %c0_i32_1 = arith.constant 0 : i32
    return %c0_i32, %c0_i32_0 : i32, i32
  }
  func.func @transform_8(%arg0: i32, %arg1: i32) -> (i32, i32) {
    %c0_i32 = arith.constant 0 : i32
    %c0_i32_0 = arith.constant 0 : i32
    %c0_i32_1 = arith.constant 0 : i32
    return %c0_i32, %c0_i32_0 : i32, i32
  }
  func.func @transform_9(%arg0: i32, %arg1: i32) -> (i32, i32) {
    %c0_i32 = arith.constant 0 : i32
    %c0_i32_0 = arith.constant 0 : i32
    %c0_i32_1 = arith.constant 0 : i32
    return %c0_i32, %c0_i32_0 : i32, i32
  }
  func.func @transform_10(%arg0: i32, %arg1: i32) -> (i32, i32) {
    %c0_i32 = arith.constant 0 : i32
    %c0_i32_0 = arith.constant 0 : i32
    %c0_i32_1 = arith.constant 0 : i32
    return %c0_i32, %c0_i32_0 : i32, i32
  }
  func.func @transform_11(%arg0: i32, %arg1: i32) -> (i32, i32) {
    %c0_i32 = arith.constant 0 : i32
    %c0_i32_0 = arith.constant 0 : i32
    %c0_i32_1 = arith.constant 0 : i32
    return %c0_i32, %c0_i32_0 : i32, i32
  }
  func.func @transform_12(%arg0: i32, %arg1: i32) -> (i32, i32) {
    %c0_i32 = arith.constant 0 : i32
    %c0_i32_0 = arith.constant 0 : i32
    %c0_i32_1 = arith.constant 0 : i32
    return %c0_i32, %c0_i32_0 : i32, i32
  }
  func.func @transform_13(%arg0: i32, %arg1: i32) -> (i32, i32) {
    %c0_i32 = arith.constant 0 : i32
    %c0_i32_0 = arith.constant 0 : i32
    %c0_i32_1 = arith.constant 0 : i32
    return %c0_i32, %c0_i32_0 : i32, i32
  }
  func.func @transform_14(%arg0: i32, %arg1: i32) -> (i32, i32) {
    %c0_i32 = arith.constant 0 : i32
    %c0_i32_0 = arith.constant 0 : i32
    %c0_i32_1 = arith.constant 0 : i32
    return %c0_i32, %c0_i32_0 : i32, i32
  }
  func.func @transform_15(%arg0: i32, %arg1: i32) -> (i32, i32) {
    %c0_i32 = arith.constant 0 : i32
    %c0_i32_0 = arith.constant 0 : i32
    %c0_i32_1 = arith.constant 0 : i32
    return %c0_i32, %c0_i32_0 : i32, i32
  }
  func.func @transform_16(%arg0: i32, %arg1: i32) -> (i32, i32) {
    %c0_i32 = arith.constant 0 : i32
    %c0_i32_0 = arith.constant 0 : i32
    %c0_i32_1 = arith.constant 0 : i32
    return %c0_i32, %c0_i32_0 : i32, i32
  }
  func.func @transform_17(%arg0: i32, %arg1: i32) -> (i32, i32, i32) {
    %c0_i32 = arith.constant 0 : i32
    %c0_i32_0 = arith.constant 0 : i32
    return %arg0, %arg1, %c0_i32 : i32, i32, i32
  }
}

module attributes {stable_mosaic.version = 11 : i64} {
  func.func @encoder_layer_kernel(%arg0: i32, %arg1: i32, %arg2: memref<1x8x32xf32, #tpu.memory_space<vmem>>, %arg3: memref<1x8x32xf32, #tpu.memory_space<vmem>>, %arg4: memref<1x1x8xf32, #tpu.memory_space<vmem>>, %arg5: memref<32x32xbf16, #tpu.memory_space<vmem>>, %arg6: memref<1x32xf32, #tpu.memory_space<vmem>>, %arg7: memref<32x64xbf16, #tpu.memory_space<vmem>>, %arg8: memref<1x64xf32, #tpu.memory_space<vmem>>, %arg9: memref<8x32xbf16, #tpu.memory_space<vmem>>, %arg10: memref<8x32xbf16, #tpu.memory_space<vmem>>, %arg11: memref<32x32xbf16, #tpu.memory_space<vmem>>, %arg12: memref<1x32xf32, #tpu.memory_space<vmem>>, %arg13: memref<1x32xf32, #tpu.memory_space<vmem>>, %arg14: memref<1x32xf32, #tpu.memory_space<vmem>>, %arg15: memref<32x64xbf16, #tpu.memory_space<vmem>>, %arg16: memref<1x64xf32, #tpu.memory_space<vmem>>, %arg17: memref<64x32xbf16, #tpu.memory_space<vmem>>, %arg18: memref<1x32xf32, #tpu.memory_space<vmem>>, %arg19: memref<1x8x32xf32, #tpu.memory_space<vmem>>) attributes {dimension_semantics = [#tpu.dimension_semantics<parallel>, #tpu.dimension_semantics<parallel>], iteration_bounds = array<i64: 2, 1>, scalar_prefetch = 0 : i64, scratch_operands = 0 : i64, tpu.core_type = #tpu.core_type<tc>, window_params = [{transform_indices = @transform_0, window_bounds = array<i64: 1, 8, 32>}, {transform_indices = @transform_1, window_bounds = array<i64: 1, 8, 32>}, {transform_indices = @transform_2, window_bounds = array<i64: 1, 1, 8>}, {pipeline_mode = #tpu.pipeline_mode<synchronous>, transform_indices = @transform_3, window_bounds = array<i64: 32, 32>}, {pipeline_mode = #tpu.pipeline_mode<synchronous>, transform_indices = @transform_4, window_bounds = array<i64: 1, 32>}, {pipeline_mode = #tpu.pipeline_mode<synchronous>, transform_indices = @transform_5, window_bounds = array<i64: 32, 64>}, {pipeline_mode = #tpu.pipeline_mode<synchronous>, transform_indices = @transform_6, window_bounds = array<i64: 1, 64>}, {pipeline_mode = #tpu.pipeline_mode<synchronous>, transform_indices = @transform_7, window_bounds = array<i64: 8, 32>}, {pipeline_mode = #tpu.pipeline_mode<synchronous>, transform_indices = @transform_8, window_bounds = array<i64: 8, 32>}, {pipeline_mode = #tpu.pipeline_mode<synchronous>, transform_indices = @transform_9, window_bounds = array<i64: 32, 32>}, {pipeline_mode = #tpu.pipeline_mode<synchronous>, transform_indices = @transform_10, window_bounds = array<i64: 1, 32>}, {pipeline_mode = #tpu.pipeline_mode<synchronous>, transform_indices = @transform_11, window_bounds = array<i64: 1, 32>}, {pipeline_mode = #tpu.pipeline_mode<synchronous>, transform_indices = @transform_12, window_bounds = array<i64: 1, 32>}, {pipeline_mode = #tpu.pipeline_mode<synchronous>, transform_indices = @transform_13, window_bounds = array<i64: 32, 64>}, {pipeline_mode = #tpu.pipeline_mode<synchronous>, transform_indices = @transform_14, window_bounds = array<i64: 1, 64>}, {pipeline_mode = #tpu.pipeline_mode<synchronous>, transform_indices = @transform_15, window_bounds = array<i64: 64, 32>}, {pipeline_mode = #tpu.pipeline_mode<synchronous>, transform_indices = @transform_16, window_bounds = array<i64: 1, 32>}, {transform_indices = @transform_17, window_bounds = array<i64: 1, 8, 32>}]} {
    %c0 = arith.constant 0 : index
    %c0_0 = arith.constant 0 : index
    %c0_1 = arith.constant 0 : index
    %0 = vector.load %arg2[%c0, %c0_0, %c0_1] : memref<1x8x32xf32, #tpu.memory_space<vmem>>, vector<1x8x32xf32>
    %1 = vector.shape_cast %0 : vector<1x8x32xf32> to vector<8x32xf32>
    %c0_2 = arith.constant 0 : index
    %c0_3 = arith.constant 0 : index
    %c0_4 = arith.constant 0 : index
    %2 = vector.load %arg3[%c0_2, %c0_3, %c0_4] : memref<1x8x32xf32, #tpu.memory_space<vmem>>, vector<1x8x32xf32>
    %3 = vector.shape_cast %2 : vector<1x8x32xf32> to vector<8x32xf32>
    %4 = arith.truncf %1 : vector<8x32xf32> to vector<8x32xbf16>
    %5 = arith.truncf %3 : vector<8x32xf32> to vector<8x32xbf16>
    %c0_5 = arith.constant 0 : index
    %c0_6 = arith.constant 0 : index
    %6 = vector.load %arg5[%c0_5, %c0_6] : memref<32x32xbf16, #tpu.memory_space<vmem>>, vector<32x32xbf16>
    %cst = arith.constant dense<0.000000e+00> : vector<8x32xf32>
    %7 = tpu.matmul %4, %6, %cst {dimension_numbers = #tpu.dot_dimension_numbers<[1], [0], [0], [1], [0, 0, 1, 1], [], []>} : vector<8x32xbf16>, vector<32x32xbf16>, vector<8x32xf32> -> vector<8x32xf32>
    %c0_7 = arith.constant 0 : index
    %c0_8 = arith.constant 0 : index
    %8 = vector.load %arg6[%c0_7, %c0_8] : memref<1x32xf32, #tpu.memory_space<vmem>>, vector<1x32xf32>
    %9 = vector.broadcast %8 : vector<1x32xf32> to vector<8x32xf32>
    %10 = arith.addf %7, %9 : vector<8x32xf32>
    %c0_9 = arith.constant 0 : index
    %c0_10 = arith.constant 0 : index
    %11 = vector.load %arg7[%c0_9, %c0_10] : memref<32x64xbf16, #tpu.memory_space<vmem>>, vector<32x64xbf16>
    %cst_11 = arith.constant dense<0.000000e+00> : vector<8x64xf32>
    %12 = tpu.matmul %5, %11, %cst_11 {dimension_numbers = #tpu.dot_dimension_numbers<[1], [0], [0], [1], [0, 0, 1, 1], [], []>} : vector<8x32xbf16>, vector<32x64xbf16>, vector<8x64xf32> -> vector<8x64xf32>
    %c0_12 = arith.constant 0 : index
    %c0_13 = arith.constant 0 : index
    %13 = vector.load %arg8[%c0_12, %c0_13] : memref<1x64xf32, #tpu.memory_space<vmem>>, vector<1x64xf32>
    %14 = vector.broadcast %13 : vector<1x64xf32> to vector<8x64xf32>
    %15 = arith.addf %12, %14 : vector<8x64xf32>
    %16 = arith.truncf %10 : vector<8x32xf32> to vector<8x32xbf16>
    %17 = vector.extract_strided_slice %15 {offsets = [0, 0], sizes = [8, 32], strides = [1, 1]} : vector<8x64xf32> to vector<8x32xf32>
    %18 = arith.truncf %17 : vector<8x32xf32> to vector<8x32xbf16>
    %19 = vector.extract_strided_slice %15 {offsets = [0, 32], sizes = [8, 32], strides = [1, 1]} : vector<8x64xf32> to vector<8x32xf32>
    %20 = arith.truncf %19 : vector<8x32xf32> to vector<8x32xbf16>
    %c0_14 = arith.constant 0 : index
    %c0_15 = arith.constant 0 : index
    %c0_16 = arith.constant 0 : index
    %21 = vector.load %arg4[%c0_14, %c0_15, %c0_16] : memref<1x1x8xf32, #tpu.memory_space<vmem>>, vector<1x1x8xf32>
    %22 = vector.shape_cast %21 : vector<1x1x8xf32> to vector<1x8xf32>
    %c0_17 = arith.constant 0 : index
    %c0_18 = arith.constant 0 : index
    %23 = vector.load %arg9[%c0_17, %c0_18] : memref<8x32xbf16, #tpu.memory_space<vmem>>, vector<8x32xbf16>
    %c0_19 = arith.constant 0 : index
    %c0_20 = arith.constant 0 : index
    %24 = vector.load %arg10[%c0_19, %c0_20] : memref<8x32xbf16, #tpu.memory_space<vmem>>, vector<8x32xbf16>
    %25 = vector.extract_strided_slice %16 {offsets = [0, 0], sizes = [8, 8], strides = [1, 1]} : vector<8x32xbf16> to vector<8x8xbf16>
    %26 = vector.extract_strided_slice %18 {offsets = [0, 0], sizes = [8, 8], strides = [1, 1]} : vector<8x32xbf16> to vector<8x8xbf16>
    "tpu.trace_start"() <{level = 10 : i32, message = "qd,kd->qk"}> : () -> ()
    %cst_21 = arith.constant dense<0.000000e+00> : vector<8x8xf32>
    %27 = tpu.matmul %25, %26, %cst_21 {dimension_numbers = #tpu.dot_dimension_numbers<[1], [1], [0], [0], [0, 0, 1, 0], [], []>} : vector<8x8xbf16>, vector<8x8xbf16>, vector<8x8xf32> -> vector<8x8xf32>
    "tpu.trace_stop"() : () -> ()
    %28 = vector.broadcast %22 : vector<1x8xf32> to vector<8x8xf32>
    %29 = arith.addf %27, %28 : vector<8x8xf32>
    %30 = vector.extract_strided_slice %23 {offsets = [0, 0], sizes = [8, 8], strides = [1, 1]} : vector<8x32xbf16> to vector<8x8xbf16>
    "tpu.trace_start"() <{level = 10 : i32, message = "qd,md->qm"}> : () -> ()
    %cst_22 = arith.constant dense<0.000000e+00> : vector<8x8xf32>
    %31 = tpu.matmul %25, %30, %cst_22 {dimension_numbers = #tpu.dot_dimension_numbers<[1], [1], [0], [0], [0, 0, 1, 0], [], []>} : vector<8x8xbf16>, vector<8x8xbf16>, vector<8x8xf32> -> vector<8x8xf32>
    "tpu.trace_stop"() : () -> ()
    %cst_23 = arith.constant dense<0xFF800000> : vector<8xf32>
    %32 = vector.multi_reduction <maximumf>, %29, %cst_23 [1] : vector<8x8xf32> to vector<8xf32>
    %33 = vector.shape_cast %32 : vector<8xf32> to vector<8x1xf32>
    %cst_24 = arith.constant dense<0xFF800000> : vector<8xf32>
    %34 = vector.multi_reduction <maximumf>, %31, %cst_24 [1] : vector<8x8xf32> to vector<8xf32>
    %35 = vector.shape_cast %34 : vector<8xf32> to vector<8x1xf32>
    %36 = arith.maximumf %33, %35 : vector<8x1xf32>
    %37 = vector.broadcast %36 : vector<8x1xf32> to vector<8x8xf32>
    %38 = arith.subf %29, %37 : vector<8x8xf32>
    %39 = math.exp %38 : vector<8x8xf32>
    %40 = vector.broadcast %36 : vector<8x1xf32> to vector<8x8xf32>
    %41 = arith.subf %31, %40 : vector<8x8xf32>
    %42 = math.exp %41 : vector<8x8xf32>
    %cst_25 = arith.constant dense<0.000000e+00> : vector<8xf32>
    %43 = vector.multi_reduction <add>, %39, %cst_25 [1] : vector<8x8xf32> to vector<8xf32>
    %44 = vector.shape_cast %43 : vector<8xf32> to vector<8x1xf32>
    %cst_26 = arith.constant dense<0.000000e+00> : vector<8xf32>
    %45 = vector.multi_reduction <add>, %42, %cst_26 [1] : vector<8x8xf32> to vector<8xf32>
    %46 = vector.shape_cast %45 : vector<8xf32> to vector<8x1xf32>
    %47 = arith.addf %44, %46 : vector<8x1xf32>
    %48 = tpu.reciprocal %47 {approx = true} : vector<8x1xf32> -> vector<8x1xf32>
    %49 = vector.broadcast %48 : vector<8x1xf32> to vector<8x8xf32>
    %50 = arith.mulf %39, %49 : vector<8x8xf32>
    %51 = arith.truncf %50 : vector<8x8xf32> to vector<8x8xbf16>
    %52 = vector.extract_strided_slice %20 {offsets = [0, 0], sizes = [8, 8], strides = [1, 1]} : vector<8x32xbf16> to vector<8x8xbf16>
    "tpu.trace_start"() <{level = 10 : i32, message = "qk,kd->qd"}> : () -> ()
    %cst_27 = arith.constant dense<0.000000e+00> : vector<8x8xf32>
    %53 = tpu.matmul %51, %52, %cst_27 {dimension_numbers = #tpu.dot_dimension_numbers<[1], [0], [0], [1], [0, 0, 1, 1], [], []>} : vector<8x8xbf16>, vector<8x8xbf16>, vector<8x8xf32> -> vector<8x8xf32>
    "tpu.trace_stop"() : () -> ()
    %54 = vector.broadcast %48 : vector<8x1xf32> to vector<8x8xf32>
    %55 = arith.mulf %42, %54 : vector<8x8xf32>
    %56 = arith.truncf %55 : vector<8x8xf32> to vector<8x8xbf16>
    %57 = vector.extract_strided_slice %24 {offsets = [0, 0], sizes = [8, 8], strides = [1, 1]} : vector<8x32xbf16> to vector<8x8xbf16>
    "tpu.trace_start"() <{level = 10 : i32, message = "qm,md->qd"}> : () -> ()
    %cst_28 = arith.constant dense<0.000000e+00> : vector<8x8xf32>
    %58 = tpu.matmul %56, %57, %cst_28 {dimension_numbers = #tpu.dot_dimension_numbers<[1], [0], [0], [1], [0, 0, 1, 1], [], []>} : vector<8x8xbf16>, vector<8x8xbf16>, vector<8x8xf32> -> vector<8x8xf32>
    "tpu.trace_stop"() : () -> ()
    %59 = arith.addf %53, %58 : vector<8x8xf32>
    %60 = vector.extract_strided_slice %16 {offsets = [0, 8], sizes = [8, 8], strides = [1, 1]} : vector<8x32xbf16> to vector<8x8xbf16>
    %61 = vector.extract_strided_slice %18 {offsets = [0, 8], sizes = [8, 8], strides = [1, 1]} : vector<8x32xbf16> to vector<8x8xbf16>
    "tpu.trace_start"() <{level = 10 : i32, message = "qd,kd->qk"}> : () -> ()
    %cst_29 = arith.constant dense<0.000000e+00> : vector<8x8xf32>
    %62 = tpu.matmul %60, %61, %cst_29 {dimension_numbers = #tpu.dot_dimension_numbers<[1], [1], [0], [0], [0, 0, 1, 0], [], []>} : vector<8x8xbf16>, vector<8x8xbf16>, vector<8x8xf32> -> vector<8x8xf32>
    "tpu.trace_stop"() : () -> ()
    %63 = vector.broadcast %22 : vector<1x8xf32> to vector<8x8xf32>
    %64 = arith.addf %62, %63 : vector<8x8xf32>
    %65 = vector.extract_strided_slice %23 {offsets = [0, 8], sizes = [8, 8], strides = [1, 1]} : vector<8x32xbf16> to vector<8x8xbf16>
    "tpu.trace_start"() <{level = 10 : i32, message = "qd,md->qm"}> : () -> ()
    %cst_30 = arith.constant dense<0.000000e+00> : vector<8x8xf32>
    %66 = tpu.matmul %60, %65, %cst_30 {dimension_numbers = #tpu.dot_dimension_numbers<[1], [1], [0], [0], [0, 0, 1, 0], [], []>} : vector<8x8xbf16>, vector<8x8xbf16>, vector<8x8xf32> -> vector<8x8xf32>
    "tpu.trace_stop"() : () -> ()
    %cst_31 = arith.constant dense<0xFF800000> : vector<8xf32>
    %67 = vector.multi_reduction <maximumf>, %64, %cst_31 [1] : vector<8x8xf32> to vector<8xf32>
    %68 = vector.shape_cast %67 : vector<8xf32> to vector<8x1xf32>
    %cst_32 = arith.constant dense<0xFF800000> : vector<8xf32>
    %69 = vector.multi_reduction <maximumf>, %66, %cst_32 [1] : vector<8x8xf32> to vector<8xf32>
    %70 = vector.shape_cast %69 : vector<8xf32> to vector<8x1xf32>
    %71 = arith.maximumf %68, %70 : vector<8x1xf32>
    %72 = vector.broadcast %71 : vector<8x1xf32> to vector<8x8xf32>
    %73 = arith.subf %64, %72 : vector<8x8xf32>
    %74 = math.exp %73 : vector<8x8xf32>
    %75 = vector.broadcast %71 : vector<8x1xf32> to vector<8x8xf32>
    %76 = arith.subf %66, %75 : vector<8x8xf32>
    %77 = math.exp %76 : vector<8x8xf32>
    %cst_33 = arith.constant dense<0.000000e+00> : vector<8xf32>
    %78 = vector.multi_reduction <add>, %74, %cst_33 [1] : vector<8x8xf32> to vector<8xf32>
    %79 = vector.shape_cast %78 : vector<8xf32> to vector<8x1xf32>
    %cst_34 = arith.constant dense<0.000000e+00> : vector<8xf32>
    %80 = vector.multi_reduction <add>, %77, %cst_34 [1] : vector<8x8xf32> to vector<8xf32>
    %81 = vector.shape_cast %80 : vector<8xf32> to vector<8x1xf32>
    %82 = arith.addf %79, %81 : vector<8x1xf32>
    %83 = tpu.reciprocal %82 {approx = true} : vector<8x1xf32> -> vector<8x1xf32>
    %84 = vector.broadcast %83 : vector<8x1xf32> to vector<8x8xf32>
    %85 = arith.mulf %74, %84 : vector<8x8xf32>
    %86 = arith.truncf %85 : vector<8x8xf32> to vector<8x8xbf16>
    %87 = vector.extract_strided_slice %20 {offsets = [0, 8], sizes = [8, 8], strides = [1, 1]} : vector<8x32xbf16> to vector<8x8xbf16>
    "tpu.trace_start"() <{level = 10 : i32, message = "qk,kd->qd"}> : () -> ()
    %cst_35 = arith.constant dense<0.000000e+00> : vector<8x8xf32>
    %88 = tpu.matmul %86, %87, %cst_35 {dimension_numbers = #tpu.dot_dimension_numbers<[1], [0], [0], [1], [0, 0, 1, 1], [], []>} : vector<8x8xbf16>, vector<8x8xbf16>, vector<8x8xf32> -> vector<8x8xf32>
    "tpu.trace_stop"() : () -> ()
    %89 = vector.broadcast %83 : vector<8x1xf32> to vector<8x8xf32>
    %90 = arith.mulf %77, %89 : vector<8x8xf32>
    %91 = arith.truncf %90 : vector<8x8xf32> to vector<8x8xbf16>
    %92 = vector.extract_strided_slice %24 {offsets = [0, 8], sizes = [8, 8], strides = [1, 1]} : vector<8x32xbf16> to vector<8x8xbf16>
    "tpu.trace_start"() <{level = 10 : i32, message = "qm,md->qd"}> : () -> ()
    %cst_36 = arith.constant dense<0.000000e+00> : vector<8x8xf32>
    %93 = tpu.matmul %91, %92, %cst_36 {dimension_numbers = #tpu.dot_dimension_numbers<[1], [0], [0], [1], [0, 0, 1, 1], [], []>} : vector<8x8xbf16>, vector<8x8xbf16>, vector<8x8xf32> -> vector<8x8xf32>
    "tpu.trace_stop"() : () -> ()
    %94 = arith.addf %88, %93 : vector<8x8xf32>
    %95 = vector.extract_strided_slice %16 {offsets = [0, 16], sizes = [8, 8], strides = [1, 1]} : vector<8x32xbf16> to vector<8x8xbf16>
    %96 = vector.extract_strided_slice %18 {offsets = [0, 16], sizes = [8, 8], strides = [1, 1]} : vector<8x32xbf16> to vector<8x8xbf16>
    "tpu.trace_start"() <{level = 10 : i32, message = "qd,kd->qk"}> : () -> ()
    %cst_37 = arith.constant dense<0.000000e+00> : vector<8x8xf32>
    %97 = tpu.matmul %95, %96, %cst_37 {dimension_numbers = #tpu.dot_dimension_numbers<[1], [1], [0], [0], [0, 0, 1, 0], [], []>} : vector<8x8xbf16>, vector<8x8xbf16>, vector<8x8xf32> -> vector<8x8xf32>
    "tpu.trace_stop"() : () -> ()
    %98 = vector.broadcast %22 : vector<1x8xf32> to vector<8x8xf32>
    %99 = arith.addf %97, %98 : vector<8x8xf32>
    %100 = vector.extract_strided_slice %23 {offsets = [0, 16], sizes = [8, 8], strides = [1, 1]} : vector<8x32xbf16> to vector<8x8xbf16>
    "tpu.trace_start"() <{level = 10 : i32, message = "qd,md->qm"}> : () -> ()
    %cst_38 = arith.constant dense<0.000000e+00> : vector<8x8xf32>
    %101 = tpu.matmul %95, %100, %cst_38 {dimension_numbers = #tpu.dot_dimension_numbers<[1], [1], [0], [0], [0, 0, 1, 0], [], []>} : vector<8x8xbf16>, vector<8x8xbf16>, vector<8x8xf32> -> vector<8x8xf32>
    "tpu.trace_stop"() : () -> ()
    %cst_39 = arith.constant dense<0xFF800000> : vector<8xf32>
    %102 = vector.multi_reduction <maximumf>, %99, %cst_39 [1] : vector<8x8xf32> to vector<8xf32>
    %103 = vector.shape_cast %102 : vector<8xf32> to vector<8x1xf32>
    %cst_40 = arith.constant dense<0xFF800000> : vector<8xf32>
    %104 = vector.multi_reduction <maximumf>, %101, %cst_40 [1] : vector<8x8xf32> to vector<8xf32>
    %105 = vector.shape_cast %104 : vector<8xf32> to vector<8x1xf32>
    %106 = arith.maximumf %103, %105 : vector<8x1xf32>
    %107 = vector.broadcast %106 : vector<8x1xf32> to vector<8x8xf32>
    %108 = arith.subf %99, %107 : vector<8x8xf32>
    %109 = math.exp %108 : vector<8x8xf32>
    %110 = vector.broadcast %106 : vector<8x1xf32> to vector<8x8xf32>
    %111 = arith.subf %101, %110 : vector<8x8xf32>
    %112 = math.exp %111 : vector<8x8xf32>
    %cst_41 = arith.constant dense<0.000000e+00> : vector<8xf32>
    %113 = vector.multi_reduction <add>, %109, %cst_41 [1] : vector<8x8xf32> to vector<8xf32>
    %114 = vector.shape_cast %113 : vector<8xf32> to vector<8x1xf32>
    %cst_42 = arith.constant dense<0.000000e+00> : vector<8xf32>
    %115 = vector.multi_reduction <add>, %112, %cst_42 [1] : vector<8x8xf32> to vector<8xf32>
    %116 = vector.shape_cast %115 : vector<8xf32> to vector<8x1xf32>
    %117 = arith.addf %114, %116 : vector<8x1xf32>
    %118 = tpu.reciprocal %117 {approx = true} : vector<8x1xf32> -> vector<8x1xf32>
    %119 = vector.broadcast %118 : vector<8x1xf32> to vector<8x8xf32>
    %120 = arith.mulf %109, %119 : vector<8x8xf32>
    %121 = arith.truncf %120 : vector<8x8xf32> to vector<8x8xbf16>
    %122 = vector.extract_strided_slice %20 {offsets = [0, 16], sizes = [8, 8], strides = [1, 1]} : vector<8x32xbf16> to vector<8x8xbf16>
    "tpu.trace_start"() <{level = 10 : i32, message = "qk,kd->qd"}> : () -> ()
    %cst_43 = arith.constant dense<0.000000e+00> : vector<8x8xf32>
    %123 = tpu.matmul %121, %122, %cst_43 {dimension_numbers = #tpu.dot_dimension_numbers<[1], [0], [0], [1], [0, 0, 1, 1], [], []>} : vector<8x8xbf16>, vector<8x8xbf16>, vector<8x8xf32> -> vector<8x8xf32>
    "tpu.trace_stop"() : () -> ()
    %124 = vector.broadcast %118 : vector<8x1xf32> to vector<8x8xf32>
    %125 = arith.mulf %112, %124 : vector<8x8xf32>
    %126 = arith.truncf %125 : vector<8x8xf32> to vector<8x8xbf16>
    %127 = vector.extract_strided_slice %24 {offsets = [0, 16], sizes = [8, 8], strides = [1, 1]} : vector<8x32xbf16> to vector<8x8xbf16>
    "tpu.trace_start"() <{level = 10 : i32, message = "qm,md->qd"}> : () -> ()
    %cst_44 = arith.constant dense<0.000000e+00> : vector<8x8xf32>
    %128 = tpu.matmul %126, %127, %cst_44 {dimension_numbers = #tpu.dot_dimension_numbers<[1], [0], [0], [1], [0, 0, 1, 1], [], []>} : vector<8x8xbf16>, vector<8x8xbf16>, vector<8x8xf32> -> vector<8x8xf32>
    "tpu.trace_stop"() : () -> ()
    %129 = arith.addf %123, %128 : vector<8x8xf32>
    %130 = vector.extract_strided_slice %16 {offsets = [0, 24], sizes = [8, 8], strides = [1, 1]} : vector<8x32xbf16> to vector<8x8xbf16>
    %131 = vector.extract_strided_slice %18 {offsets = [0, 24], sizes = [8, 8], strides = [1, 1]} : vector<8x32xbf16> to vector<8x8xbf16>
    "tpu.trace_start"() <{level = 10 : i32, message = "qd,kd->qk"}> : () -> ()
    %cst_45 = arith.constant dense<0.000000e+00> : vector<8x8xf32>
    %132 = tpu.matmul %130, %131, %cst_45 {dimension_numbers = #tpu.dot_dimension_numbers<[1], [1], [0], [0], [0, 0, 1, 0], [], []>} : vector<8x8xbf16>, vector<8x8xbf16>, vector<8x8xf32> -> vector<8x8xf32>
    "tpu.trace_stop"() : () -> ()
    %133 = vector.broadcast %22 : vector<1x8xf32> to vector<8x8xf32>
    %134 = arith.addf %132, %133 : vector<8x8xf32>
    %135 = vector.extract_strided_slice %23 {offsets = [0, 24], sizes = [8, 8], strides = [1, 1]} : vector<8x32xbf16> to vector<8x8xbf16>
    "tpu.trace_start"() <{level = 10 : i32, message = "qd,md->qm"}> : () -> ()
    %cst_46 = arith.constant dense<0.000000e+00> : vector<8x8xf32>
    %136 = tpu.matmul %130, %135, %cst_46 {dimension_numbers = #tpu.dot_dimension_numbers<[1], [1], [0], [0], [0, 0, 1, 0], [], []>} : vector<8x8xbf16>, vector<8x8xbf16>, vector<8x8xf32> -> vector<8x8xf32>
    "tpu.trace_stop"() : () -> ()
    %cst_47 = arith.constant dense<0xFF800000> : vector<8xf32>
    %137 = vector.multi_reduction <maximumf>, %134, %cst_47 [1] : vector<8x8xf32> to vector<8xf32>
    %138 = vector.shape_cast %137 : vector<8xf32> to vector<8x1xf32>
    %cst_48 = arith.constant dense<0xFF800000> : vector<8xf32>
    %139 = vector.multi_reduction <maximumf>, %136, %cst_48 [1] : vector<8x8xf32> to vector<8xf32>
    %140 = vector.shape_cast %139 : vector<8xf32> to vector<8x1xf32>
    %141 = arith.maximumf %138, %140 : vector<8x1xf32>
    %142 = vector.broadcast %141 : vector<8x1xf32> to vector<8x8xf32>
    %143 = arith.subf %134, %142 : vector<8x8xf32>
    %144 = math.exp %143 : vector<8x8xf32>
    %145 = vector.broadcast %141 : vector<8x1xf32> to vector<8x8xf32>
    %146 = arith.subf %136, %145 : vector<8x8xf32>
    %147 = math.exp %146 : vector<8x8xf32>
    %cst_49 = arith.constant dense<0.000000e+00> : vector<8xf32>
    %148 = vector.multi_reduction <add>, %144, %cst_49 [1] : vector<8x8xf32> to vector<8xf32>
    %149 = vector.shape_cast %148 : vector<8xf32> to vector<8x1xf32>
    %cst_50 = arith.constant dense<0.000000e+00> : vector<8xf32>
    %150 = vector.multi_reduction <add>, %147, %cst_50 [1] : vector<8x8xf32> to vector<8xf32>
    %151 = vector.shape_cast %150 : vector<8xf32> to vector<8x1xf32>
    %152 = arith.addf %149, %151 : vector<8x1xf32>
    %153 = tpu.reciprocal %152 {approx = true} : vector<8x1xf32> -> vector<8x1xf32>
    %154 = vector.broadcast %153 : vector<8x1xf32> to vector<8x8xf32>
    %155 = arith.mulf %144, %154 : vector<8x8xf32>
    %156 = arith.truncf %155 : vector<8x8xf32> to vector<8x8xbf16>
    %157 = vector.extract_strided_slice %20 {offsets = [0, 24], sizes = [8, 8], strides = [1, 1]} : vector<8x32xbf16> to vector<8x8xbf16>
    "tpu.trace_start"() <{level = 10 : i32, message = "qk,kd->qd"}> : () -> ()
    %cst_51 = arith.constant dense<0.000000e+00> : vector<8x8xf32>
    %158 = tpu.matmul %156, %157, %cst_51 {dimension_numbers = #tpu.dot_dimension_numbers<[1], [0], [0], [1], [0, 0, 1, 1], [], []>} : vector<8x8xbf16>, vector<8x8xbf16>, vector<8x8xf32> -> vector<8x8xf32>
    "tpu.trace_stop"() : () -> ()
    %159 = vector.broadcast %153 : vector<8x1xf32> to vector<8x8xf32>
    %160 = arith.mulf %147, %159 : vector<8x8xf32>
    %161 = arith.truncf %160 : vector<8x8xf32> to vector<8x8xbf16>
    %162 = vector.extract_strided_slice %24 {offsets = [0, 24], sizes = [8, 8], strides = [1, 1]} : vector<8x32xbf16> to vector<8x8xbf16>
    "tpu.trace_start"() <{level = 10 : i32, message = "qm,md->qd"}> : () -> ()
    %cst_52 = arith.constant dense<0.000000e+00> : vector<8x8xf32>
    %163 = tpu.matmul %161, %162, %cst_52 {dimension_numbers = #tpu.dot_dimension_numbers<[1], [0], [0], [1], [0, 0, 1, 1], [], []>} : vector<8x8xbf16>, vector<8x8xbf16>, vector<8x8xf32> -> vector<8x8xf32>
    "tpu.trace_stop"() : () -> ()
    %164 = arith.addf %158, %163 : vector<8x8xf32>
    %165 = tpu.concatenate %59, %94, %129, %164 in 1 : vector<8x8xf32>, vector<8x8xf32>, vector<8x8xf32>, vector<8x8xf32> -> vector<8x32xf32>
    %166 = arith.truncf %165 : vector<8x32xf32> to vector<8x32xbf16>
    %c0_53 = arith.constant 0 : index
    %c0_54 = arith.constant 0 : index
    %167 = vector.load %arg11[%c0_53, %c0_54] : memref<32x32xbf16, #tpu.memory_space<vmem>>, vector<32x32xbf16>
    %cst_55 = arith.constant dense<0.000000e+00> : vector<8x32xf32>
    %168 = tpu.matmul %166, %167, %cst_55 {dimension_numbers = #tpu.dot_dimension_numbers<[1], [0], [0], [1], [0, 0, 1, 1], [], []>} : vector<8x32xbf16>, vector<32x32xbf16>, vector<8x32xf32> -> vector<8x32xf32>
    %c0_56 = arith.constant 0 : index
    %c0_57 = arith.constant 0 : index
    %169 = vector.load %arg12[%c0_56, %c0_57] : memref<1x32xf32, #tpu.memory_space<vmem>>, vector<1x32xf32>
    %170 = vector.broadcast %169 : vector<1x32xf32> to vector<8x32xf32>
    %171 = arith.addf %168, %170 : vector<8x32xf32>
    %c0_58 = arith.constant 0 : index
    %c0_59 = arith.constant 0 : index
    %172 = vector.load %arg13[%c0_58, %c0_59] : memref<1x32xf32, #tpu.memory_space<vmem>>, vector<1x32xf32>
    %c0_60 = arith.constant 0 : index
    %c0_61 = arith.constant 0 : index
    %173 = vector.load %arg14[%c0_60, %c0_61] : memref<1x32xf32, #tpu.memory_space<vmem>>, vector<1x32xf32>
    %174 = arith.addf %1, %171 : vector<8x32xf32>
    %cst_62 = arith.constant dense<0.000000e+00> : vector<8xf32>
    %175 = vector.multi_reduction <add>, %174, %cst_62 [1] : vector<8x32xf32> to vector<8xf32>
    %176 = vector.shape_cast %175 : vector<8xf32> to vector<8x1xf32>
    %cst_63 = arith.constant 3.200000e+01 : f32
    %177 = vector.broadcast %cst_63 : f32 to vector<8x1xf32>
    %178 = arith.divf %176, %177 : vector<8x1xf32>
    %179 = vector.broadcast %178 : vector<8x1xf32> to vector<8x32xf32>
    %180 = arith.subf %174, %179 : vector<8x32xf32>
    %181 = arith.mulf %180, %180 : vector<8x32xf32>
    %cst_64 = arith.constant dense<0.000000e+00> : vector<8xf32>
    %182 = vector.multi_reduction <add>, %181, %cst_64 [1] : vector<8x32xf32> to vector<8xf32>
    %183 = vector.shape_cast %182 : vector<8xf32> to vector<8x1xf32>
    %cst_65 = arith.constant 3.200000e+01 : f32
    %184 = vector.broadcast %cst_65 : f32 to vector<8x1xf32>
    %185 = arith.divf %183, %184 : vector<8x1xf32>
    %186 = vector.broadcast %178 : vector<8x1xf32> to vector<8x32xf32>
    %187 = arith.subf %174, %186 : vector<8x32xf32>
    %cst_66 = arith.constant 9.99999974E-6 : f32
    %188 = vector.broadcast %cst_66 : f32 to vector<8x1xf32>
    %189 = arith.addf %185, %188 : vector<8x1xf32>
    %190 = math.rsqrt %189 : vector<8x1xf32>
    %191 = vector.broadcast %190 : vector<8x1xf32> to vector<8x32xf32>
    %192 = arith.mulf %187, %191 : vector<8x32xf32>
    %193 = vector.broadcast %172 : vector<1x32xf32> to vector<8x32xf32>
    %194 = arith.mulf %192, %193 : vector<8x32xf32>
    %195 = vector.broadcast %173 : vector<1x32xf32> to vector<8x32xf32>
    %196 = arith.addf %194, %195 : vector<8x32xf32>
    %197 = arith.truncf %196 : vector<8x32xf32> to vector<8x32xbf16>
    %c0_67 = arith.constant 0 : index
    %c0_68 = arith.constant 0 : index
    %198 = vector.load %arg15[%c0_67, %c0_68] : memref<32x64xbf16, #tpu.memory_space<vmem>>, vector<32x64xbf16>
    %cst_69 = arith.constant dense<0.000000e+00> : vector<8x64xf32>
    %199 = tpu.matmul %197, %198, %cst_69 {dimension_numbers = #tpu.dot_dimension_numbers<[1], [0], [0], [1], [0, 0, 1, 1], [], []>} : vector<8x32xbf16>, vector<32x64xbf16>, vector<8x64xf32> -> vector<8x64xf32>
    %c0_70 = arith.constant 0 : index
    %c0_71 = arith.constant 0 : index
    %200 = vector.load %arg16[%c0_70, %c0_71] : memref<1x64xf32, #tpu.memory_space<vmem>>, vector<1x64xf32>
    %201 = vector.broadcast %200 : vector<1x64xf32> to vector<8x64xf32>
    %202 = arith.addf %199, %201 : vector<8x64xf32>
    %cst_72 = arith.constant 0.000000e+00 : f32
    %203 = vector.broadcast %cst_72 : f32 to vector<8x64xf32>
    %204 = arith.maximumf %202, %203 : vector<8x64xf32>
    %205 = arith.truncf %204 : vector<8x64xf32> to vector<8x64xbf16>
    %c0_73 = arith.constant 0 : index
    %c0_74 = arith.constant 0 : index
    %206 = vector.load %arg17[%c0_73, %c0_74] : memref<64x32xbf16, #tpu.memory_space<vmem>>, vector<64x32xbf16>
    %cst_75 = arith.constant dense<0.000000e+00> : vector<8x32xf32>
    %207 = tpu.matmul %205, %206, %cst_75 {dimension_numbers = #tpu.dot_dimension_numbers<[1], [0], [0], [1], [0, 0, 1, 1], [], []>} : vector<8x64xbf16>, vector<64x32xbf16>, vector<8x32xf32> -> vector<8x32xf32>
    %c0_76 = arith.constant 0 : index
    %c0_77 = arith.constant 0 : index
    %208 = vector.load %arg18[%c0_76, %c0_77] : memref<1x32xf32, #tpu.memory_space<vmem>>, vector<1x32xf32>
    %209 = vector.broadcast %208 : vector<1x32xf32> to vector<8x32xf32>
    %210 = arith.addf %207, %209 : vector<8x32xf32>
    %211 = arith.addf %196, %210 : vector<8x32xf32>
    %cst_78 = arith.constant dense<0.000000e+00> : vector<8xf32>
    %212 = vector.multi_reduction <add>, %211, %cst_78 [1] : vector<8x32xf32> to vector<8xf32>
    %213 = vector.shape_cast %212 : vector<8xf32> to vector<8x1xf32>
    %cst_79 = arith.constant 3.200000e+01 : f32
    %214 = vector.broadcast %cst_79 : f32 to vector<8x1xf32>
    %215 = arith.divf %213, %214 : vector<8x1xf32>
    %216 = vector.broadcast %215 : vector<8x1xf32> to vector<8x32xf32>
    %217 = arith.subf %211, %216 : vector<8x32xf32>
    %218 = arith.mulf %217, %217 : vector<8x32xf32>
    %cst_80 = arith.constant dense<0.000000e+00> : vector<8xf32>
    %219 = vector.multi_reduction <add>, %218, %cst_80 [1] : vector<8x32xf32> to vector<8xf32>
    %220 = vector.shape_cast %219 : vector<8xf32> to vector<8x1xf32>
    %cst_81 = arith.constant 3.200000e+01 : f32
    %221 = vector.broadcast %cst_81 : f32 to vector<8x1xf32>
    %222 = arith.divf %220, %221 : vector<8x1xf32>
    %223 = vector.broadcast %215 : vector<8x1xf32> to vector<8x32xf32>
    %224 = arith.subf %211, %223 : vector<8x32xf32>
    %cst_82 = arith.constant 9.99999974E-6 : f32
    %225 = vector.broadcast %cst_82 : f32 to vector<8x1xf32>
    %226 = arith.addf %222, %225 : vector<8x1xf32>
    %227 = math.rsqrt %226 : vector<8x1xf32>
    %228 = vector.broadcast %227 : vector<8x1xf32> to vector<8x32xf32>
    %229 = arith.mulf %224, %228 : vector<8x32xf32>
    %230 = vector.broadcast %172 : vector<1x32xf32> to vector<8x32xf32>
    %231 = arith.mulf %229, %230 : vector<8x32xf32>
    %232 = vector.broadcast %173 : vector<1x32xf32> to vector<8x32xf32>
    %233 = arith.addf %231, %232 : vector<8x32xf32>
    %c0_83 = arith.constant 0 : index
    %c0_84 = arith.constant 0 : index
    %c0_85 = arith.constant 0 : index
    %234 = vector.load %arg19[%c0_83, %c0_84, %c0_85] : memref<1x8x32xf32, #tpu.memory_space<vmem>>, vector<1x8x32xf32>
    %235 = vector.shape_cast %234 : vector<1x8x32xf32> to vector<8x32xf32>
    %236 = vector.shape_cast %233 : vector<8x32xf32> to vector<1x8x32xf32>
    tpu.vector_store %arg19[%c0_83, %c0_84, %c0_85], %236 {strides = array<i32>} : memref<1x8x32xf32, #tpu.memory_space<vmem>>, vector<1x8x32xf32>,
    return
  }
  func.func @transform_0(%arg0: i32, %arg1: i32) -> (i32, i32, i32) {
    %c0_i32 = arith.constant 0 : i32
    %c0_i32_0 = arith.constant 0 : i32
    return %arg0, %arg1, %c0_i32 : i32, i32, i32
  }
  func.func @transform_1(%arg0: i32, %arg1: i32) -> (i32, i32, i32) {
    %c0_i32 = arith.constant 0 : i32
    %c0_i32_0 = arith.constant 0 : i32
    %c0_i32_1 = arith.constant 0 : i32
    return %arg0, %c0_i32, %c0_i32_0 : i32, i32, i32
  }
  func.func @transform_2(%arg0: i32, %arg1: i32) -> (i32, i32, i32) {
    %c0_i32 = arith.constant 0 : i32
    %c0_i32_0 = arith.constant 0 : i32
    %c0_i32_1 = arith.constant 0 : i32
    return %arg0, %c0_i32, %c0_i32_0 : i32, i32, i32
  }
  func.func @transform_3(%arg0: i32, %arg1: i32) -> (i32, i32) {
    %c0_i32 = arith.constant 0 : i32
    %c0_i32_0 = arith.constant 0 : i32
    %c0_i32_1 = arith.constant 0 : i32
    return %c0_i32, %c0_i32_0 : i32, i32
  }
  func.func @transform_4(%arg0: i32, %arg1: i32) -> (i32, i32) {
    %c0_i32 = arith.constant 0 : i32
    %c0_i32_0 = arith.constant 0 : i32
    %c0_i32_1 = arith.constant 0 : i32
    return %c0_i32, %c0_i32_0 : i32, i32
  }
  func.func @transform_5(%arg0: i32, %arg1: i32) -> (i32, i32) {
    %c0_i32 = arith.constant 0 : i32
    %c0_i32_0 = arith.constant 0 : i32
    %c0_i32_1 = arith.constant 0 : i32
    return %c0_i32, %c0_i32_0 : i32, i32
  }
  func.func @transform_6(%arg0: i32, %arg1: i32) -> (i32, i32) {
    %c0_i32 = arith.constant 0 : i32
    %c0_i32_0 = arith.constant 0 : i32
    %c0_i32_1 = arith.constant 0 : i32
    return %c0_i32, %c0_i32_0 : i32, i32
  }
  func.func @transform_7(%arg0: i32, %arg1: i32) -> (i32, i32) {
    %c0_i32 = arith.constant 0 : i32
    %c0_i32_0 = arith.constant 0 : i32
    %c0_i32_1 = arith.constant 0 : i32
    return %c0_i32, %c0_i32_0 : i32, i32
  }
  func.func @transform_8(%arg0: i32, %arg1: i32) -> (i32, i32) {
    %c0_i32 = arith.constant 0 : i32
    %c0_i32_0 = arith.constant 0 : i32
    %c0_i32_1 = arith.constant 0 : i32
    return %c0_i32, %c0_i32_0 : i32, i32
  }
  func.func @transform_9(%arg0: i32, %arg1: i32) -> (i32, i32) {
    %c0_i32 = arith.constant 0 : i32
    %c0_i32_0 = arith.constant 0 : i32
    %c0_i32_1 = arith.constant 0 : i32
    return %c0_i32, %c0_i32_0 : i32, i32
  }
  func.func @transform_10(%arg0: i32, %arg1: i32) -> (i32, i32) {
    %c0_i32 = arith.constant 0 : i32
    %c0_i32_0 = arith.constant 0 : i32
    %c0_i32_1 = arith.constant 0 : i32
    return %c0_i32, %c0_i32_0 : i32, i32
  }
  func.func @transform_11(%arg0: i32, %arg1: i32) -> (i32, i32) {
    %c0_i32 = arith.constant 0 : i32
    %c0_i32_0 = arith.constant 0 : i32
    %c0_i32_1 = arith.constant 0 : i32
    return %c0_i32, %c0_i32_0 : i32, i32
  }
  func.func @transform_12(%arg0: i32, %arg1: i32) -> (i32, i32) {
    %c0_i32 = arith.constant 0 : i32
    %c0_i32_0 = arith.constant 0 : i32
    %c0_i32_1 = arith.constant 0 : i32
    return %c0_i32, %c0_i32_0 : i32, i32
  }
  func.func @transform_13(%arg0: i32, %arg1: i32) -> (i32, i32) {
    %c0_i32 = arith.constant 0 : i32
    %c0_i32_0 = arith.constant 0 : i32
    %c0_i32_1 = arith.constant 0 : i32
    return %c0_i32, %c0_i32_0 : i32, i32
  }
  func.func @transform_14(%arg0: i32, %arg1: i32) -> (i32, i32) {
    %c0_i32 = arith.constant 0 : i32
    %c0_i32_0 = arith.constant 0 : i32
    %c0_i32_1 = arith.constant 0 : i32
    return %c0_i32, %c0_i32_0 : i32, i32
  }
  func.func @transform_15(%arg0: i32, %arg1: i32) -> (i32, i32) {
    %c0_i32 = arith.constant 0 : i32
    %c0_i32_0 = arith.constant 0 : i32
    %c0_i32_1 = arith.constant 0 : i32
    return %c0_i32, %c0_i32_0 : i32, i32
  }
  func.func @transform_16(%arg0: i32, %arg1: i32) -> (i32, i32) {
    %c0_i32 = arith.constant 0 : i32
    %c0_i32_0 = arith.constant 0 : i32
    %c0_i32_1 = arith.constant 0 : i32
    return %c0_i32, %c0_i32_0 : i32, i32
  }
  func.func @transform_17(%arg0: i32, %arg1: i32) -> (i32, i32, i32) {
    %c0_i32 = arith.constant 0 : i32
    %c0_i32_0 = arith.constant 0 : i32
    return %arg0, %arg1, %c0_i32 : i32, i32, i32
  }
}

</mosaic_0001>

<bundles_post_ra>
// kernel: tpu_custom_call.1
= control target key start
LH: loop header
LB: loop body
LE: loop exit
PB: predicated region body
PF: predicated region fallthrough
CT: control target
= control target key end

     0   :  { %s3703_s0 = inlined_call_operand.vmem [shape: f32[2,8,32], index: 0, kind: input, shape index: {}]   ;;  %s3704_s1 = inlined_call_operand.vmem [shape: f32[2,8,32], index: 1, kind: input, shape index: {}]   ;;  %s3705_s2 = inlined_call_operand.hbm [shape: f32[2,1,8], index: 2, kind: input, shape index: {}]   ;;  %s3706_s3 = inlined_call_operand.vmem [shape: bf16[32,32], index: 3, kind: input, shape index: {}]   ;;  %s3707_s4 = inlined_call_operand.vmem [shape: f32[1,32], index: 4, kind: input, shape index: {}]   ;;  %s3708_s5 = inlined_call_operand.hbm [shape: bf16[32,64], index: 5, kind: input, shape index: {}]   ;;  %s3709_s6 = inlined_call_operand.hbm [shape: f32[1,64], index: 6, kind: input, shape index: {}]   ;;  %s3710_s7 = inlined_call_operand.hbm [shape: bf16[8,32], index: 7, kind: input, shape index: {}]   ;;  %s3711_s8 = inlined_call_operand.hbm [shape: bf16[8,32], index: 8, kind: input, shape index: {}]   ;;  %s3712_s9 = inlined_call_operand.vmem [shape: bf16[32,32], index: 9, kind: input, shape index: {}]   ;;  %s3713_s10 = inlined_call_operand.hbm [shape: f32[1,32], index: 10, kind: input, shape index: {}]   ;;  %s3714_s11 = inlined_call_operand.hbm [shape: f32[1,32], index: 11, kind: input, shape index: {}]   ;;  %s3715_s12 = inlined_call_operand.hbm [shape: f32[1,32], index: 12, kind: input, shape index: {}]   ;;  %s3716_s13 = inlined_call_operand.vmem [shape: bf16[32,64], index: 13, kind: input, shape index: {}]   ;;  %s3717_s14 = inlined_call_operand.vmem [shape: f32[1,64], index: 14, kind: input, shape index: {}]   ;;  %s3718_s15 = inlined_call_operand.vmem [shape: bf16[64,32], index: 15, kind: input, shape index: {}]   ;;  %s3719_s16 = inlined_call_operand.vmem [shape: f32[1,32], index: 16, kind: input, shape index: {}]   ;;  %s3720_s17 = inlined_call_operand.hbm [shape: f32[2,8,32], index: 17, kind: output, shape index: {}]  }
   0x1   :  { %3734 = sst [smem:[#allocation24_spill]] %s3703_s0 }
   0x2   :  { %3735 = sst [smem:[#allocation25_spill]] %s3704_s1 }
   0x3   :  { %3736 = sst [smem:[#allocation26_spill]] %s3705_s2 }
   0x4   :  { %3737 = sst [smem:[#allocation27_spill]] %s3706_s3 }
   0x5   :  { %3738 = sst [smem:[#allocation28_spill]] %s3707_s4 }
   0x6   :  { %3739 = sst [smem:[#allocation29_spill]] %s3708_s5 }
   0x7   :  { %3740 = sst [smem:[#allocation30_spill]] %s3712_s9 }
   0x8   :  { %3741 = sst [smem:[#allocation31_spill]] %s3716_s13 }
   0x9   :  { %3742 = sst [smem:[#allocation32_spill]] %s3717_s14 }
   0xa   :  { %3743 = sst [smem:[#allocation33_spill]] %s3718_s15 }
   0xb   :  { %3744 = sst [smem:[#allocation34_spill]] %s3719_s16 }
   0xc   :  { %3745 = sst [smem:[#allocation35_spill]] %s3720_s17 }
   0xd   :  { %22 = vsyncpa [#allocation3], 0 }
   0xe   :  { %24 = vsyncpa [#allocation3 + $0x1], 0 }
   0xf   :  { %25 = vsyncpa [#allocation6], 0 }
  0x10   :  { %26 = vsyncpa [#allocation9], 0 }
  0x11   :  { %27 = vsyncpa [#allocation12], 0 }
  0x12   :  { %28 = vsyncpa [#allocation15], 0 }
  0x13   :  { %29 = vsyncpa [#allocation4], 0 }
  0x14   :  { %31 = vsyncpa [#allocation4 + $0x1], 0  ;;  %s3097_s24 = smov 0   ;;  %s3099_s25 = smov 0  }
  0x15   :  { %s3101_s26 = smov 0   ;;  %s3103_s27 = smov 0  }
  0x16   :  { %s3105_s28 = smov 0   ;;  %s3107_s29 = smov 0  }
  0x17 LB: > { %3746 = sst [smem:[#allocation23_spill]] %s2974_s27  ;;  %s3721_s0 = sadd.s32 4294967295, %s2982_s29   ;;  %s2982_s29 = sphi %s3107_s29, %s37_s29   ;;  %s2978_s28 = sphi %s3105_s28, %s3782_s28   ;;  %s2974_s27 = sphi %s3103_s27, %s3781_s27   ;;  %s2970_s26 = sphi %s3101_s26, %s3780_s26   ;;  %s2966_s25 = sphi %s3099_s25, %s3779_s25   ;;  %s2962_s24 = sphi %s3097_s24, %s3778_s24  }
  0x18   : > { %p2196_p0 = scmp.ge.s32.totalorder %s2982_s29, 1  ;;  %p3131_p1 = scmp.eq.s32.totalorder %s3721_s0, 0 }
  0x19   : > { %p456_p2 = scmp.lt.s32.totalorder %s2982_s29, 3  ;;  %s2984_s19 = smov [#allocation5]  }
  0x1a   : > { %s3747_s30 = scalar_select %p3131_p1, 1, 0 }
  0x1b   : > { %p3136_p3 = pnand %p2196_p0, %p456_p2  ;;  %s474_s1 = sshll.u32 %s2984_s19, 4  ;;  %s3140_s1 = int_to_ptr.vmem [resolvable:$true] %s474_s1 }
  0x1c   : > { %s2985_s21 = smov [#allocation8]   ;;  %s2986_s23 = smov [#allocation11]  }
  0x1d   : > { %s3748_s18 = scalar_select %p3136_p3, 1, 0 }
  0x1e   : > { %p2501_p4 = pneg %p3136_p3  ;;  %s499_s22 = sshll.u32 %s2985_s21, 4  ;;  %s3151_s22 = int_to_ptr.vmem [resolvable:$true] %s499_s22 }
  0x1f   : > { %s3153_s0 = sshll.u32 %s2986_s23, 4  ;;  %s3750_s5 = sld [smem:[#allocation29_spill]]  ;;  %s525_s0 = int_to_ptr.vmem [resolvable:$true] %s3153_s0 }
  0x20   : > { %p3147_p6 = pnand %p2501_p4, %p3131_p1 }
  0x22   : > { %p3163_p8 = pneg %p3147_p6 }
  0x25   : > { %s2658_s16 = scalar_lea.hbm %s3750_s5, 256 }
  0x26   : > { %p2659_p7 = scmp.ne.s32.totalorder %s3750_s5, %s2658_s16  ;;  %p2665_p11 = scmp.lt.u32.totalorder %s2658_s16, %s3750_s5 }
  0x28   : > { %p2661_p9 = pnand %p3163_p8, %p2659_p7 }
  0x2a   : > { %p2662_p10 = pneg %p2661_p9 }
  0x2c   : > { %p2667_p12 = pnand %p2665_p11, %p2662_p10 }
  0x2e   : > { %2670 = shalt.err (!%p2667_p12)
}
  0x2f   : > { %s2671_s14 = scalar_lea.vmem %s3140_s1, 256  ;;  %p2679_p4 = scmp.lt.s32.totalorder %s3140_s1, %s3140_s1 }
  0x30   : > { %p2672_p13 = scmp.ne.s32.totalorder %s3140_s1, %s2671_s14  ;;  %p2680_p5 = scmp.lt.s32.totalorder %s2671_s14, %s2671_s14 }
  0x32   : > { %p2674_p0 = pnand %p2672_p13, %p3163_p8  ;;  %p2681_p7 = por %p2680_p5, %p2679_p4 }
  0x34   : > { %p2675_p2 = pneg %p2674_p0 }
  0x36   : > { %p2682_p9 = pnand %p2681_p7, %p2675_p2 }
  0x38   : > { %2685 = shalt.err (!%p2682_p9)
}
  0x39   : > { %s2987_s15 = smov 64   ;;  %s2988_s16 = smov 4  }
  0x3a   : > { %2504 = dma.hbm_to_vmem [thread:$0]  (!%p3147_p6), %s3750_s5, 256, %s3140_s1, [#allocation6], %s2987_s15, %s2987_s15, %s2988_s16  }
  0x3b   : > { %s2686_s9 = scalar_lea.hbm %s3710_s7, 64 }
  0x3c   : > { %p2687_p5 = scmp.ne.s32.totalorder %s3710_s7, %s2686_s9  ;;  %p2693_p12 = scmp.lt.u32.totalorder %s2686_s9, %s3710_s7 }
  0x3e   : > { %p2689_p10 = pnand %p2687_p5, %p3163_p8 }
  0x40   : > { %p2690_p11 = pneg %p2689_p10 }
  0x42   : > { %p2695_p13 = pnand %p2693_p12, %p2690_p11 }
  0x44   : > { %2698 = shalt.err (!%p2695_p13)
}
  0x45   : > { %s2699_s1 = scalar_lea.vmem %s3151_s22, 64  ;;  %p2707_p7 = scmp.lt.s32.totalorder %s3151_s22, %s3151_s22 }
  0x46   : > { %p2700_p0 = scmp.ne.s32.totalorder %s3151_s22, %s2699_s1  ;;  %p2708_p9 = scmp.lt.s32.totalorder %s2699_s1, %s2699_s1 }
  0x48   : > { %p2702_p2 = pnand %p2700_p0, %p3163_p8  ;;  %p2709_p5 = por %p2708_p9, %p2707_p7 }
  0x4a   : > { %p2703_p4 = pneg %p2702_p2 }
  0x4c   : > { %p2710_p10 = pnand %p2709_p5, %p2703_p4 }
  0x4e   : > { %2713 = shalt.err (!%p2710_p10)
}
  0x4f   : > { %2510 = dma.hbm_to_vmem [thread:$0]  (!%p3147_p6), %s3710_s7, 64, %s3151_s22, [#allocation9]  }
  0x50   : > { %s2714_s15 = scalar_lea.hbm %s3713_s10, 16 }
  0x51   : > { %p2715_p11 = scmp.ne.s32.totalorder %s3713_s10, %s2714_s15  ;;  %p2721_p0 = scmp.lt.u32.totalorder %s2714_s15, %s3713_s10 }
  0x53   : > { %p2717_p12 = pnand %p2715_p11, %p3163_p8 }
  0x55   : > { %p2718_p13 = pneg %p2717_p12 }
  0x57   : > { %p2723_p2 = pnand %p2721_p0, %p2718_p13 }
  0x59   : > { %2726 = shalt.err (!%p2723_p2)
}
  0x5a   : > { %s2727_s23 = scalar_lea.vmem %s525_s0, 16  ;;  %s2734_s22 = scalar_lea.vmem %s525_s0, 32 }
  0x5b   : > { %p2728_p4 = scmp.ne.s32.totalorder %s525_s0, %s2727_s23  ;;  %p2735_p5 = scmp.lt.s32.totalorder %s525_s0, %s525_s0 }
  0x5c   : > { %p2736_p10 = scmp.lt.s32.totalorder %s2734_s22, %s2727_s23 }
  0x5d   : > { %p2730_p7 = pnand %p2728_p4, %p3163_p8 }
  0x5e   : > { %p2737_p3 = por %p2736_p10, %p2735_p5 }
  0x5f   : > { %p2731_p9 = pneg %p2730_p7 }
  0x61   : > { %p2738_p1 = pnand %p2737_p3, %p2731_p9 }
  0x63   : > { %2741 = shalt.err (!%p2738_p1)
}
  0x64   : > { %2516 = dma.hbm_to_vmem [thread:$0]  (!%p3147_p6), %s3713_s10, 16, %s525_s0, [#allocation12]  }
  0x65   : > { %s2989_s3 = smov [#allocation7]   ;;  %s2990_s9 = smov [#allocation10]  }
  0x66   : > { %s488_s4 = sshll.u32 %s2989_s3, 4  ;;  %s510_s27 = sshll.u32 %s2990_s9, 4  ;;  %s489_s4 = int_to_ptr.vmem [resolvable:$true] %s488_s4  ;;  %s511_s27 = int_to_ptr.vmem [resolvable:$true] %s510_s27 }
  0x67   : > { %s2742_s17 = scalar_lea.hbm %s3709_s6, 16 }
  0x68   : > { %p2743_p1 = scmp.ne.s32.totalorder %s3709_s6, %s2742_s17  ;;  %p2749_p12 = scmp.lt.u32.totalorder %s2742_s17, %s3709_s6 }
  0x6a   : > { %p2745_p3 = pnand %p2743_p1, %p3163_p8 }
  0x6c   : > { %p2746_p11 = pneg %p2745_p3 }
  0x6e   : > { %p2751_p13 = pnand %p2749_p12, %p2746_p11 }
  0x70   : > { %2754 = shalt.err (!%p2751_p13)
}
  0x71   : > { %s2755_s0 = scalar_lea.vmem %s489_s4, 16  ;;  %s2762_s14 = scalar_lea.vmem %s489_s4, 32 }
  0x72   : > { %p2756_p0 = scmp.ne.s32.totalorder %s489_s4, %s2755_s0  ;;  %p2763_p7 = scmp.lt.s32.totalorder %s489_s4, %s489_s4 }
  0x73   : > { %p2764_p9 = scmp.lt.s32.totalorder %s2762_s14, %s2755_s0 }
  0x74   : > { %p2758_p2 = pnand %p2756_p0, %p3163_p8 }
  0x75   : > { %p2765_p5 = por %p2764_p9, %p2763_p7 }
  0x76   : > { %p2759_p4 = pneg %p2758_p2 }
  0x78   : > { %p2766_p10 = pnand %p2765_p5, %p2759_p4 }
  0x7a   : > { %2769 = shalt.err (!%p2766_p10)
}
  0x7b   : > { %2507 = dma.hbm_to_vmem [thread:$0]  (!%p3147_p6), %s3709_s6, 16, %s489_s4, [#allocation6]  }
  0x7c   : > { %s2770_s16 = scalar_lea.hbm %s3711_s8, 64 }
  0x7d   : > { %p2771_p1 = scmp.ne.s32.totalorder %s3711_s8, %s2770_s16  ;;  %p2777_p12 = scmp.lt.u32.totalorder %s2770_s16, %s3711_s8 }
  0x7f   : > { %p2773_p3 = pnand %p2771_p1, %p3163_p8 }
  0x81   : > { %p2774_p11 = pneg %p2773_p3 }
  0x83   : > { %p2779_p13 = pnand %p2777_p12, %p2774_p11 }
  0x85   : > { %2782 = shalt.err (!%p2779_p13)
}
  0x86   : > { %s2783_s22 = scalar_lea.vmem %s511_s27, 64  ;;  %p2791_p7 = scmp.lt.s32.totalorder %s511_s27, %s511_s27 }
  0x87   : > { %p2784_p0 = scmp.ne.s32.totalorder %s511_s27, %s2783_s22  ;;  %p2792_p9 = scmp.lt.s32.totalorder %s2783_s22, %s2783_s22 }
  0x89   : > { %p2786_p2 = pnand %p2784_p0, %p3163_p8  ;;  %p2793_p5 = por %p2792_p9, %p2791_p7 }
  0x8b   : > { %p2787_p4 = pneg %p2786_p2 }
  0x8d   : > { %p2794_p10 = pnand %p2793_p5, %p2787_p4 }
  0x8f   : > { %2797 = shalt.err (!%p2794_p10)
}
  0x90   : > { %2513 = dma.hbm_to_vmem [thread:$0]  (!%p3147_p6), %s3711_s8, 64, %s511_s27, [#allocation9]  }
  0x91   : > { %s2991_s14 = smov [#allocation13]   ;;  %s2992_s3 = smov [#allocation14]  }
  0x92   : > { %s535_s1 = sshll.u32 %s2991_s14, 4  ;;  %s546_s9 = sshll.u32 %s2992_s3, 4  ;;  %s536_s1 = int_to_ptr.vmem [resolvable:$true] %s535_s1  ;;  %s547_s9 = int_to_ptr.vmem [resolvable:$true] %s546_s9 }
  0x93   : > { %s2798_s17 = scalar_lea.hbm %s3714_s11, 16 }
  0x94   : > { %p2799_p1 = scmp.ne.s32.totalorder %s3714_s11, %s2798_s17  ;;  %p2805_p12 = scmp.lt.u32.totalorder %s2798_s17, %s3714_s11 }
  0x96   : > { %p2801_p3 = pnand %p2799_p1, %p3163_p8 }
  0x98   : > { %p2802_p11 = pneg %p2801_p3 }
  0x9a   : > { %p2807_p13 = pnand %p2805_p12, %p2802_p11 }
  0x9c   : > { %2810 = shalt.err (!%p2807_p13)
}
  0x9d   : > { %s2811_s27 = scalar_lea.vmem %s536_s1, 16  ;;  %s2818_s4 = scalar_lea.vmem %s536_s1, 32 }
  0x9e   : > { %p2812_p0 = scmp.ne.s32.totalorder %s536_s1, %s2811_s27  ;;  %p2819_p7 = scmp.lt.s32.totalorder %s536_s1, %s536_s1 }
  0x9f   : > { %p2820_p9 = scmp.lt.s32.totalorder %s2818_s4, %s2811_s27 }
  0xa0   : > { %p2814_p2 = pnand %p2812_p0, %p3163_p8 }
  0xa1   : > { %p2821_p5 = por %p2820_p9, %p2819_p7 }
  0xa2   : > { %p2815_p4 = pneg %p2814_p2 }
  0xa4   : > { %p2822_p10 = pnand %p2821_p5, %p2815_p4 }
  0xa6   : > { %2825 = shalt.err (!%p2822_p10)
}
  0xa7   : > { %2519 = dma.hbm_to_vmem [thread:$0]  (!%p3147_p6), %s3714_s11, 16, %s536_s1, [#allocation12]  }
  0xa8   : > { %s2826_s16 = scalar_lea.hbm %s3715_s12, 16 }
  0xa9   : > { %p2827_p1 = scmp.ne.s32.totalorder %s3715_s12, %s2826_s16  ;;  %p2833_p12 = scmp.lt.u32.totalorder %s2826_s16, %s3715_s12 }
  0xab   : > { %p2829_p3 = pnand %p2827_p1, %p3163_p8 }
  0xad   : > { %p2830_p11 = pneg %p2829_p3 }
  0xaf   : > { %p2835_p13 = pnand %p2833_p12, %p2830_p11 }
  0xb1   : > { %2838 = shalt.err (!%p2835_p13)
}
  0xb2   : > { %s2839_s22 = scalar_lea.vmem %s547_s9, 16  ;;  %s2846_s1 = scalar_lea.vmem %s547_s9, 32 }
  0xb3   : > { %p2840_p0 = scmp.ne.s32.totalorder %s547_s9, %s2839_s22  ;;  %p2847_p7 = scmp.lt.s32.totalorder %s547_s9, %s547_s9 }
  0xb4   : > { %p2848_p9 = scmp.lt.s32.totalorder %s2846_s1, %s2839_s22 }
  0xb5   : > { %p2842_p2 = pnand %p2840_p0, %p3163_p8 }
  0xb6   : > { %p2849_p5 = por %p2848_p9, %p2847_p7 }
  0xb7   : > { %p2843_p4 = pneg %p2842_p2 }
  0xb9   : > { %p2850_p10 = pnand %p2849_p5, %p2843_p4 }
  0xbb   : > { %2853 = shalt.err (!%p2850_p10)
}
  0xbc   : > { %2522 = dma.hbm_to_vmem [thread:$0]  (!%p3147_p6), %s3715_s12, 16, %s547_s9, [#allocation15]  }
  0xbd   : > { %s2195_s13 = sadd.s32 4294967294, %s2982_s29   ;;  %s49_s0 = sadd.s32 1, %s2978_s28 }
  0xbe   : > { %s110_s20 = sadd.s32 1, %s2970_s26  ;;  %p51_p8 = scmp.ge.s32.totalorder %s49_s0, 2 }
  0xbf   : > { %p117_p1 = scmp.ne.s32.totalorder %s2970_s26, %s2966_s25  ;;  %p118_p3 = scmp.eq.s32.totalorder %s2982_s29, 0 }
  0xc0   : > { %p123_p11 = scmp.ne.s32.totalorder %s2966_s25, %s2962_s24  ;;  %s3784_s0 = smov (%p51_p8, %s49_s0), 0 }
  0xc1   : > { %p3308_p12 = por %p118_p3, %p117_p1  ;;  %p3753_p13 = scmp.ne.s32.totalorder %s3747_s30, 0 }
  0xc2   : > { %s107_s3 = ssub.s32 %s2978_s28, %s3784_s0  ;;  %s3755_s15 = sadd.s32 4294967295, %s2982_s29  }
  0xc3   : > { %p3314_p6 = por %p3753_p13, %p123_p11  ;;  %p443_p0 = scmp.eq.s32.totalorder %s3755_s15, 1 }
  0xc4   : > { %p108_p2 = scmp.eq.s32.totalorder %s107_s3, 0  ;;  %p449_p4 = scmp.eq.s32.totalorder %s2195_s13, 1 }
  0xc5   : > { %p3322_p7 = por %p443_p0, %p117_p1  ;;  %p2538_p9 = scmp.lt.s32.totalorder %s2982_s29, 2 }
  0xc6   : > { %s3328_s17 = scalar_select %p108_p2, %s2970_s26, %s110_s20  }
  0xc7   : > { %s3756_s16 = scalar_select %p3322_p7, 1, 0 }
  0xc8   : > { %p3330_p5 = por %p449_p4, %p123_p11  ;;  %s586_s21 = sand.u32 1, %s2970_s26  }
  0xc9   : > { %s2205_s23 = sshll.u32 %s2978_s28, 4  ;;  %s589_s22 = scalar_lea.vmem [#allocation2], %s586_s21 }
  0xca   : > { %s3757_s19 = scalar_select %p3330_p5, 1, 0 }
  0xcb   : > { %s596_s1 = sshll.u32 %s589_s22, 4  ;;  %s3758_s2 = sld [smem:[#allocation26_spill]]  ;;  %s3341_s1 = int_to_ptr.vmem [resolvable:$true] %s596_s1 }
  0xcc   : > { %p3345_p10 = pnand %p2538_p9, %p3308_p12  ;;  %s587_s20 = scalar_lea.sflag [#allocation3], %s586_s21 }
  0xce   : > { %p2856_p1 = pneg %p3345_p10 }
  0xd1   : > { %s3339_s3 = scalar_lea.hbm %s3758_s2, %s2205_s23  ;;  %s2859_s27 = scalar_lea.hbm %s3758_s2, 32 }
  0xd2   : > { %s2854_s15 = scalar_lea.hbm %s3339_s3, 16  ;;  %p2860_p12 = scmp.lt.u32.totalorder %s3339_s3, %s3758_s2 }
  0xd3   : > { %p2855_p8 = scmp.ne.s32.totalorder %s3339_s3, %s2854_s15  ;;  %p2861_p13 = scmp.lt.u32.totalorder %s2859_s27, %s2854_s15 }
  0xd4   : > { %p2863_p2 = scmp.lt.u32.totalorder %s2854_s15, %s3339_s3 }
  0xd5   : > { %p2857_p3 = pnand %p2856_p1, %p2855_p8  ;;  %p2862_p0 = por %p2861_p13, %p2860_p12 }
  0xd7   : > { %p2858_p11 = pneg %p2857_p3  ;;  %p2864_p4 = por %p2863_p2, %p2862_p0 }
  0xd9   : > { %p2865_p9 = pnand %p2864_p4, %p2858_p11 }
  0xdb   : > { %2868 = shalt.err (!%p2865_p9)
}
  0xdc   : > { %s2869_s21 = scalar_lea.vmem %s3341_s1, 16  ;;  %s2993_s23 = smov [#allocation2]  }
  0xdd   : > { %p2870_p8 = scmp.ne.s32.totalorder %s3341_s1, %s2869_s21  ;;  %s2874_s22 = sshll.u32 %s2993_s23, 4  ;;  %s2875_s22 = int_to_ptr.vmem [resolvable:$false] %s2874_s22 }
  0xde   : > { %s2876_s14 = scalar_lea.vmem %s2875_s22, 32  ;;  %p2877_p7 = scmp.lt.s32.totalorder %s3341_s1, %s2875_s22 }
  0xdf   : > { %p2872_p3 = pnand %p2870_p8, %p2856_p1  ;;  %p2878_p12 = scmp.lt.s32.totalorder %s2876_s14, %s2869_s21 }
  0xe1   : > { %p2873_p5 = pneg %p2872_p3  ;;  %p2879_p13 = por %p2878_p12, %p2877_p7 }
  0xe3   : > { %p2880_p0 = pnand %p2879_p13, %p2873_p5 }
  0xe5   : > { %2883 = shalt.err (!%p2880_p0)
}
  0xe6   : > { %2526 = dma.hbm_to_vmem [thread:$0]  (!%p3345_p10), %s3339_s3, 16, %s3341_s1, %s587_s20  }
  0xe7   : > { %p3760_p11 = scmp.ne.s32.totalorder %s3748_s18, 0 }
  0xe8   : > { %s3377_s15 = sand.u32 (!%p3760_p11), 1, %s2966_s25  }
  0xe9   : > { %605 = sbr.rel (%p3760_p11) target bundleno = 2864 (0xb30), region = 88  ;;  %s608_s27 = scalar_lea.sflag (!%p3760_p11), [#allocation3], %s3377_s15 }
  0xf0   : > { %2937 = dma.done.wait (%p3314_p6), %s608_s27, 16  }
  0xf1   : > { %2939 = vsyncadd (%p3314_p6), %s608_s27, 4294967280  ;;  %p3761_p7 = scmp.ne.s32.totalorder %s3747_s30, 0 }
  0xf3   : > { %2941 = dma.done.wait (%p3761_p7), [#allocation6], 272  }
  0xf4   : > { %2943 = vsyncadd (%p3761_p7), [#allocation6], 4294967024 }
  0xf5   : > { %2945 = dma.done.wait (%p3761_p7), [#allocation9], 128  }
  0xf6   : > { %2947 = vsyncadd (%p3761_p7), [#allocation9], 4294967168 }
  0xf7   : > { %2949 = dma.done.wait (%p3761_p7), [#allocation12], 32  }
  0xf8   : > { %2951 = vsyncadd (%p3761_p7), [#allocation12], 4294967264 }
  0xf9   : > { %2953 = dma.done.wait (%p3761_p7), [#allocation15], 16  }
  0xfa   : > { %2955 = vsyncadd (%p3761_p7), [#allocation15], 4294967280  ;;  %s3762_s18 = sld [smem:[#allocation23_spill]]  ;;  %v2994_v0 = vmov 0.0   ;;  %vm2995_vm0 = vmmov 0   ;;  %s3763_s13 = sld [smem:[#allocation24_spill]] }
  0xfb   : > { %2313 = vmatprep.subr.bf16.mxu1 %v2994_v0  ;;  %2317 = vmatprep.mubr.msk.bf16.mxu1 %vm2995_vm0, %v2994_v0  ;;  %s3764_s22 = sld [smem:[#allocation27_spill]]  ;;  %vm738_vm1 = vcmask 261120   ;;  %v2618_v5 = vld [vmem:[#allocation5] sm:$0xff]   ;;  %v2619_v6 = vld [vmem:[#allocation5 + $0x8] sm:$0xff]   ;;  %v851_v9 = vld [vmem:[#allocation8] sm:$0xf] }
  0xfc   : > { %2329 = vmatprep.subr.bf16.mxu0 %v2994_v0  ;;  %2331 = vmatprep.mubr.msk.bf16.mxu0 %vm2995_vm0, %v2994_v0  ;;  %vm859_vm2 = vcmask 64512   ;;  %v2231_v11 = vcombine.low %v851_v9, %v851_v9  ;;  %s2996_s2 = smov 120   ;;  %v2221_v19 = vld [vmem:[#allocation7] ss:$0 sm:$0xff]  ;;  %s2997_s3 = smov 112   ;;  %vm977_vm3 = vcmask 1043456  }
  0xfd   : > { %v907_v10 = vsel %vm859_vm2, %v851_v9, 0  ;;  %s2998_s30 = smov 104   ;;  %s3000_s21 = smov 88   ;;  %vm1738_vm4 = vcmask 130048   ;;  %vm1740_vm5 = vcmask 195584   ;;  %vm1948_vm6 = vcmask 523264  }
  0xfe   : > { %1124 = vrot.lane.b32.xlu1 %v2231_v11, %s2996_s2  ;;  %s3001_s23 = smov 80   ;;  %s3002_s14 = smov 72  }
  0xff   : > { %s3003_s27 = smov 8   ;;  %s3004_s4 = smov 16  }
 0x100   : > { %p699_p6 = scmp.lt.s32.totalorder %s3762_s18, 1  ;;  %p3775_p10 = scmp.ne.s32.totalorder %s3756_s16, 0 }
 0x101   : > { %v2616_v1 = vld [vmem:[%s3764_s22] sm:$0xff]   ;;  %v2617_v2 = vld [vmem:[%s3764_s22 + $0x8] sm:$0xff]  }
 0x102   : > { %s700_s9 = scalar_select %p699_p6, %s3762_s18, 1  ;;  %2314 = vmatpush3.bf16.msra.mxu1 %v2616_v1 }
 0x103   : > { %2315 = vmatprep.subr.bf16.mxu1 %v2994_v0 }
 0x104   : > { %s2215_s1 = sshll.u32 %s700_s9, 3  ;;  %s3765_s9 = sld [smem:[#allocation25_spill]] }
 0x105   : > { %s705_s20 = scalar_lea.vmem %s3763_s13, %s2215_s1  ;;  %s3767_s13 = scalar_lea.vmem [#allocation2], %s3377_s15 }
 0x106   : > { %v3418_v3 = vld [vmem:[%s705_s20] sm:$0xff]  ;;  %2316 = vmatpush3.bf16.msra.mxu1 %v2617_v2  ;;  %s2999_s20 = smov 96  }
 0x107   : > { %v713_v4 = vpack.c.bf16 %v3418_v3, %v3418_v3  ;;  %2321 = vmatprep.subr.bf16.mxu1 %v2994_v0  ;;  %v2225_v47 = vld [vmem:[%s3767_s13] ss:$0 sm:$0xff] }
 0x109   : > { %2318 = vmatmul.mubr.msk.bf16.vlgmr.msra.gmra.mrb[0].mxu1 %vm738_vm1, %v713_v4 }
 0x10a   : > { %s709_s5 = scalar_lea.vmem %s3765_s9, %s2215_s1  ;;  %2322 = vmatpush3.bf16.msra.mxu1 %v2618_v5  ;;  %2325 = vmatprep.mubr.msk.bf16.mxu1 %vm2995_vm0, %v2994_v0  ;;  %s3766_s1 = sld [smem:[#allocation28_spill]] }
 0x10b   : > { %v712_v7 = vld [vmem:[%s709_s5] sm:$0xff]  ;;  %2323 = vmatprep.subr.bf16.mxu1 %v2994_v0  ;;  %s3768_s5 = sld [smem:[#allocation30_spill]] }
 0x10c   : > { %v714_v8 = vpack.c.bf16 %v712_v7, %v712_v7 }
 0x10e   : > { %2324 = vmatpush3.bf16.msra.mxu1 %v2619_v6 }
 0x10f   : > { %2335 = vmatprep.subr.bf16.mxu1 %v2994_v0 }
 0x110   : > { %v2217_v12 = vld [vmem:[%s3766_s1] ss:$0 sm:$0xff]  ;;  %s3772_s1 = sld [smem:[#allocation34_spill]] }
 0x111   : > { %2326 = vmatmul.mubr.msk.bf16.vlgmr.msra.gmra.mrb[4].mxu1 %vm738_vm1, %v714_v8 }
 0x112   : > { %2337 = vmatprep.mubr.msk.bf16.mxu1 %vm2995_vm0, %v2994_v0 }
 0x117   : > { %2336 = vmatpush3.bf16.xpose.msra.mxu1 %v907_v10 }
 0x118   : > { %2353 = vmatprep.subr.bf16.mxu1 %v2994_v0 }
 0x170   : > { %v1125_v29 = vpop.permute.xlu1 %1124 }
 0x171   : > { %v1127_v30 = vsel %vm859_vm2, %v1125_v29, 0 }
 0x1dc   : > { %v776_v13 = vpop.f32.mrb[0].mxu1 }
 0x1dd   : > { %v777_v14 = vadd.f32 %v2217_v12, %v776_v13  ;;  %v2319_v15 = vpop.f32.mrb[1].mxu1 }
 0x1de   : > { %v779_v16 = vpop.f32.mrb[2].mxu1 }
 0x1df   : > { %v848_v17 = vpack.c.bf16 %v777_v14, %v777_v14  ;;  %v2320_v18 = vpop.f32.mrb[3].mxu1 }
 0x1e1   : > { %2338 = vmatmul.mubr.msk.bf16.vlgmr.msra.gmra.mrb[8].mxu1 %vm859_vm2, %v848_v17 }
 0x1e2   : > { %2355 = vmatprep.mubr.msk.bf16.mxu1 %vm2995_vm0, %v2994_v0 }
 0x1e4   : > { %v842_v20 = vpop.f32.mrb[4].mxu1 }
 0x1e5   : > { %v843_v21 = vadd.f32 %v2221_v19, %v842_v20  ;;  %v2327_v22 = vpop.f32.mrb[5].mxu1 }
 0x1e6   : > { %v845_v23 = vpop.f32.mrb[6].mxu1 }
 0x1e7   : > { %v3444_v24 = vpack.c.bf16 %v843_v21, %v843_v21  ;;  %v2328_v25 = vpop.f32.mrb[7].mxu1 }
 0x1e9   : > { %1295 = vrot.lane.b32.xlu1 %v3444_v24, %s2997_s3  ;;  %1073 = vrot.lane.b32.xlu0 %v3444_v24, %s2996_s2  ;;  %v864_v26 = vsel %vm859_vm2, %v3444_v24, 0 }
 0x1ea   : > { %2330 = vmatpush3.bf16.xpose.msra.mxu0 %v864_v26 }
 0x1eb   : > { %2341 = vmatprep.subr.bf16.mxu0 %v2994_v0 }
 0x1ed   : > { %1343 = vrot.lane.b32.xlu1 %v2231_v11, %s2997_s3  ;;  %1071 = vrot.lane.b32.xlu0 %v848_v17, %s2996_s2 }
 0x1f1   : > { %1509 = vrot.lane.b32.xlu1 %v848_v17, %s2998_s30  ;;  %1293 = vrot.lane.b32.xlu0 %v848_v17, %s2997_s3 }
 0x1f2   : > { %2332 = vmatmul.mubr.msk.bf16.vlgmr.msra.gmra.mrb[0].mxu0 %vm859_vm2, %v848_v17 }
 0x1f3   : > { %2343 = vmatprep.mubr.msk.bf16.mxu0 %vm2995_vm0, %v2994_v0 }
 0x1f5   : > { %1511 = vrot.lane.b32.xlu0 %v3444_v24, %s2998_s30 }
 0x1f9   : > { %1559 = vrot.lane.b32.xlu0 %v2231_v11, %s2998_s30 }
 0x25b   : > { %v1074_v27 = vpop.permute.xlu0 %1073  ;;  %v1296_v32 = vpop.permute.xlu1 %1295 }
 0x25c   : > { %v1079_v28 = vsel %vm859_vm2, %v1074_v27, 0  ;;  %v1301_v33 = vsel %vm859_vm2, %v1296_v32, 0 }
 0x25d   : > { %2354 = vmatpush3.bf16.xpose.msra.mxu1 %v1079_v28 }
 0x25e   : > { %2359 = vmatprep.subr.bf16.mxu1 %v2994_v0 }
 0x25f   : > { %v1072_v31 = vpop.permute.xlu0 %1071  ;;  %v1344_v34 = vpop.permute.xlu1 %1343 }
 0x260   : > { %v1346_v35 = vsel %vm859_vm2, %v1344_v34, 0 }
 0x263   : > { %v1294_v36 = vpop.permute.xlu0 %1293  ;;  %v1510_v41 = vpop.permute.xlu1 %1509 }
 0x264   : > { %2356 = vmatmul.mubr.msk.bf16.vlgmr.msra.gmra.mrb[12].mxu1 %vm859_vm2, %v1072_v31 }
 0x265   : > { %2360 = vmatpush3.bf16.xpose.msra.mxu1 %v1127_v30  ;;  %2361 = vmatprep.mubr.msk.bf16.mxu1 %vm2995_vm0, %v2994_v0 }
 0x266   : > { %2377 = vmatprep.subr.bf16.mxu1 %v2994_v0 }
 0x267   : > { %v1512_v37 = vpop.permute.xlu0 %1511 }
 0x268   : > { %v1517_v38 = vsel %vm859_vm2, %v1512_v37, 0  ;;  %v852_v37 = vld [vmem:[#allocation10] sm:$0xf] }
 0x26b   : > { %v1560_v39 = vpop.permute.xlu0 %1559 }
 0x26c   : > { %2362 = vmatmul.mubr.msk.bf16.vlgmr.msra.gmra.mrb[16].mxu1 %vm859_vm2, %v1072_v31  ;;  %v1562_v40 = vsel %vm859_vm2, %v1560_v39, 0 }
 0x26d   : > { %2378 = vmatpush3.bf16.xpose.msra.mxu1 %v1301_v33  ;;  %2379 = vmatprep.mubr.msk.bf16.mxu1 %vm2995_vm0, %v2994_v0 }
 0x26e   : > { %2383 = vmatprep.subr.bf16.mxu1 %v2994_v0 }
 0x274   : > { %2380 = vmatmul.mubr.msk.bf16.vlgmr.msra.gmra.mrb[20].mxu1 %vm859_vm2, %v1294_v36 }
 0x275   : > { %2384 = vmatpush3.bf16.xpose.msra.mxu1 %v1346_v35  ;;  %2385 = vmatprep.mubr.msk.bf16.mxu1 %vm2995_vm0, %v2994_v0 }
 0x276   : > { %2401 = vmatprep.subr.bf16.mxu1 %v2994_v0 }
 0x27c   : > { %2386 = vmatmul.mubr.msk.bf16.vlgmr.msra.gmra.mrb[24].mxu1 %vm859_vm2, %v1294_v36 }
 0x27d   : > { %2402 = vmatpush3.bf16.xpose.msra.mxu1 %v1517_v38  ;;  %2403 = vmatprep.mubr.msk.bf16.mxu1 %vm2995_vm0, %v2994_v0  ;;  %v979_v38 = vsel %vm977_vm3, %v852_v37, 0 }
 0x27e   : > { %2407 = vmatprep.subr.bf16.mxu1 %v2994_v0  ;;  %2342 = vmatpush3.bf16.msra.mxu0 %v979_v38 }
 0x27f   : > { %2347 = vmatprep.subr.bf16.mxu0 %v2994_v0 }
 0x284   : > { %2404 = vmatmul.mubr.msk.bf16.vlgmr.msra.gmra.mrb[28].mxu1 %vm859_vm2, %v1510_v41 }
 0x285   : > { %2408 = vmatpush3.bf16.xpose.msra.mxu1 %v1562_v40  ;;  %2409 = vmatprep.mubr.msk.bf16.mxu1 %vm2995_vm0, %v2994_v0 }
 0x286   : > { %2425 = vmatprep.subr.bf16.mxu1 %v2994_v0 }
 0x28c   : > { %2410 = vmatmul.mubr.msk.bf16.vlgmr.msra.gmra.mrb[32].mxu1 %vm859_vm2, %v1510_v41 }
 0x28d   : > { %2429 = vmatprep.mubr.msk.bf16.mxu1 %vm2995_vm0, %v2994_v0 }
 0x2b4   : > { %v943_v42 = vpop.f32.mrb[8].mxu1 }
 0x2b5   : > { %v2339_v43 = vpop.f32.mrb[9].mxu1  ;;  %v952_v44 = vsel %vm859_vm2, %v943_v42, -inf }
 0x2b6   : > { %953 = vmax.xlane.f32.xlu0 %v952_v44  ;;  %v946_v45 = vpop.f32.mrb[10].mxu1 }
 0x2b7   : > { %v2340_v46 = vpop.f32.mrb[11].mxu1 }
 0x2c5   : > { %v900_v48 = vpop.f32.mrb[0].mxu0 }
 0x2c6   : > { %v901_v49 = vadd.f32 %v2225_v47, %v900_v48  ;;  %v2333_v50 = vpop.f32.mrb[1].mxu0 }
 0x2c7   : > { %v903_v51 = vpop.f32.mrb[2].mxu0  ;;  %v2233_v50 = vcombine.low %v852_v37, %v852_v37 }
 0x2c8   : > { %v2334_v52 = vpop.f32.mrb[3].mxu0  ;;  %v949_v53 = vsel %vm859_vm2, %v901_v49, -inf }
 0x2c9   : > { %950 = vmax.xlane.f32.xlu1 %v949_v53 }
 0x337   : > { %v1115_v54 = vpop.f32.mrb[12].mxu1 }
 0x338   : > { %v3497_v55 = vadd.f32 %v2225_v47, %v1115_v54  ;;  %v2357_v56 = vpop.f32.mrb[13].mxu1 }
 0x339   : > { %v1118_v57 = vpop.f32.mrb[14].mxu1 }
 0x33a   : > { %v2358_v58 = vpop.f32.mrb[15].mxu1  ;;  %v1169_v59 = vsel %vm859_vm2, %v3497_v55, -inf }
 0x33b   : > { %1170 = vmax.xlane.f32.xlu0 %v1169_v59 }
 0x33f   : > { %v1163_v60 = vpop.f32.mrb[16].mxu1 }
 0x340   : > { %v2363_v61 = vpop.f32.mrb[17].mxu1  ;;  %v1172_v62 = vsel %vm859_vm2, %v1163_v60, -inf }
 0x341   : > { %1173 = vmax.xlane.f32.xlu1 %v1172_v62  ;;  %v1166_v63 = vpop.f32.mrb[18].mxu1 }
 0x342   : > { %v2364_v1 = vpop.f32.mrb[19].mxu1 }
 0x343   : > { %v954_v14 = vpop.xlane.xlu0 %953 }
 0x347   : > { %v1337_v2 = vpop.f32.mrb[20].mxu1 }
 0x348   : > { %v3502_v4 = vadd.f32 %v2225_v47, %v1337_v2  ;;  %v2381_v5 = vpop.f32.mrb[21].mxu1 }
 0x349   : > { %v1340_v6 = vpop.f32.mrb[22].mxu1 }
 0x34a   : > { %v2382_v7 = vpop.f32.mrb[23].mxu1  ;;  %v1388_v8 = vsel %vm859_vm2, %v3502_v4, -inf }
 0x34b   : > { %1389 = vmax.xlane.f32.xlu0 %v1388_v8 }
 0x34f   : > { %v3506_v9 = vpop.f32.mrb[24].mxu1 }
 0x350   : > { %v2387_v10 = vpop.f32.mrb[25].mxu1  ;;  %v1391_v11 = vsel %vm859_vm2, %v3506_v9, -inf }
 0x351   : > { %1392 = vmax.xlane.f32.xlu1 %v1391_v11  ;;  %v1385_v12 = vpop.f32.mrb[26].mxu1 }
 0x352   : > { %v2388_v13 = vpop.f32.mrb[27].mxu1 }
 0x356   : > { %v951_v15 = vpop.xlane.xlu1 %950 }
 0x357   : > { %v955_v16 = vmax.f32 %v951_v15, %v954_v14  ;;  %v1553_v17 = vpop.f32.mrb[28].mxu1 }
 0x358   : > { %v1554_v18 = vadd.f32 %v2225_v47, %v1553_v17  ;;  %v2405_v19 = vpop.f32.mrb[29].mxu1 }
 0x359   : > { %v959_v20 = vsub.f32 %v943_v42, %v955_v16  ;;  %v1556_v21 = vpop.f32.mrb[30].mxu1  ;;  %v956_v33 = vsub.f32 %v901_v49, %v955_v16 }
 0x35a   : > { %v2406_v22 = vpop.f32.mrb[31].mxu1  ;;  %v1604_v23 = vsel %vm859_vm2, %v1554_v18, -inf }
 0x35b   : > { %v960_v25 = vmul.f32 1.442695, %v959_v20  ;;  %1605 = vmax.xlane.f32.xlu0 %v1604_v23  ;;  %v957_v34 = vmul.f32 1.442695, %v956_v33 }
 0x35d   : > { %2630 = vpow2.f32 %v960_v25 }
 0x35e   : > { %2632 = vpow2.f32 %v957_v34 }
 0x35f   : > { %v1598_v26 = vpop.f32.mrb[32].mxu1 }
 0x360   : > { %v2411_v27 = vpop.f32.mrb[33].mxu1  ;;  %v1607_v28 = vsel %vm859_vm2, %v1598_v26, -inf }
 0x361   : > { %1608 = vmax.xlane.f32.xlu1 %v1607_v28  ;;  %v1601_v29 = vpop.f32.mrb[34].mxu1 }
 0x362   : > { %v2412_v30 = vpop.f32.mrb[35].mxu1 }
 0x367   : > { %v3512_v31 = vpop.eup %2630 }
 0x368   : > { %v965_v32 = vsel %vm859_vm2, %v3512_v31, 0.0  ;;  %v3517_v35 = vpop.eup %2632 }
 0x369   : > { %966 = vadd.xlane.f32.xlu1 %v965_v32  ;;  %v962_v36 = vsel %vm859_vm2, %v3517_v35, 0.0 }
 0x371   : > { %1022 = vrot.lane.b32.xlu0 %v3444_v24, %s2999_s20 }
 0x390   : > { %963 = vadd.xlane.f32.xlu0 %v962_v36 }
 0x3c8   : > { %v1171_v39 = vpop.xlane.xlu0 %1170 }
 0x3ce   : > { %v1174_v40 = vpop.xlane.xlu1 %1173 }
 0x3cf   : > { %v1175_v41 = vmax.f32 %v1171_v39, %v1174_v40 }
 0x3d1   : > { %v1176_v42 = vsub.f32 %v3497_v55, %v1175_v41  ;;  %v1179_v43 = vsub.f32 %v1163_v60, %v1175_v41 }
 0x3d3   : > { %v1177_v44 = vmul.f32 1.442695, %v1176_v42  ;;  %v1180_v45 = vmul.f32 1.442695, %v1179_v43 }
 0x3d5   : > { %2634 = vpow2.f32 %v1177_v44 }
 0x3d6   : > { %2636 = vpow2.f32 %v1180_v45 }
 0x3d8   : > { %v1390_v52 = vpop.xlane.xlu0 %1389 }
 0x3de   : > { %v1393_v51 = vpop.xlane.xlu1 %1392 }
 0x3df   : > { %v3524_v46 = vpop.eup %2634  ;;  %v1394_v53 = vmax.f32 %v1390_v52, %v1393_v51 }
 0x3e0   : > { %v3526_v47 = vpop.eup %2636  ;;  %v1182_v48 = vsel %vm859_vm2, %v3524_v46, 0.0 }
 0x3e1   : > { %1183 = vadd.xlane.f32.xlu0 %v1182_v48  ;;  %v1185_v49 = vsel %vm859_vm2, %v3526_v47, 0.0  ;;  %v1395_v57 = vsub.f32 %v3502_v4, %v1394_v53  ;;  %v1398_v60 = vsub.f32 %v3506_v9, %v1394_v53 }
 0x3e2   : > { %1186 = vadd.xlane.f32.xlu1 %v1185_v49 }
 0x3e3   : > { %v1396_v59 = vmul.f32 1.442695, %v1395_v57  ;;  %v1399_v62 = vmul.f32 1.442695, %v1398_v60 }
 0x3e5   : > { %2638 = vpow2.f32 %v1396_v59 }
 0x3e8   : > { %v1606_v55 = vpop.xlane.xlu0 %1605 }
 0x3ec   : > { %v1023_v7 = vpop.permute.xlu0 %1022 }
 0x3ee   : > { %v1609_v54 = vpop.xlane.xlu1 %1608 }
 0x3ef   : > { %v1610_v56 = vmax.f32 %v1606_v55, %v1609_v54  ;;  %v3537_v2 = vpop.eup %2638 }
 0x3f0   : > { %v1401_v6 = vsel %vm859_vm2, %v3537_v2, 0.0 }
 0x3f1   : > { %v1611_v58 = vsub.f32 %v1554_v18, %v1610_v56  ;;  %v1614_v63 = vsub.f32 %v1598_v26, %v1610_v56  ;;  %v1028_v18 = vsel %vm977_vm3, %v1023_v7, 0 }
 0x3f3   : > { %1197 = vrot.lane.b32.xlu1 %v2233_v50, %s2996_s2  ;;  %v1612_v61 = vmul.f32 1.442695, %v1611_v58  ;;  %v1615_v1 = vmul.f32 1.442695, %v1614_v63  ;;  %s3770_s2 = sld [smem:[#allocation33_spill]] }
 0x3f5   : > { %2640 = vpow2.f32 %v1612_v61 }
 0x3f6   : > { %2642 = vpow2.f32 %v1399_v62  ;;  %v967_v11 = vpop.xlane.xlu1 %966 }
 0x3f7   : > { %1245 = vrot.lane.b32.xlu0 %v3444_v24, %s3000_s21  ;;  %2644 = vpow2.f32 %v1615_v1  ;;  %s3769_s21 = sld [smem:[#allocation31_spill]] }
 0x3fb   : > { %1413 = vrot.lane.b32.xlu0 %v2233_v50, %s2997_s3  ;;  %s2214_s3 = sshll.u32 %s3377_s15, 3 }
 0x3fc   : > { %s698_s13 = scalar_lea.vmem [#allocation16], %s2214_s3 }
 0x3fd   : > { %s2024_s20 = sshll.u32 %s698_s13, 4  ;;  %s3655_s20 = int_to_ptr.vmem [resolvable:$true] %s2024_s20 }
 0x3ff   : > { %v3539_v5 = vpop.eup %2640 }
 0x400   : > { %v3543_v4 = vpop.eup %2642  ;;  %v1617_v8 = vsel %vm859_vm2, %v3539_v5, 0.0 }
 0x401   : > { %v1404_v9 = vsel %vm859_vm2, %v3543_v4, 0.0  ;;  %v3549_v10 = vpop.eup %2644 }
 0x402   : > { %v1620_v14 = vsel %vm859_vm2, %v3549_v10, 0.0 }
 0x417   : > { %1402 = vadd.xlane.f32.xlu1 %v1401_v6 }
 0x41a   : > { %1618 = vadd.xlane.f32.xlu0 %v1617_v8  ;;  %v2623_v8 = vld [vmem:[%s3768_s5 + $0x8] sm:$0xff]  }
 0x41b   : > { %1405 = vadd.xlane.f32.xlu1 %v1404_v9 }
 0x41d   : > { %v964_v12 = vpop.xlane.xlu0 %963 }
 0x41e   : > { %v968_v13 = vadd.f32 %v967_v11, %v964_v12 }
 0x41f   : > { %1621 = vadd.xlane.f32.xlu1 %v1620_v14 }
 0x420   : > { %2646 = vrcp.f32 %v968_v13 }
 0x42a   : > { %v2647_v15 = vpop.eup %2646 }
 0x42b   : > { %v972_v16 = vmul.f32 %v2647_v15, %v3512_v31  ;;  %v970_v19 = vmul.f32 %v2647_v15, %v3517_v35 }
 0x42d   : > { %v973_v17 = vpack.c.bf16 %v972_v16, %v972_v16  ;;  %v971_v20 = vpack.c.bf16 %v970_v19, %v970_v19 }
 0x42f   : > { %2344 = vmatmul.mubr.msk.bf16.vlgmr.msra.gmra.mrb[4].mxu0 %vm859_vm2, %v973_v17 }
 0x430   : > { %1461 = vrot.lane.b32.xlu1 %v3444_v24, %s3001_s23  ;;  %2348 = vmatpush3.bf16.msra.mxu0 %v1028_v18 }
 0x431   : > { %2349 = vmatprep.mubr.msk.bf16.mxu0 %vm2995_vm0, %v2994_v0  ;;  %1629 = vrot.lane.b32.xlu0 %v2233_v50, %s2998_s30  ;;  %s3005_s30 = smov 24  }
 0x432   : > { %2365 = vmatprep.subr.bf16.mxu0 %v2994_v0 }
 0x434   : > { %1677 = vrot.lane.b32.xlu1 %v3444_v24, %s3002_s14 }
 0x43b   : > { %2350 = vmatmul.mubr.msk.bf16.vlgmr.msra.gmra.mrb[4].mxu0 %vm859_vm2, %v971_v20  ;;  %v2244_v20 = vld [vmem:[#allocation11] ss:$0 sm:$0xff] }
 0x43c   : > { %2367 = vmatprep.mubr.msk.bf16.mxu0 %vm2995_vm0, %v2994_v0 }
 0x46e   : > { %v1184_v21 = vpop.xlane.xlu0 %1183 }
 0x46f   : > { %v1187_v22 = vpop.xlane.xlu1 %1186 }
 0x470   : > { %v1188_v23 = vadd.f32 %v1187_v22, %v1184_v21 }
 0x472   : > { %2648 = vrcp.f32 %v1188_v23  ;;  %v1246_v28 = vpop.permute.xlu0 %1245 }
 0x473   : > { %v1198_v25 = vpop.permute.xlu1 %1197  ;;  %v1251_v30 = vsel %vm977_vm3, %v1246_v28, 0 }
 0x474   : > { %v1203_v26 = vsel %vm977_vm3, %v1198_v25, 0 }
 0x475   : > { %2366 = vmatpush3.bf16.msra.mxu0 %v1203_v26 }
 0x476   : > { %2371 = vmatprep.subr.bf16.mxu0 %v2994_v0  ;;  %v1414_v32 = vpop.permute.xlu0 %1413 }
 0x477   : > { %v1419_v34 = vsel %vm977_vm3, %v1414_v32, 0 }
 0x47c   : > { %v2649_v27 = vpop.eup %2648 }
 0x47d   : > { %v1192_v24 = vmul.f32 %v2649_v27, %v3526_v47  ;;  %v1190_v31 = vmul.f32 %v2649_v27, %v3524_v46 }
 0x47f   : > { %v1193_v29 = vpack.c.bf16 %v1192_v24, %v1192_v24  ;;  %v1191_v33 = vpack.c.bf16 %v1190_v31, %v1190_v31 }
 0x481   : > { %2368 = vmatmul.mubr.msk.bf16.vlgmr.msra.gmra.mrb[8].mxu0 %vm859_vm2, %v1193_v29 }
 0x482   : > { %2372 = vmatpush3.bf16.msra.mxu0 %v1251_v30  ;;  %2373 = vmatprep.mubr.msk.bf16.mxu0 %vm2995_vm0, %v2994_v0 }
 0x483   : > { %2389 = vmatprep.subr.bf16.mxu0 %v2994_v0 }
 0x48d   : > { %2374 = vmatmul.mubr.msk.bf16.vlgmr.msra.gmra.mrb[8].mxu0 %vm859_vm2, %v1191_v33  ;;  %v2624_v33 = vld [vmem:[%s3769_s21] sm:$0xff]  }
 0x48e   : > { %2390 = vmatpush3.bf16.msra.mxu0 %v1419_v34  ;;  %2391 = vmatprep.mubr.msk.bf16.mxu0 %vm2995_vm0, %v2994_v0  ;;  %v2625_v34 = vld [vmem:[%s3769_s21 + $0x8] sm:$0xff]  }
 0x48f   : > { %2395 = vmatprep.subr.bf16.mxu0 %v2994_v0 }
 0x4a4   : > { %v1403_v35 = vpop.xlane.xlu1 %1402 }
 0x4a7   : > { %v1619_v40 = vpop.xlane.xlu0 %1618 }
 0x4a8   : > { %v1406_v36 = vpop.xlane.xlu1 %1405 }
 0x4a9   : > { %v1407_v37 = vadd.f32 %v1406_v36, %v1403_v35  ;;  %v2627_v35 = vld [vmem:[%s3770_s2 + $0x8] sm:$0xff]  }
 0x4ab   : > { %2650 = vrcp.f32 %v1407_v37  ;;  %v1630_v47 = vpop.permute.xlu0 %1629 }
 0x4ac   : > { %v1622_v38 = vpop.xlane.xlu1 %1621  ;;  %v1635_v48 = vsel %vm977_vm3, %v1630_v47, 0  ;;  %v2629_v47 = vld [vmem:[%s3770_s2 + $0x18] sm:$0xff]  }
 0x4ad   : > { %v1623_v42 = vadd.f32 %v1622_v38, %v1619_v40  ;;  %v2248_v40 = vld [vmem:[#allocation13] ss:$0 sm:$0xff] }
 0x4af   : > { %2652 = vrcp.f32 %v1623_v42  ;;  %v2249_v42 = vld [vmem:[#allocation14] ss:$0 sm:$0xff] }
 0x4b0   : > { %v1462_v43 = vpop.permute.xlu1 %1461 }
 0x4b1   : > { %v1467_v45 = vsel %vm977_vm3, %v1462_v43, 0 }
 0x4b4   : > { %v1678_v52 = vpop.permute.xlu1 %1677 }
 0x4b5   : > { %v2651_v39 = vpop.eup %2650  ;;  %v1683_v54 = vsel %vm977_vm3, %v1678_v52, 0 }
 0x4b6   : > { %v1411_v41 = vmul.f32 %v2651_v39, %v3543_v4  ;;  %v1409_v46 = vmul.f32 %v2651_v39, %v3537_v2  ;;  %v2622_v2 = vld [vmem:[%s3768_s5] sm:$0xff]  }
 0x4b7   : > { %2426 = vmatpush3.bf16.msra.mxu1 %v2622_v2 }
 0x4b8   : > { %v1412_v44 = vpack.c.bf16 %v1411_v41, %v1411_v41  ;;  %v1410_v49 = vpack.c.bf16 %v1409_v46, %v1409_v46  ;;  %2427 = vmatprep.subr.bf16.mxu1 %v2994_v0  ;;  %v2628_v46 = vld [vmem:[%s3770_s2 + $0x10] sm:$0xff]  }
 0x4b9   : > { %v2653_v50 = vpop.eup %2652 }
 0x4ba   : > { %2392 = vmatmul.mubr.msk.bf16.vlgmr.msra.gmra.mrb[12].mxu0 %vm859_vm2, %v1412_v44  ;;  %v1627_v51 = vmul.f32 %v2653_v50, %v3549_v10  ;;  %v1625_v55 = vmul.f32 %v2653_v50, %v3539_v5 }
 0x4bb   : > { %2396 = vmatpush3.bf16.msra.mxu0 %v1467_v45  ;;  %2397 = vmatprep.mubr.msk.bf16.mxu0 %vm2995_vm0, %v2994_v0 }
 0x4bc   : > { %2413 = vmatprep.subr.bf16.mxu0 %v2994_v0  ;;  %v1628_v53 = vpack.c.bf16 %v1627_v51, %v1627_v51  ;;  %v1626_v56 = vpack.c.bf16 %v1625_v55, %v1625_v55  ;;  %2428 = vmatpush3.bf16.msra.mxu1 %v2623_v8 }
 0x4bd   : > { %2433 = vmatprep.subr.bf16.mxu1 %v2994_v0 }
 0x4c6   : > { %2398 = vmatmul.mubr.msk.bf16.vlgmr.msra.gmra.mrb[12].mxu0 %vm859_vm2, %v1410_v49 }
 0x4c7   : > { %2414 = vmatpush3.bf16.msra.mxu0 %v1635_v48  ;;  %2415 = vmatprep.mubr.msk.bf16.mxu0 %vm2995_vm0, %v2994_v0 }
 0x4c8   : > { %2419 = vmatprep.subr.bf16.mxu0 %v2994_v0 }
 0x4ce   : > { %2416 = vmatmul.mubr.msk.bf16.vlgmr.msra.gmra.mrb[16].mxu0 %vm859_vm2, %v1628_v53 }
 0x4cf   : > { %2420 = vmatpush3.bf16.msra.mxu0 %v1683_v54  ;;  %2421 = vmatprep.mubr.msk.bf16.mxu0 %vm2995_vm0, %v2994_v0 }
 0x4d0   : > { %2441 = vmatprep.subr.bf16.mxu0 %v2994_v0 }
 0x4da   : > { %2422 = vmatmul.mubr.msk.bf16.vlgmr.msra.gmra.mrb[16].mxu0 %vm859_vm2, %v1626_v56 }
 0x4db   : > { %2449 = vmatprep.mubr.msk.bf16.mxu0 %vm2995_vm0, %v2994_v0 }
 0x50e   : > { %v1064_v57 = vpop.f32.mrb[4].mxu0 }
 0x50f   : > { %v2351_v58 = vpop.f32.mrb[5].mxu0 }
 0x510   : > { %v1067_v59 = vpop.f32.mrb[6].mxu0 }
 0x511   : > { %v2352_v60 = vpop.f32.mrb[7].mxu0 }
 0x560   : > { %v1287_v61 = vpop.f32.mrb[8].mxu0 }
 0x561   : > { %1726 = vrot.lane.b32.xlu0 %v1287_v61, %s3003_s27  ;;  %v2375_v62 = vpop.f32.mrb[9].mxu0  ;;  %s3771_s27 = sld [smem:[#allocation32_spill]] }
 0x562   : > { %v1290_v63 = vpop.f32.mrb[10].mxu0 }
 0x563   : > { %v2376_v1 = vpop.f32.mrb[11].mxu0 }
 0x567   : > { %v2250_v48 = vld [vmem:[%s3771_s27] ss:$0 sm:$0xff]  ;;  %s3773_s27 = sld [smem:[#allocation35_spill]] }
 0x56d   : > { %s3774_s9 = smov %s3773_s27 }
 0x599   : > { %v1503_v5 = vpop.f32.mrb[12].mxu0 }
 0x59a   : > { %1730 = vrot.lane.b32.xlu1 %v1503_v5, %s3004_s4  ;;  %v2399_v6 = vpop.f32.mrb[13].mxu0 }
 0x59b   : > { %v1506_v4 = vpop.f32.mrb[14].mxu0 }
 0x59c   : > { %v2400_v7 = vpop.f32.mrb[15].mxu0 }
 0x5ad   : > { %v1719_v9 = vpop.f32.mrb[16].mxu0 }
 0x5ae   : > { %1734 = vrot.lane.b32.xlu0 %v1719_v9, %s3005_s30  ;;  %v2423_v10 = vpop.f32.mrb[17].mxu0  ;;  %s2261_s30 = sshll.u32 %s3762_s18, 7  ;;  %s3006_s18 = smov [#allocation16]  }
 0x5af   : > { %v1722_v11 = vpop.f32.mrb[18].mxu0  ;;  %s3653_s4 = scalar_lea.hbm %s3773_s27, %s2261_s30  ;;  %s2888_s3 = sshll.u32 %s3006_s18, 4  ;;  %s2889_s3 = int_to_ptr.vmem [resolvable:$false] %s2888_s3 }
 0x5b0   : > { %v2424_v12 = vpop.f32.mrb[19].mxu0  ;;  %s2890_s5 = scalar_lea.vmem %s2889_s3, 256  ;;  %p2891_p4 = scmp.lt.s32.totalorder %s3655_s20, %s2889_s3 }
 0x5d3   : > { %v1727_v13 = vpop.permute.xlu0 %1726 }
 0x5d4   : > { %v1737_v15 = vsel %vm859_vm2, %v1064_v57, %v1727_v13 }
 0x60c   : > { %v1731_v14 = vpop.permute.xlu1 %1730 }
 0x60d   : > { %v1739_v16 = vsel %vm1738_vm4, %v1737_v15, %v1731_v14 }
 0x620   : > { %v1735_v17 = vpop.permute.xlu0 %1734 }
 0x621   : > { %v1741_v18 = vsel %vm1740_vm5, %v1739_v16, %v1735_v17 }
 0x622   : > { %v1742_v19 = vpack.c.bf16 %v1741_v18, %v1741_v18 }
 0x624   : > { %2430 = vmatmul.mubr.msk.bf16.vlgmr.msra.gmra.mrb[36].mxu1 %vm738_vm1, %v1742_v19 }
 0x625   : > { %2437 = vmatprep.mubr.msk.bf16.mxu1 %vm2995_vm0, %v2994_v0  ;;  %2434 = vmatpush3.bf16.msra.mxu1 %v2624_v33 }
 0x626   : > { %2435 = vmatprep.subr.bf16.mxu1 %v2994_v0 }
 0x629   : > { %2436 = vmatpush3.bf16.msra.mxu1 %v2625_v34 }
 0x6f7   : > { %v1803_v21 = vpop.f32.mrb[36].mxu1 }
 0x6f8   : > { %v1804_v22 = vadd.f32 %v2244_v20, %v1803_v21  ;;  %v2431_v23 = vpop.f32.mrb[37].mxu1 }
 0x6f9   : > { %v1806_v25 = vpop.f32.mrb[38].mxu1 }
 0x6fa   : > { %v2432_v26 = vpop.f32.mrb[39].mxu1  ;;  %v1811_v27 = vadd.f32 %v1804_v22, %v3418_v3  ;;  %v2626_v3 = vld [vmem:[%s3770_s2] sm:$0xff]   ;;  %s2884_s2 = scalar_lea.vmem %s3655_s20, 128 }
 0x6fb   : > { %2442 = vmatpush3.bf16.msra.mxu0 %v2626_v3  ;;  %p2885_p5 = scmp.ne.s32.totalorder %s3655_s20, %s2884_s2  ;;  %p2892_p9 = scmp.lt.s32.totalorder %s2890_s5, %s2884_s2 }
 0x6fc   : > { %v1812_v24 = vsel %vm738_vm1, %v1811_v27, 0.0  ;;  %2443 = vmatprep.subr.bf16.mxu0 %v2994_v0 }
 0x6fd   : > { %1813 = vadd.xlane.f32.xlu1 %v1812_v24  ;;  %p2886_p1 = pnand %p2885_p5, %p3775_p10  ;;  %p2893_p8 = por %p2892_p9, %p2891_p4 }
 0x6ff   : > { %2444 = vmatpush3.bf16.msra.mxu0 %v2627_v35  ;;  %p2887_p2 = pneg %p2886_p1 }
 0x700   : > { %2445 = vmatprep.subr.bf16.mxu0 %v2994_v0 }
 0x701   : > { %p2894_p3 = pnand %p2893_p8, %p2887_p2 }
 0x703   : > { %2446 = vmatpush3.bf16.msra.mxu0 %v2628_v46 }
 0x704   : > { %2447 = vmatprep.subr.bf16.mxu0 %v2994_v0  ;;  %v2254_v0 = vld [vmem:[%s3772_s1] ss:$0 sm:$0xff]  ;;  %s2010_s1 = scalar_lea.sflag [#allocation4], %s3377_s15 }
 0x707   : > { %2448 = vmatpush3.bf16.msra.mxu0 %v2629_v47 }
 0x78a   : > { %v1814_v28 = vpop.xlane.xlu1 %1813 }
 0x78b   : > { %v1816_v29 = vmul.f32 0.03125, %v1814_v28 }
 0x78d   : > { %v1817_v30 = vsub.f32 %v1811_v27, %v1816_v29 }
 0x78f   : > { %v1818_v31 = vmul.f32 %v1817_v30, %v1817_v30 }
 0x791   : > { %v1819_v32 = vsel %vm738_vm1, %v1818_v31, 0.0 }
 0x792   : > { %1820 = vadd.xlane.f32.xlu0 %v1819_v32 }
 0x81f   : > { %v1821_v36 = vpop.xlane.xlu0 %1820 }
 0x820   : > { %v1822_v37 = vmul.f32 0.03125, %v1821_v36 }
 0x822   : > { %v1823_v38 = vadd.f32 1e-05, %v1822_v37 }
 0x824   : > { %2654 = vrsqrt.f32 %v1823_v38 }
 0x82e   : > { %v2655_v39 = vpop.eup %2654 }
 0x82f   : > { %v1825_v41 = vmul.f32 %v2655_v39, %v1817_v30 }
 0x831   : > { %v1832_v43 = vmul.f32 %v2248_v40, %v1825_v41 }
 0x833   : > { %v1839_v44 = vadd.f32 %v2249_v42, %v1832_v43 }
 0x835   : > { %v1840_v45 = vpack.c.bf16 %v1839_v44, %v1839_v44 }
 0x837   : > { %2438 = vmatmul.mubr.msk.bf16.vlgmr.msra.gmra.mrb[40].mxu1 %vm738_vm1, %v1840_v45 }
 0x90a   : > { %v1901_v49 = vpop.f32.mrb[40].mxu1 }
 0x90b   : > { %v1902_v50 = vadd.f32 %v2250_v48, %v1901_v49  ;;  %v2439_v51 = vpop.f32.mrb[41].mxu1 }
 0x90c   : > { %v1904_v52 = vpop.f32.mrb[42].mxu1 }
 0x90d   : > { %v1907_v53 = vmax.f32 %v1902_v50, 0.0  ;;  %v2440_v54 = vpop.f32.mrb[43].mxu1 }
 0x90f   : > { %v1908_v55 = vpack.c.bf16 %v1907_v53, %v1907_v53 }
 0x911   : > { %2450 = vmatmul.mubr.msk.bf16.vlgmr.msra.gmra.mrb[20].mxu0 %vm1948_vm6, %v1908_v55 }
 0x9e4   : > { %v1986_v56 = vpop.f32.mrb[20].mxu0 }
 0x9e5   : > { %v1987_v57 = vadd.f32 %v2254_v0, %v1986_v56  ;;  %v2451_v58 = vpop.f32.mrb[21].mxu0 }
 0x9e6   : > { %v1989_v59 = vpop.f32.mrb[22].mxu0 }
 0x9e7   : > { %v2452_v60 = vpop.f32.mrb[23].mxu0  ;;  %v1992_v61 = vadd.f32 %v1987_v57, %v1839_v44 }
 0x9e9   : > { %v1993_v62 = vsel %vm738_vm1, %v1992_v61, 0.0 }
 0x9ea   : > { %1994 = vadd.xlane.f32.xlu0 %v1993_v62 }
 0xa77   : > { %v1995_v63 = vpop.xlane.xlu0 %1994 }
 0xa78   : > { %v1996_v1 = vmul.f32 0.03125, %v1995_v63 }
 0xa7a   : > { %v1997_v2 = vsub.f32 %v1992_v61, %v1996_v1 }
 0xa7c   : > { %v1998_v5 = vmul.f32 %v1997_v2, %v1997_v2 }
 0xa7e   : > { %v1999_v6 = vsel %vm738_vm1, %v1998_v5, 0.0 }
 0xa7f   : > { %2000 = vadd.xlane.f32.xlu1 %v1999_v6 }
 0xb0c   : > { %v2001_v4 = vpop.xlane.xlu1 %2000 }
 0xb0d   : > { %v2002_v7 = vmul.f32 0.03125, %v2001_v4 }
 0xb0f   : > { %v2003_v8 = vadd.f32 1e-05, %v2002_v7 }
 0xb11   : > { %2656 = vrsqrt.f32 %v2003_v8 }
 0xb1b   : > { %v2657_v9 = vpop.eup %2656 }
 0xb1c   : > { %v2005_v10 = vmul.f32 %v2657_v9, %v1997_v2 }
 0xb1e   : > { %v2006_v11 = vmul.f32 %v2248_v40, %v2005_v10 }
 0xb20   : > { %v2007_v12 = vadd.f32 %v2249_v42, %v2006_v11 }
 0xb22   : > { %2008 = vst.msk [vmem:[%s698_s13] sm:$0xff] %vm738_vm1, %v2007_v12 }
 0xb23   : > { %2897 = shalt.err (!%p2894_p3)
}
 0xb24   : > { %s2898_s15 = scalar_lea.hbm %s3653_s4, 128  ;;  %s2902_s23 = scalar_lea.hbm %s3774_s9, 256 }
 0xb25   : > { %p2899_p12 = scmp.ne.s32.totalorder %s3653_s4, %s2898_s15  ;;  %p2903_p11 = scmp.lt.u32.totalorder %s3653_s4, %s3774_s9 }
 0xb26   : > { %p2904_p7 = scmp.lt.u32.totalorder %s2902_s23, %s2898_s15  ;;  %p2906_p5 = scmp.lt.u32.totalorder %s2898_s15, %s3653_s4 }
 0xb27   : > { %p2900_p13 = pnand %p2899_p12, %p3775_p10 }
 0xb28   : > { %p2905_p6 = por %p2904_p7, %p2903_p11 }
 0xb29   : > { %p2901_p0 = pneg %p2900_p13 }
 0xb2a   : > { %p2907_p1 = por %p2906_p5, %p2905_p6 }
 0xb2c   : > { %p2908_p2 = pnand %p2907_p1, %p2901_p0 }
 0xb2e   : > { %2911 = shalt.err (!%p2908_p2)
}
 0xb2f   : > { %2499 = dma.vmem_to_hbm [thread:$0]  (%p3775_p10), %s3655_s20, 128, %s3653_s4, %s2010_s1  }
 0xb30 PF: > { %s2036_s5 = sand.u32 1, %s2962_s24   ;;  %p3776_p4 = scmp.ne.s32.totalorder %s3757_s19, 0 }
 0xb31   : > { %p3777_p9 = scmp.ge.s32.totalorder %s2982_s29, 2  ;;  %s2037_s2 = scalar_lea.sflag [#allocation4], %s2036_s5 }
 0xb33   : > { %p2528_p8 = pnand %p3777_p9, %p3776_p4 }
 0xb35   : > { %2957 = dma.done.wait (!%p2528_p8), %s2037_s2, 128  }
 0xb36   : > { %2959 = vsyncadd (!%p2528_p8), %s2037_s2, 4294967168  ;;  %s37_s29 = sadd.s32 1, %s2982_s29   ;;  %s3778_s24 = smov %s2966_s25 }
 0xb37   : > { %p34_p3 = scmp.ge.s32.totalorder %s37_s29, 4   ;;  %s3779_s25 = smov %s2970_s26 }
 0xb38   : > { %s3780_s26 = smov %s3328_s17  ;;  %s3781_s27 = smov %s2978_s28 }
 0xb39   : > { %s3782_s28 = smov %s3784_s0  ;;  %36 = sbr.rel (!%p34_p3) target bundleno = 23 (0x17), region = 167 }
 0xb40   :  { %2042 = vsyncpa [#allocation3], 1 }
 0xb41   :  { %2044 = vsyncpa [#allocation3 + $0x1], 1 }
 0xb42   :  { %2045 = vsyncpa [#allocation6], 1 }
 0xb43   :  { %2046 = vsyncpa [#allocation9], 1 }
 0xb44   :  { %2047 = vsyncpa [#allocation12], 1 }
 0xb45   :  { %2048 = vsyncpa [#allocation15], 1 }
 0xb46   :  { %2049 = vsyncpa [#allocation4], 1 }
 0xb47   :  { %2051 = vsyncpa [#allocation4 + $0x1], 1 }

// kernel: tpu_custom_call.1
= control target key start
LH: loop header
LB: loop body
LE: loop exit
PB: predicated region body
PF: predicated region fallthrough
CT: control target
= control target key end

     0   :  { %s3703_s0 = inlined_call_operand.vmem [shape: f32[2,8,32], index: 0, kind: input, shape index: {}]   ;;  %s3704_s1 = inlined_call_operand.vmem [shape: f32[2,8,32], index: 1, kind: input, shape index: {}]   ;;  %s3705_s2 = inlined_call_operand.hbm [shape: f32[2,1,8], index: 2, kind: input, shape index: {}]   ;;  %s3706_s3 = inlined_call_operand.vmem [shape: bf16[32,32], index: 3, kind: input, shape index: {}]   ;;  %s3707_s4 = inlined_call_operand.vmem [shape: f32[1,32], index: 4, kind: input, shape index: {}]   ;;  %s3708_s5 = inlined_call_operand.hbm [shape: bf16[32,64], index: 5, kind: input, shape index: {}]   ;;  %s3709_s6 = inlined_call_operand.hbm [shape: f32[1,64], index: 6, kind: input, shape index: {}]   ;;  %s3710_s7 = inlined_call_operand.hbm [shape: bf16[8,32], index: 7, kind: input, shape index: {}]   ;;  %s3711_s8 = inlined_call_operand.hbm [shape: bf16[8,32], index: 8, kind: input, shape index: {}]   ;;  %s3712_s9 = inlined_call_operand.vmem [shape: bf16[32,32], index: 9, kind: input, shape index: {}]   ;;  %s3713_s10 = inlined_call_operand.hbm [shape: f32[1,32], index: 10, kind: input, shape index: {}]   ;;  %s3714_s11 = inlined_call_operand.hbm [shape: f32[1,32], index: 11, kind: input, shape index: {}]   ;;  %s3715_s12 = inlined_call_operand.hbm [shape: f32[1,32], index: 12, kind: input, shape index: {}]   ;;  %s3716_s13 = inlined_call_operand.vmem [shape: bf16[32,64], index: 13, kind: input, shape index: {}]   ;;  %s3717_s14 = inlined_call_operand.vmem [shape: f32[1,64], index: 14, kind: input, shape index: {}]   ;;  %s3718_s15 = inlined_call_operand.vmem [shape: bf16[64,32], index: 15, kind: input, shape index: {}]   ;;  %s3719_s16 = inlined_call_operand.vmem [shape: f32[1,32], index: 16, kind: input, shape index: {}]   ;;  %s3720_s17 = inlined_call_operand.hbm [shape: f32[2,8,32], index: 17, kind: output, shape index: {}]  }
   0x1   :  { %3734 = sst [smem:[#allocation24_spill]] %s3703_s0 }
   0x2   :  { %3735 = sst [smem:[#allocation25_spill]] %s3704_s1 }
   0x3   :  { %3736 = sst [smem:[#allocation26_spill]] %s3705_s2 }
   0x4   :  { %3737 = sst [smem:[#allocation27_spill]] %s3706_s3 }
   0x5   :  { %3738 = sst [smem:[#allocation28_spill]] %s3707_s4 }
   0x6   :  { %3739 = sst [smem:[#allocation29_spill]] %s3708_s5 }
   0x7   :  { %3740 = sst [smem:[#allocation30_spill]] %s3712_s9 }
   0x8   :  { %3741 = sst [smem:[#allocation31_spill]] %s3716_s13 }
   0x9   :  { %3742 = sst [smem:[#allocation32_spill]] %s3717_s14 }
   0xa   :  { %3743 = sst [smem:[#allocation33_spill]] %s3718_s15 }
   0xb   :  { %3744 = sst [smem:[#allocation34_spill]] %s3719_s16 }
   0xc   :  { %3745 = sst [smem:[#allocation35_spill]] %s3720_s17 }
   0xd   :  { %22 = vsyncpa [#allocation3], 0 }
   0xe   :  { %24 = vsyncpa [#allocation3 + $0x1], 0 }
   0xf   :  { %25 = vsyncpa [#allocation6], 0 }
  0x10   :  { %26 = vsyncpa [#allocation9], 0 }
  0x11   :  { %27 = vsyncpa [#allocation12], 0 }
  0x12   :  { %28 = vsyncpa [#allocation15], 0 }
  0x13   :  { %29 = vsyncpa [#allocation4], 0 }
  0x14   :  { %31 = vsyncpa [#allocation4 + $0x1], 0  ;;  %s3097_s24 = smov 0   ;;  %s3099_s25 = smov 0  }
  0x15   :  { %s3101_s26 = smov 0   ;;  %s3103_s27 = smov 0  }
  0x16   :  { %s3105_s28 = smov 0   ;;  %s3107_s29 = smov 0  }
  0x17 LB: > { %3746 = sst [smem:[#allocation23_spill]] %s2974_s27  ;;  %s3721_s0 = sadd.s32 4294967295, %s2982_s29   ;;  %s2982_s29 = sphi %s3107_s29, %s37_s29   ;;  %s2978_s28 = sphi %s3105_s28, %s3782_s28   ;;  %s2974_s27 = sphi %s3103_s27, %s3781_s27   ;;  %s2970_s26 = sphi %s3101_s26, %s3780_s26   ;;  %s2966_s25 = sphi %s3099_s25, %s3779_s25   ;;  %s2962_s24 = sphi %s3097_s24, %s3778_s24  }
  0x18   : > { %p2196_p0 = scmp.ge.s32.totalorder %s2982_s29, 1  ;;  %p3131_p1 = scmp.eq.s32.totalorder %s3721_s0, 0 }
  0x19   : > { %p456_p2 = scmp.lt.s32.totalorder %s2982_s29, 3  ;;  %s2984_s19 = smov [#allocation5]  }
  0x1a   : > { %s3747_s30 = scalar_select %p3131_p1, 1, 0 }
  0x1b   : > { %p3136_p3 = pnand %p2196_p0, %p456_p2  ;;  %s474_s1 = sshll.u32 %s2984_s19, 4  ;;  %s3140_s1 = int_to_ptr.vmem [resolvable:$true] %s474_s1 }
  0x1c   : > { %s2985_s21 = smov [#allocation8]   ;;  %s2986_s23 = smov [#allocation11]  }
  0x1d   : > { %s3748_s18 = scalar_select %p3136_p3, 1, 0 }
  0x1e   : > { %p2501_p4 = pneg %p3136_p3  ;;  %s499_s22 = sshll.u32 %s2985_s21, 4  ;;  %s3151_s22 = int_to_ptr.vmem [resolvable:$true] %s499_s22 }
  0x1f   : > { %s3153_s0 = sshll.u32 %s2986_s23, 4  ;;  %s3750_s5 = sld [smem:[#allocation29_spill]]  ;;  %s525_s0 = int_to_ptr.vmem [resolvable:$true] %s3153_s0 }
  0x20   : > { %p3147_p6 = pnand %p2501_p4, %p3131_p1 }
  0x22   : > { %p3163_p8 = pneg %p3147_p6 }
  0x25   : > { %s2658_s16 = scalar_lea.hbm %s3750_s5, 256 }
  0x26   : > { %p2659_p7 = scmp.ne.s32.totalorder %s3750_s5, %s2658_s16  ;;  %p2665_p11 = scmp.lt.u32.totalorder %s2658_s16, %s3750_s5 }
  0x28   : > { %p2661_p9 = pnand %p3163_p8, %p2659_p7 }
  0x2a   : > { %p2662_p10 = pneg %p2661_p9 }
  0x2c   : > { %p2667_p12 = pnand %p2665_p11, %p2662_p10 }
  0x2e   : > { %2670 = shalt.err (!%p2667_p12)
}
  0x2f   : > { %s2671_s14 = scalar_lea.vmem %s3140_s1, 256  ;;  %p2679_p4 = scmp.lt.s32.totalorder %s3140_s1, %s3140_s1 }
  0x30   : > { %p2672_p13 = scmp.ne.s32.totalorder %s3140_s1, %s2671_s14  ;;  %p2680_p5 = scmp.lt.s32.totalorder %s2671_s14, %s2671_s14 }
  0x32   : > { %p2674_p0 = pnand %p2672_p13, %p3163_p8  ;;  %p2681_p7 = por %p2680_p5, %p2679_p4 }
  0x34   : > { %p2675_p2 = pneg %p2674_p0 }
  0x36   : > { %p2682_p9 = pnand %p2681_p7, %p2675_p2 }
  0x38   : > { %2685 = shalt.err (!%p2682_p9)
}
  0x39   : > { %s2987_s15 = smov 64   ;;  %s2988_s16 = smov 4  }
  0x3a   : > { %2504 = dma.hbm_to_vmem [thread:$0]  (!%p3147_p6), %s3750_s5, 256, %s3140_s1, [#allocation6], %s2987_s15, %s2987_s15, %s2988_s16  }
  0x3b   : > { %s2686_s9 = scalar_lea.hbm %s3710_s7, 64 }
  0x3c   : > { %p2687_p5 = scmp.ne.s32.totalorder %s3710_s7, %s2686_s9  ;;  %p2693_p12 = scmp.lt.u32.totalorder %s2686_s9, %s3710_s7 }
  0x3e   : > { %p2689_p10 = pnand %p2687_p5, %p3163_p8 }
  0x40   : > { %p2690_p11 = pneg %p2689_p10 }
  0x42   : > { %p2695_p13 = pnand %p2693_p12, %p2690_p11 }
  0x44   : > { %2698 = shalt.err (!%p2695_p13)
}
  0x45   : > { %s2699_s1 = scalar_lea.vmem %s3151_s22, 64  ;;  %p2707_p7 = scmp.lt.s32.totalorder %s3151_s22, %s3151_s22 }
  0x46   : > { %p2700_p0 = scmp.ne.s32.totalorder %s3151_s22, %s2699_s1  ;;  %p2708_p9 = scmp.lt.s32.totalorder %s2699_s1, %s2699_s1 }
  0x48   : > { %p2702_p2 = pnand %p2700_p0, %p3163_p8  ;;  %p2709_p5 = por %p2708_p9, %p2707_p7 }
  0x4a   : > { %p2703_p4 = pneg %p2702_p2 }
  0x4c   : > { %p2710_p10 = pnand %p2709_p5, %p2703_p4 }
  0x4e   : > { %2713 = shalt.err (!%p2710_p10)
}
  0x4f   : > { %2510 = dma.hbm_to_vmem [thread:$0]  (!%p3147_p6), %s3710_s7, 64, %s3151_s22, [#allocation9]  }
  0x50   : > { %s2714_s15 = scalar_lea.hbm %s3713_s10, 16 }
  0x51   : > { %p2715_p11 = scmp.ne.s32.totalorder %s3713_s10, %s2714_s15  ;;  %p2721_p0 = scmp.lt.u32.totalorder %s2714_s15, %s3713_s10 }
  0x53   : > { %p2717_p12 = pnand %p2715_p11, %p3163_p8 }
  0x55   : > { %p2718_p13 = pneg %p2717_p12 }
  0x57   : > { %p2723_p2 = pnand %p2721_p0, %p2718_p13 }
  0x59   : > { %2726 = shalt.err (!%p2723_p2)
}
  0x5a   : > { %s2727_s23 = scalar_lea.vmem %s525_s0, 16  ;;  %s2734_s22 = scalar_lea.vmem %s525_s0, 32 }
  0x5b   : > { %p2728_p4 = scmp.ne.s32.totalorder %s525_s0, %s2727_s23  ;;  %p2735_p5 = scmp.lt.s32.totalorder %s525_s0, %s525_s0 }
  0x5c   : > { %p2736_p10 = scmp.lt.s32.totalorder %s2734_s22, %s2727_s23 }
  0x5d   : > { %p2730_p7 = pnand %p2728_p4, %p3163_p8 }
  0x5e   : > { %p2737_p3 = por %p2736_p10, %p2735_p5 }
  0x5f   : > { %p2731_p9 = pneg %p2730_p7 }
  0x61   : > { %p2738_p1 = pnand %p2737_p3, %p2731_p9 }
  0x63   : > { %2741 = shalt.err (!%p2738_p1)
}
  0x64   : > { %2516 = dma.hbm_to_vmem [thread:$0]  (!%p3147_p6), %s3713_s10, 16, %s525_s0, [#allocation12]  }
  0x65   : > { %s2989_s3 = smov [#allocation7]   ;;  %s2990_s9 = smov [#allocation10]  }
  0x66   : > { %s488_s4 = sshll.u32 %s2989_s3, 4  ;;  %s510_s27 = sshll.u32 %s2990_s9, 4  ;;  %s489_s4 = int_to_ptr.vmem [resolvable:$true] %s488_s4  ;;  %s511_s27 = int_to_ptr.vmem [resolvable:$true] %s510_s27 }
  0x67   : > { %s2742_s17 = scalar_lea.hbm %s3709_s6, 16 }
  0x68   : > { %p2743_p1 = scmp.ne.s32.totalorder %s3709_s6, %s2742_s17  ;;  %p2749_p12 = scmp.lt.u32.totalorder %s2742_s17, %s3709_s6 }
  0x6a   : > { %p2745_p3 = pnand %p2743_p1, %p3163_p8 }
  0x6c   : > { %p2746_p11 = pneg %p2745_p3 }
  0x6e   : > { %p2751_p13 = pnand %p2749_p12, %p2746_p11 }
  0x70   : > { %2754 = shalt.err (!%p2751_p13)
}
  0x71   : > { %s2755_s0 = scalar_lea.vmem %s489_s4, 16  ;;  %s2762_s14 = scalar_lea.vmem %s489_s4, 32 }
  0x72   : > { %p2756_p0 = scmp.ne.s32.totalorder %s489_s4, %s2755_s0  ;;  %p2763_p7 = scmp.lt.s32.totalorder %s489_s4, %s489_s4 }
  0x73   : > { %p2764_p9 = scmp.lt.s32.totalorder %s2762_s14, %s2755_s0 }
  0x74   : > { %p2758_p2 = pnand %p2756_p0, %p3163_p8 }
  0x75   : > { %p2765_p5 = por %p2764_p9, %p2763_p7 }
  0x76   : > { %p2759_p4 = pneg %p2758_p2 }
  0x78   : > { %p2766_p10 = pnand %p2765_p5, %p2759_p4 }
  0x7a   : > { %2769 = shalt.err (!%p2766_p10)
}
  0x7b   : > { %2507 = dma.hbm_to_vmem [thread:$0]  (!%p3147_p6), %s3709_s6, 16, %s489_s4, [#allocation6]  }
  0x7c   : > { %s2770_s16 = scalar_lea.hbm %s3711_s8, 64 }
  0x7d   : > { %p2771_p1 = scmp.ne.s32.totalorder %s3711_s8, %s2770_s16  ;;  %p2777_p12 = scmp.lt.u32.totalorder %s2770_s16, %s3711_s8 }
  0x7f   : > { %p2773_p3 = pnand %p2771_p1, %p3163_p8 }
  0x81   : > { %p2774_p11 = pneg %p2773_p3 }
  0x83   : > { %p2779_p13 = pnand %p2777_p12, %p2774_p11 }
  0x85   : > { %2782 = shalt.err (!%p2779_p13)
}
  0x86   : > { %s2783_s22 = scalar_lea.vmem %s511_s27, 64  ;;  %p2791_p7 = scmp.lt.s32.totalorder %s511_s27, %s511_s27 }
  0x87   : > { %p2784_p0 = scmp.ne.s32.totalorder %s511_s27, %s2783_s22  ;;  %p2792_p9 = scmp.lt.s32.totalorder %s2783_s22, %s2783_s22 }
  0x89   : > { %p2786_p2 = pnand %p2784_p0, %p3163_p8  ;;  %p2793_p5 = por %p2792_p9, %p2791_p7 }
  0x8b   : > { %p2787_p4 = pneg %p2786_p2 }
  0x8d   : > { %p2794_p10 = pnand %p2793_p5, %p2787_p4 }
  0x8f   : > { %2797 = shalt.err (!%p2794_p10)
}
  0x90   : > { %2513 = dma.hbm_to_vmem [thread:$0]  (!%p3147_p6), %s3711_s8, 64, %s511_s27, [#allocation9]  }
  0x91   : > { %s2991_s14 = smov [#allocation13]   ;;  %s2992_s3 = smov [#allocation14]  }
  0x92   : > { %s535_s1 = sshll.u32 %s2991_s14, 4  ;;  %s546_s9 = sshll.u32 %s2992_s3, 4  ;;  %s536_s1 = int_to_ptr.vmem [resolvable:$true] %s535_s1  ;;  %s547_s9 = int_to_ptr.vmem [resolvable:$true] %s546_s9 }
  0x93   : > { %s2798_s17 = scalar_lea.hbm %s3714_s11, 16 }
  0x94   : > { %p2799_p1 = scmp.ne.s32.totalorder %s3714_s11, %s2798_s17  ;;  %p2805_p12 = scmp.lt.u32.totalorder %s2798_s17, %s3714_s11 }
  0x96   : > { %p2801_p3 = pnand %p2799_p1, %p3163_p8 }
  0x98   : > { %p2802_p11 = pneg %p2801_p3 }
  0x9a   : > { %p2807_p13 = pnand %p2805_p12, %p2802_p11 }
  0x9c   : > { %2810 = shalt.err (!%p2807_p13)
}
  0x9d   : > { %s2811_s27 = scalar_lea.vmem %s536_s1, 16  ;;  %s2818_s4 = scalar_lea.vmem %s536_s1, 32 }
  0x9e   : > { %p2812_p0 = scmp.ne.s32.totalorder %s536_s1, %s2811_s27  ;;  %p2819_p7 = scmp.lt.s32.totalorder %s536_s1, %s536_s1 }
  0x9f   : > { %p2820_p9 = scmp.lt.s32.totalorder %s2818_s4, %s2811_s27 }
  0xa0   : > { %p2814_p2 = pnand %p2812_p0, %p3163_p8 }
  0xa1   : > { %p2821_p5 = por %p2820_p9, %p2819_p7 }
  0xa2   : > { %p2815_p4 = pneg %p2814_p2 }
  0xa4   : > { %p2822_p10 = pnand %p2821_p5, %p2815_p4 }
  0xa6   : > { %2825 = shalt.err (!%p2822_p10)
}
  0xa7   : > { %2519 = dma.hbm_to_vmem [thread:$0]  (!%p3147_p6), %s3714_s11, 16, %s536_s1, [#allocation12]  }
  0xa8   : > { %s2826_s16 = scalar_lea.hbm %s3715_s12, 16 }
  0xa9   : > { %p2827_p1 = scmp.ne.s32.totalorder %s3715_s12, %s2826_s16  ;;  %p2833_p12 = scmp.lt.u32.totalorder %s2826_s16, %s3715_s12 }
  0xab   : > { %p2829_p3 = pnand %p2827_p1, %p3163_p8 }
  0xad   : > { %p2830_p11 = pneg %p2829_p3 }
  0xaf   : > { %p2835_p13 = pnand %p2833_p12, %p2830_p11 }
  0xb1   : > { %2838 = shalt.err (!%p2835_p13)
}
  0xb2   : > { %s2839_s22 = scalar_lea.vmem %s547_s9, 16  ;;  %s2846_s1 = scalar_lea.vmem %s547_s9, 32 }
  0xb3   : > { %p2840_p0 = scmp.ne.s32.totalorder %s547_s9, %s2839_s22  ;;  %p2847_p7 = scmp.lt.s32.totalorder %s547_s9, %s547_s9 }
  0xb4   : > { %p2848_p9 = scmp.lt.s32.totalorder %s2846_s1, %s2839_s22 }
  0xb5   : > { %p2842_p2 = pnand %p2840_p0, %p3163_p8 }
  0xb6   : > { %p2849_p5 = por %p2848_p9, %p2847_p7 }
  0xb7   : > { %p2843_p4 = pneg %p2842_p2 }
  0xb9   : > { %p2850_p10 = pnand %p2849_p5, %p2843_p4 }
  0xbb   : > { %2853 = shalt.err (!%p2850_p10)
}
  0xbc   : > { %2522 = dma.hbm_to_vmem [thread:$0]  (!%p3147_p6), %s3715_s12, 16, %s547_s9, [#allocation15]  }
  0xbd   : > { %s2195_s13 = sadd.s32 4294967294, %s2982_s29   ;;  %s49_s0 = sadd.s32 1, %s2978_s28 }
  0xbe   : > { %s110_s20 = sadd.s32 1, %s2970_s26  ;;  %p51_p8 = scmp.ge.s32.totalorder %s49_s0, 2 }
  0xbf   : > { %p117_p1 = scmp.ne.s32.totalorder %s2970_s26, %s2966_s25  ;;  %p118_p3 = scmp.eq.s32.totalorder %s2982_s29, 0 }
  0xc0   : > { %p123_p11 = scmp.ne.s32.totalorder %s2966_s25, %s2962_s24  ;;  %s3784_s0 = smov (%p51_p8, %s49_s0), 0 }
  0xc1   : > { %p3308_p12 = por %p118_p3, %p117_p1  ;;  %p3753_p13 = scmp.ne.s32.totalorder %s3747_s30, 0 }
  0xc2   : > { %s107_s3 = ssub.s32 %s2978_s28, %s3784_s0  ;;  %s3755_s15 = sadd.s32 4294967295, %s2982_s29  }
  0xc3   : > { %p3314_p6 = por %p3753_p13, %p123_p11  ;;  %p443_p0 = scmp.eq.s32.totalorder %s3755_s15, 1 }
  0xc4   : > { %p108_p2 = scmp.eq.s32.totalorder %s107_s3, 0  ;;  %p449_p4 = scmp.eq.s32.totalorder %s2195_s13, 1 }
  0xc5   : > { %p3322_p7 = por %p443_p0, %p117_p1  ;;  %p2538_p9 = scmp.lt.s32.totalorder %s2982_s29, 2 }
  0xc6   : > { %s3328_s17 = scalar_select %p108_p2, %s2970_s26, %s110_s20  }
  0xc7   : > { %s3756_s16 = scalar_select %p3322_p7, 1, 0 }
  0xc8   : > { %p3330_p5 = por %p449_p4, %p123_p11  ;;  %s586_s21 = sand.u32 1, %s2970_s26  }
  0xc9   : > { %s2205_s23 = sshll.u32 %s2978_s28, 4  ;;  %s589_s22 = scalar_lea.vmem [#allocation2], %s586_s21 }
  0xca   : > { %s3757_s19 = scalar_select %p3330_p5, 1, 0 }
  0xcb   : > { %s596_s1 = sshll.u32 %s589_s22, 4  ;;  %s3758_s2 = sld [smem:[#allocation26_spill]]  ;;  %s3341_s1 = int_to_ptr.vmem [resolvable:$true] %s596_s1 }
  0xcc   : > { %p3345_p10 = pnand %p2538_p9, %p3308_p12  ;;  %s587_s20 = scalar_lea.sflag [#allocation3], %s586_s21 }
  0xce   : > { %p2856_p1 = pneg %p3345_p10 }
  0xd1   : > { %s3339_s3 = scalar_lea.hbm %s3758_s2, %s2205_s23  ;;  %s2859_s27 = scalar_lea.hbm %s3758_s2, 32 }
  0xd2   : > { %s2854_s15 = scalar_lea.hbm %s3339_s3, 16  ;;  %p2860_p12 = scmp.lt.u32.totalorder %s3339_s3, %s3758_s2 }
  0xd3   : > { %p2855_p8 = scmp.ne.s32.totalorder %s3339_s3, %s2854_s15  ;;  %p2861_p13 = scmp.lt.u32.totalorder %s2859_s27, %s2854_s15 }
  0xd4   : > { %p2863_p2 = scmp.lt.u32.totalorder %s2854_s15, %s3339_s3 }
  0xd5   : > { %p2857_p3 = pnand %p2856_p1, %p2855_p8  ;;  %p2862_p0 = por %p2861_p13, %p2860_p12 }
  0xd7   : > { %p2858_p11 = pneg %p2857_p3  ;;  %p2864_p4 = por %p2863_p2, %p2862_p0 }
  0xd9   : > { %p2865_p9 = pnand %p2864_p4, %p2858_p11 }
  0xdb   : > { %2868 = shalt.err (!%p2865_p9)
}
  0xdc   : > { %s2869_s21 = scalar_lea.vmem %s3341_s1, 16  ;;  %s2993_s23 = smov [#allocation2]  }
  0xdd   : > { %p2870_p8 = scmp.ne.s32.totalorder %s3341_s1, %s2869_s21  ;;  %s2874_s22 = sshll.u32 %s2993_s23, 4  ;;  %s2875_s22 = int_to_ptr.vmem [resolvable:$false] %s2874_s22 }
  0xde   : > { %s2876_s14 = scalar_lea.vmem %s2875_s22, 32  ;;  %p2877_p7 = scmp.lt.s32.totalorder %s3341_s1, %s2875_s22 }
  0xdf   : > { %p2872_p3 = pnand %p2870_p8, %p2856_p1  ;;  %p2878_p12 = scmp.lt.s32.totalorder %s2876_s14, %s2869_s21 }
  0xe1   : > { %p2873_p5 = pneg %p2872_p3  ;;  %p2879_p13 = por %p2878_p12, %p2877_p7 }
  0xe3   : > { %p2880_p0 = pnand %p2879_p13, %p2873_p5 }
  0xe5   : > { %2883 = shalt.err (!%p2880_p0)
}
  0xe6   : > { %2526 = dma.hbm_to_vmem [thread:$0]  (!%p3345_p10), %s3339_s3, 16, %s3341_s1, %s587_s20  }
  0xe7   : > { %p3760_p11 = scmp.ne.s32.totalorder %s3748_s18, 0 }
  0xe8   : > { %s3377_s15 = sand.u32 (!%p3760_p11), 1, %s2966_s25  }
  0xe9   : > { %605 = sbr.rel (%p3760_p11) target bundleno = 2864 (0xb30), region = 88  ;;  %s608_s27 = scalar_lea.sflag (!%p3760_p11), [#allocation3], %s3377_s15 }
  0xf0   : > { %2937 = dma.done.wait (%p3314_p6), %s608_s27, 16  }
  0xf1   : > { %2939 = vsyncadd (%p3314_p6), %s608_s27, 4294967280  ;;  %p3761_p7 = scmp.ne.s32.totalorder %s3747_s30, 0 }
  0xf3   : > { %2941 = dma.done.wait (%p3761_p7), [#allocation6], 272  }
  0xf4   : > { %2943 = vsyncadd (%p3761_p7), [#allocation6], 4294967024 }
  0xf5   : > { %2945 = dma.done.wait (%p3761_p7), [#allocation9], 128  }
  0xf6   : > { %2947 = vsyncadd (%p3761_p7), [#allocation9], 4294967168 }
  0xf7   : > { %2949 = dma.done.wait (%p3761_p7), [#allocation12], 32  }
  0xf8   : > { %2951 = vsyncadd (%p3761_p7), [#allocation12], 4294967264 }
  0xf9   : > { %2953 = dma.done.wait (%p3761_p7), [#allocation15], 16  }
  0xfa   : > { %2955 = vsyncadd (%p3761_p7), [#allocation15], 4294967280  ;;  %s3762_s18 = sld [smem:[#allocation23_spill]]  ;;  %v2994_v0 = vmov 0.0   ;;  %vm2995_vm0 = vmmov 0   ;;  %s3763_s13 = sld [smem:[#allocation24_spill]] }
  0xfb   : > { %2313 = vmatprep.subr.bf16.mxu1 %v2994_v0  ;;  %2317 = vmatprep.mubr.msk.bf16.mxu1 %vm2995_vm0, %v2994_v0  ;;  %s3764_s22 = sld [smem:[#allocation27_spill]]  ;;  %vm738_vm1 = vcmask 261120   ;;  %v2618_v5 = vld [vmem:[#allocation5] sm:$0xff]   ;;  %v2619_v6 = vld [vmem:[#allocation5 + $0x8] sm:$0xff]   ;;  %v851_v9 = vld [vmem:[#allocation8] sm:$0xf] }
  0xfc   : > { %2329 = vmatprep.subr.bf16.mxu0 %v2994_v0  ;;  %2331 = vmatprep.mubr.msk.bf16.mxu0 %vm2995_vm0, %v2994_v0  ;;  %vm859_vm2 = vcmask 64512   ;;  %v2231_v11 = vcombine.low %v851_v9, %v851_v9  ;;  %s2996_s2 = smov 120   ;;  %v2221_v19 = vld [vmem:[#allocation7] ss:$0 sm:$0xff]  ;;  %s2997_s3 = smov 112   ;;  %vm977_vm3 = vcmask 1043456  }
  0xfd   : > { %v907_v10 = vsel %vm859_vm2, %v851_v9, 0  ;;  %s2998_s30 = smov 104   ;;  %s3000_s21 = smov 88   ;;  %vm1738_vm4 = vcmask 130048   ;;  %vm1740_vm5 = vcmask 195584   ;;  %vm1948_vm6 = vcmask 523264  }
  0xfe   : > { %1124 = vrot.lane.b32.xlu1 %v2231_v11, %s2996_s2  ;;  %s3001_s23 = smov 80   ;;  %s3002_s14 = smov 72  }
  0xff   : > { %s3003_s27 = smov 8   ;;  %s3004_s4 = smov 16  }
 0x100   : > { %p699_p6 = scmp.lt.s32.totalorder %s3762_s18, 1  ;;  %p3775_p10 = scmp.ne.s32.totalorder %s3756_s16, 0 }
 0x101   : > { %v2616_v1 = vld [vmem:[%s3764_s22] sm:$0xff]   ;;  %v2617_v2 = vld [vmem:[%s3764_s22 + $0x8] sm:$0xff]  }
 0x102   : > { %s700_s9 = scalar_select %p699_p6, %s3762_s18, 1  ;;  %2314 = vmatpush3.bf16.msra.mxu1 %v2616_v1 }
 0x103   : > { %2315 = vmatprep.subr.bf16.mxu1 %v2994_v0 }
 0x104   : > { %s2215_s1 = sshll.u32 %s700_s9, 3  ;;  %s3765_s9 = sld [smem:[#allocation25_spill]] }
 0x105   : > { %s705_s20 = scalar_lea.vmem %s3763_s13, %s2215_s1  ;;  %s3767_s13 = scalar_lea.vmem [#allocation2], %s3377_s15 }
 0x106   : > { %v3418_v3 = vld [vmem:[%s705_s20] sm:$0xff]  ;;  %2316 = vmatpush3.bf16.msra.mxu1 %v2617_v2  ;;  %s2999_s20 = smov 96  }
 0x107   : > { %v713_v4 = vpack.c.bf16 %v3418_v3, %v3418_v3  ;;  %2321 = vmatprep.subr.bf16.mxu1 %v2994_v0  ;;  %v2225_v47 = vld [vmem:[%s3767_s13] ss:$0 sm:$0xff] }
 0x109   : > { %2318 = vmatmul.mubr.msk.bf16.vlgmr.msra.gmra.mrb[0].mxu1 %vm738_vm1, %v713_v4 }
 0x10a   : > { %s709_s5 = scalar_lea.vmem %s3765_s9, %s2215_s1  ;;  %2322 = vmatpush3.bf16.msra.mxu1 %v2618_v5  ;;  %2325 = vmatprep.mubr.msk.bf16.mxu1 %vm2995_vm0, %v2994_v0  ;;  %s3766_s1 = sld [smem:[#allocation28_spill]] }
 0x10b   : > { %v712_v7 = vld [vmem:[%s709_s5] sm:$0xff]  ;;  %2323 = vmatprep.subr.bf16.mxu1 %v2994_v0  ;;  %s3768_s5 = sld [smem:[#allocation30_spill]] }
 0x10c   : > { %v714_v8 = vpack.c.bf16 %v712_v7, %v712_v7 }
 0x10e   : > { %2324 = vmatpush3.bf16.msra.mxu1 %v2619_v6 }
 0x10f   : > { %2335 = vmatprep.subr.bf16.mxu1 %v2994_v0 }
 0x110   : > { %v2217_v12 = vld [vmem:[%s3766_s1] ss:$0 sm:$0xff]  ;;  %s3772_s1 = sld [smem:[#allocation34_spill]] }
 0x111   : > { %2326 = vmatmul.mubr.msk.bf16.vlgmr.msra.gmra.mrb[4].mxu1 %vm738_vm1, %v714_v8 }
 0x112   : > { %2337 = vmatprep.mubr.msk.bf16.mxu1 %vm2995_vm0, %v2994_v0 }
 0x117   : > { %2336 = vmatpush3.bf16.xpose.msra.mxu1 %v907_v10 }
 0x118   : > { %2353 = vmatprep.subr.bf16.mxu1 %v2994_v0 }
 0x170   : > { %v1125_v29 = vpop.permute.xlu1 %1124 }
 0x171   : > { %v1127_v30 = vsel %vm859_vm2, %v1125_v29, 0 }
 0x1dc   : > { %v776_v13 = vpop.f32.mrb[0].mxu1 }
 0x1dd   : > { %v777_v14 = vadd.f32 %v2217_v12, %v776_v13  ;;  %v2319_v15 = vpop.f32.mrb[1].mxu1 }
 0x1de   : > { %v779_v16 = vpop.f32.mrb[2].mxu1 }
 0x1df   : > { %v848_v17 = vpack.c.bf16 %v777_v14, %v777_v14  ;;  %v2320_v18 = vpop.f32.mrb[3].mxu1 }
 0x1e1   : > { %2338 = vmatmul.mubr.msk.bf16.vlgmr.msra.gmra.mrb[8].mxu1 %vm859_vm2, %v848_v17 }
 0x1e2   : > { %2355 = vmatprep.mubr.msk.bf16.mxu1 %vm2995_vm0, %v2994_v0 }
 0x1e4   : > { %v842_v20 = vpop.f32.mrb[4].mxu1 }
 0x1e5   : > { %v843_v21 = vadd.f32 %v2221_v19, %v842_v20  ;;  %v2327_v22 = vpop.f32.mrb[5].mxu1 }
 0x1e6   : > { %v845_v23 = vpop.f32.mrb[6].mxu1 }
 0x1e7   : > { %v3444_v24 = vpack.c.bf16 %v843_v21, %v843_v21  ;;  %v2328_v25 = vpop.f32.mrb[7].mxu1 }
 0x1e9   : > { %1295 = vrot.lane.b32.xlu1 %v3444_v24, %s2997_s3  ;;  %1073 = vrot.lane.b32.xlu0 %v3444_v24, %s2996_s2  ;;  %v864_v26 = vsel %vm859_vm2, %v3444_v24, 0 }
 0x1ea   : > { %2330 = vmatpush3.bf16.xpose.msra.mxu0 %v864_v26 }
 0x1eb   : > { %2341 = vmatprep.subr.bf16.mxu0 %v2994_v0 }
 0x1ed   : > { %1343 = vrot.lane.b32.xlu1 %v2231_v11, %s2997_s3  ;;  %1071 = vrot.lane.b32.xlu0 %v848_v17, %s2996_s2 }
 0x1f1   : > { %1509 = vrot.lane.b32.xlu1 %v848_v17, %s2998_s30  ;;  %1293 = vrot.lane.b32.xlu0 %v848_v17, %s2997_s3 }
 0x1f2   : > { %2332 = vmatmul.mubr.msk.bf16.vlgmr.msra.gmra.mrb[0].mxu0 %vm859_vm2, %v848_v17 }
 0x1f3   : > { %2343 = vmatprep.mubr.msk.bf16.mxu0 %vm2995_vm0, %v2994_v0 }
 0x1f5   : > { %1511 = vrot.lane.b32.xlu0 %v3444_v24, %s2998_s30 }
 0x1f9   : > { %1559 = vrot.lane.b32.xlu0 %v2231_v11, %s2998_s30 }
 0x25b   : > { %v1074_v27 = vpop.permute.xlu0 %1073  ;;  %v1296_v32 = vpop.permute.xlu1 %1295 }
 0x25c   : > { %v1079_v28 = vsel %vm859_vm2, %v1074_v27, 0  ;;  %v1301_v33 = vsel %vm859_vm2, %v1296_v32, 0 }
 0x25d   : > { %2354 = vmatpush3.bf16.xpose.msra.mxu1 %v1079_v28 }
 0x25e   : > { %2359 = vmatprep.subr.bf16.mxu1 %v2994_v0 }
 0x25f   : > { %v1072_v31 = vpop.permute.xlu0 %1071  ;;  %v1344_v34 = vpop.permute.xlu1 %1343 }
 0x260   : > { %v1346_v35 = vsel %vm859_vm2, %v1344_v34, 0 }
 0x263   : > { %v1294_v36 = vpop.permute.xlu0 %1293  ;;  %v1510_v41 = vpop.permute.xlu1 %1509 }
 0x264   : > { %2356 = vmatmul.mubr.msk.bf16.vlgmr.msra.gmra.mrb[12].mxu1 %vm859_vm2, %v1072_v31 }
 0x265   : > { %2360 = vmatpush3.bf16.xpose.msra.mxu1 %v1127_v30  ;;  %2361 = vmatprep.mubr.msk.bf16.mxu1 %vm2995_vm0, %v2994_v0 }
 0x266   : > { %2377 = vmatprep.subr.bf16.mxu1 %v2994_v0 }
 0x267   : > { %v1512_v37 = vpop.permute.xlu0 %1511 }
 0x268   : > { %v1517_v38 = vsel %vm859_vm2, %v1512_v37, 0  ;;  %v852_v37 = vld [vmem:[#allocation10] sm:$0xf] }
 0x26b   : > { %v1560_v39 = vpop.permute.xlu0 %1559 }
 0x26c   : > { %2362 = vmatmul.mubr.msk.bf16.vlgmr.msra.gmra.mrb[16].mxu1 %vm859_vm2, %v1072_v31  ;;  %v1562_v40 = vsel %vm859_vm2, %v1560_v39, 0 }
 0x26d   : > { %2378 = vmatpush3.bf16.xpose.msra.mxu1 %v1301_v33  ;;  %2379 = vmatprep.mubr.msk.bf16.mxu1 %vm2995_vm0, %v2994_v0 }
 0x26e   : > { %2383 = vmatprep.subr.bf16.mxu1 %v2994_v0 }
 0x274   : > { %2380 = vmatmul.mubr.msk.bf16.vlgmr.msra.gmra.mrb[20].mxu1 %vm859_vm2, %v1294_v36 }
 0x275   : > { %2384 = vmatpush3.bf16.xpose.msra.mxu1 %v1346_v35  ;;  %2385 = vmatprep.mubr.msk.bf16.mxu1 %vm2995_vm0, %v2994_v0 }
 0x276   : > { %2401 = vmatprep.subr.bf16.mxu1 %v2994_v0 }
 0x27c   : > { %2386 = vmatmul.mubr.msk.bf16.vlgmr.msra.gmra.mrb[24].mxu1 %vm859_vm2, %v1294_v36 }
 0x27d   : > { %2402 = vmatpush3.bf16.xpose.msra.mxu1 %v1517_v38  ;;  %2403 = vmatprep.mubr.msk.bf16.mxu1 %vm2995_vm0, %v2994_v0  ;;  %v979_v38 = vsel %vm977_vm3, %v852_v37, 0 }
 0x27e   : > { %2407 = vmatprep.subr.bf16.mxu1 %v2994_v0  ;;  %2342 = vmatpush3.bf16.msra.mxu0 %v979_v38 }
 0x27f   : > { %2347 = vmatprep.subr.bf16.mxu0 %v2994_v0 }
 0x284   : > { %2404 = vmatmul.mubr.msk.bf16.vlgmr.msra.gmra.mrb[28].mxu1 %vm859_vm2, %v1510_v41 }
 0x285   : > { %2408 = vmatpush3.bf16.xpose.msra.mxu1 %v1562_v40  ;;  %2409 = vmatprep.mubr.msk.bf16.mxu1 %vm2995_vm0, %v2994_v0 }
 0x286   : > { %2425 = vmatprep.subr.bf16.mxu1 %v2994_v0 }
 0x28c   : > { %2410 = vmatmul.mubr.msk.bf16.vlgmr.msra.gmra.mrb[32].mxu1 %vm859_vm2, %v1510_v41 }
 0x28d   : > { %2429 = vmatprep.mubr.msk.bf16.mxu1 %vm2995_vm0, %v2994_v0 }
 0x2b4   : > { %v943_v42 = vpop.f32.mrb[8].mxu1 }
 0x2b5   : > { %v2339_v43 = vpop.f32.mrb[9].mxu1  ;;  %v952_v44 = vsel %vm859_vm2, %v943_v42, -inf }
 0x2b6   : > { %953 = vmax.xlane.f32.xlu0 %v952_v44  ;;  %v946_v45 = vpop.f32.mrb[10].mxu1 }
 0x2b7   : > { %v2340_v46 = vpop.f32.mrb[11].mxu1 }
 0x2c5   : > { %v900_v48 = vpop.f32.mrb[0].mxu0 }
 0x2c6   : > { %v901_v49 = vadd.f32 %v2225_v47, %v900_v48  ;;  %v2333_v50 = vpop.f32.mrb[1].mxu0 }
 0x2c7   : > { %v903_v51 = vpop.f32.mrb[2].mxu0  ;;  %v2233_v50 = vcombine.low %v852_v37, %v852_v37 }
 0x2c8   : > { %v2334_v52 = vpop.f32.mrb[3].mxu0  ;;  %v949_v53 = vsel %vm859_vm2, %v901_v49, -inf }
 0x2c9   : > { %950 = vmax.xlane.f32.xlu1 %v949_v53 }
 0x337   : > { %v1115_v54 = vpop.f32.mrb[12].mxu1 }
 0x338   : > { %v3497_v55 = vadd.f32 %v2225_v47, %v1115_v54  ;;  %v2357_v56 = vpop.f32.mrb[13].mxu1 }
 0x339   : > { %v1118_v57 = vpop.f32.mrb[14].mxu1 }
 0x33a   : > { %v2358_v58 = vpop.f32.mrb[15].mxu1  ;;  %v1169_v59 = vsel %vm859_vm2, %v3497_v55, -inf }
 0x33b   : > { %1170 = vmax.xlane.f32.xlu0 %v1169_v59 }
 0x33f   : > { %v1163_v60 = vpop.f32.mrb[16].mxu1 }
 0x340   : > { %v2363_v61 = vpop.f32.mrb[17].mxu1  ;;  %v1172_v62 = vsel %vm859_vm2, %v1163_v60, -inf }
 0x341   : > { %1173 = vmax.xlane.f32.xlu1 %v1172_v62  ;;  %v1166_v63 = vpop.f32.mrb[18].mxu1 }
 0x342   : > { %v2364_v1 = vpop.f32.mrb[19].mxu1 }
 0x343   : > { %v954_v14 = vpop.xlane.xlu0 %953 }
 0x347   : > { %v1337_v2 = vpop.f32.mrb[20].mxu1 }
 0x348   : > { %v3502_v4 = vadd.f32 %v2225_v47, %v1337_v2  ;;  %v2381_v5 = vpop.f32.mrb[21].mxu1 }
 0x349   : > { %v1340_v6 = vpop.f32.mrb[22].mxu1 }
 0x34a   : > { %v2382_v7 = vpop.f32.mrb[23].mxu1  ;;  %v1388_v8 = vsel %vm859_vm2, %v3502_v4, -inf }
 0x34b   : > { %1389 = vmax.xlane.f32.xlu0 %v1388_v8 }
 0x34f   : > { %v3506_v9 = vpop.f32.mrb[24].mxu1 }
 0x350   : > { %v2387_v10 = vpop.f32.mrb[25].mxu1  ;;  %v1391_v11 = vsel %vm859_vm2, %v3506_v9, -inf }
 0x351   : > { %1392 = vmax.xlane.f32.xlu1 %v1391_v11  ;;  %v1385_v12 = vpop.f32.mrb[26].mxu1 }
 0x352   : > { %v2388_v13 = vpop.f32.mrb[27].mxu1 }
 0x356   : > { %v951_v15 = vpop.xlane.xlu1 %950 }
 0x357   : > { %v955_v16 = vmax.f32 %v951_v15, %v954_v14  ;;  %v1553_v17 = vpop.f32.mrb[28].mxu1 }
 0x358   : > { %v1554_v18 = vadd.f32 %v2225_v47, %v1553_v17  ;;  %v2405_v19 = vpop.f32.mrb[29].mxu1 }
 0x359   : > { %v959_v20 = vsub.f32 %v943_v42, %v955_v16  ;;  %v1556_v21 = vpop.f32.mrb[30].mxu1  ;;  %v956_v33 = vsub.f32 %v901_v49, %v955_v16 }
 0x35a   : > { %v2406_v22 = vpop.f32.mrb[31].mxu1  ;;  %v1604_v23 = vsel %vm859_vm2, %v1554_v18, -inf }
 0x35b   : > { %v960_v25 = vmul.f32 1.442695, %v959_v20  ;;  %1605 = vmax.xlane.f32.xlu0 %v1604_v23  ;;  %v957_v34 = vmul.f32 1.442695, %v956_v33 }
 0x35d   : > { %2630 = vpow2.f32 %v960_v25 }
 0x35e   : > { %2632 = vpow2.f32 %v957_v34 }
 0x35f   : > { %v1598_v26 = vpop.f32.mrb[32].mxu1 }
 0x360   : > { %v2411_v27 = vpop.f32.mrb[33].mxu1  ;;  %v1607_v28 = vsel %vm859_vm2, %v1598_v26, -inf }
 0x361   : > { %1608 = vmax.xlane.f32.xlu1 %v1607_v28  ;;  %v1601_v29 = vpop.f32.mrb[34].mxu1 }
 0x362   : > { %v2412_v30 = vpop.f32.mrb[35].mxu1 }
 0x367   : > { %v3512_v31 = vpop.eup %2630 }
 0x368   : > { %v965_v32 = vsel %vm859_vm2, %v3512_v31, 0.0  ;;  %v3517_v35 = vpop.eup %2632 }
 0x369   : > { %966 = vadd.xlane.f32.xlu1 %v965_v32  ;;  %v962_v36 = vsel %vm859_vm2, %v3517_v35, 0.0 }
 0x371   : > { %1022 = vrot.lane.b32.xlu0 %v3444_v24, %s2999_s20 }
 0x390   : > { %963 = vadd.xlane.f32.xlu0 %v962_v36 }
 0x3c8   : > { %v1171_v39 = vpop.xlane.xlu0 %1170 }
 0x3ce   : > { %v1174_v40 = vpop.xlane.xlu1 %1173 }
 0x3cf   : > { %v1175_v41 = vmax.f32 %v1171_v39, %v1174_v40 }
 0x3d1   : > { %v1176_v42 = vsub.f32 %v3497_v55, %v1175_v41  ;;  %v1179_v43 = vsub.f32 %v1163_v60, %v1175_v41 }
 0x3d3   : > { %v1177_v44 = vmul.f32 1.442695, %v1176_v42  ;;  %v1180_v45 = vmul.f32 1.442695, %v1179_v43 }
 0x3d5   : > { %2634 = vpow2.f32 %v1177_v44 }
 0x3d6   : > { %2636 = vpow2.f32 %v1180_v45 }
 0x3d8   : > { %v1390_v52 = vpop.xlane.xlu0 %1389 }
 0x3de   : > { %v1393_v51 = vpop.xlane.xlu1 %1392 }
 0x3df   : > { %v3524_v46 = vpop.eup %2634  ;;  %v1394_v53 = vmax.f32 %v1390_v52, %v1393_v51 }
 0x3e0   : > { %v3526_v47 = vpop.eup %2636  ;;  %v1182_v48 = vsel %vm859_vm2, %v3524_v46, 0.0 }
 0x3e1   : > { %1183 = vadd.xlane.f32.xlu0 %v1182_v48  ;;  %v1185_v49 = vsel %vm859_vm2, %v3526_v47, 0.0  ;;  %v1395_v57 = vsub.f32 %v3502_v4, %v1394_v53  ;;  %v1398_v60 = vsub.f32 %v3506_v9, %v1394_v53 }
 0x3e2   : > { %1186 = vadd.xlane.f32.xlu1 %v1185_v49 }
 0x3e3   : > { %v1396_v59 = vmul.f32 1.442695, %v1395_v57  ;;  %v1399_v62 = vmul.f32 1.442695, %v1398_v60 }
 0x3e5   : > { %2638 = vpow2.f32 %v1396_v59 }
 0x3e8   : > { %v1606_v55 = vpop.xlane.xlu0 %1605 }
 0x3ec   : > { %v1023_v7 = vpop.permute.xlu0 %1022 }
 0x3ee   : > { %v1609_v54 = vpop.xlane.xlu1 %1608 }
 0x3ef   : > { %v1610_v56 = vmax.f32 %v1606_v55, %v1609_v54  ;;  %v3537_v2 = vpop.eup %2638 }
 0x3f0   : > { %v1401_v6 = vsel %vm859_vm2, %v3537_v2, 0.0 }
 0x3f1   : > { %v1611_v58 = vsub.f32 %v1554_v18, %v1610_v56  ;;  %v1614_v63 = vsub.f32 %v1598_v26, %v1610_v56  ;;  %v1028_v18 = vsel %vm977_vm3, %v1023_v7, 0 }
 0x3f3   : > { %1197 = vrot.lane.b32.xlu1 %v2233_v50, %s2996_s2  ;;  %v1612_v61 = vmul.f32 1.442695, %v1611_v58  ;;  %v1615_v1 = vmul.f32 1.442695, %v1614_v63  ;;  %s3770_s2 = sld [smem:[#allocation33_spill]] }
 0x3f5   : > { %2640 = vpow2.f32 %v1612_v61 }
 0x3f6   : > { %2642 = vpow2.f32 %v1399_v62  ;;  %v967_v11 = vpop.xlane.xlu1 %966 }
 0x3f7   : > { %1245 = vrot.lane.b32.xlu0 %v3444_v24, %s3000_s21  ;;  %2644 = vpow2.f32 %v1615_v1  ;;  %s3769_s21 = sld [smem:[#allocation31_spill]] }
 0x3fb   : > { %1413 = vrot.lane.b32.xlu0 %v2233_v50, %s2997_s3  ;;  %s2214_s3 = sshll.u32 %s3377_s15, 3 }
 0x3fc   : > { %s698_s13 = scalar_lea.vmem [#allocation16], %s2214_s3 }
 0x3fd   : > { %s2024_s20 = sshll.u32 %s698_s13, 4  ;;  %s3655_s20 = int_to_ptr.vmem [resolvable:$true] %s2024_s20 }
 0x3ff   : > { %v3539_v5 = vpop.eup %2640 }
 0x400   : > { %v3543_v4 = vpop.eup %2642  ;;  %v1617_v8 = vsel %vm859_vm2, %v3539_v5, 0.0 }
 0x401   : > { %v1404_v9 = vsel %vm859_vm2, %v3543_v4, 0.0  ;;  %v3549_v10 = vpop.eup %2644 }
 0x402   : > { %v1620_v14 = vsel %vm859_vm2, %v3549_v10, 0.0 }
 0x417   : > { %1402 = vadd.xlane.f32.xlu1 %v1401_v6 }
 0x41a   : > { %1618 = vadd.xlane.f32.xlu0 %v1617_v8  ;;  %v2623_v8 = vld [vmem:[%s3768_s5 + $0x8] sm:$0xff]  }
 0x41b   : > { %1405 = vadd.xlane.f32.xlu1 %v1404_v9 }
 0x41d   : > { %v964_v12 = vpop.xlane.xlu0 %963 }
 0x41e   : > { %v968_v13 = vadd.f32 %v967_v11, %v964_v12 }
 0x41f   : > { %1621 = vadd.xlane.f32.xlu1 %v1620_v14 }
 0x420   : > { %2646 = vrcp.f32 %v968_v13 }
 0x42a   : > { %v2647_v15 = vpop.eup %2646 }
 0x42b   : > { %v972_v16 = vmul.f32 %v2647_v15, %v3512_v31  ;;  %v970_v19 = vmul.f32 %v2647_v15, %v3517_v35 }
 0x42d   : > { %v973_v17 = vpack.c.bf16 %v972_v16, %v972_v16  ;;  %v971_v20 = vpack.c.bf16 %v970_v19, %v970_v19 }
 0x42f   : > { %2344 = vmatmul.mubr.msk.bf16.vlgmr.msra.gmra.mrb[4].mxu0 %vm859_vm2, %v973_v17 }
 0x430   : > { %1461 = vrot.lane.b32.xlu1 %v3444_v24, %s3001_s23  ;;  %2348 = vmatpush3.bf16.msra.mxu0 %v1028_v18 }
 0x431   : > { %2349 = vmatprep.mubr.msk.bf16.mxu0 %vm2995_vm0, %v2994_v0  ;;  %1629 = vrot.lane.b32.xlu0 %v2233_v50, %s2998_s30  ;;  %s3005_s30 = smov 24  }
 0x432   : > { %2365 = vmatprep.subr.bf16.mxu0 %v2994_v0 }
 0x434   : > { %1677 = vrot.lane.b32.xlu1 %v3444_v24, %s3002_s14 }
 0x43b   : > { %2350 = vmatmul.mubr.msk.bf16.vlgmr.msra.gmra.mrb[4].mxu0 %vm859_vm2, %v971_v20  ;;  %v2244_v20 = vld [vmem:[#allocation11] ss:$0 sm:$0xff] }
 0x43c   : > { %2367 = vmatprep.mubr.msk.bf16.mxu0 %vm2995_vm0, %v2994_v0 }
 0x46e   : > { %v1184_v21 = vpop.xlane.xlu0 %1183 }
 0x46f   : > { %v1187_v22 = vpop.xlane.xlu1 %1186 }
 0x470   : > { %v1188_v23 = vadd.f32 %v1187_v22, %v1184_v21 }
 0x472   : > { %2648 = vrcp.f32 %v1188_v23  ;;  %v1246_v28 = vpop.permute.xlu0 %1245 }
 0x473   : > { %v1198_v25 = vpop.permute.xlu1 %1197  ;;  %v1251_v30 = vsel %vm977_vm3, %v1246_v28, 0 }
 0x474   : > { %v1203_v26 = vsel %vm977_vm3, %v1198_v25, 0 }
 0x475   : > { %2366 = vmatpush3.bf16.msra.mxu0 %v1203_v26 }
 0x476   : > { %2371 = vmatprep.subr.bf16.mxu0 %v2994_v0  ;;  %v1414_v32 = vpop.permute.xlu0 %1413 }
 0x477   : > { %v1419_v34 = vsel %vm977_vm3, %v1414_v32, 0 }
 0x47c   : > { %v2649_v27 = vpop.eup %2648 }
 0x47d   : > { %v1192_v24 = vmul.f32 %v2649_v27, %v3526_v47  ;;  %v1190_v31 = vmul.f32 %v2649_v27, %v3524_v46 }
 0x47f   : > { %v1193_v29 = vpack.c.bf16 %v1192_v24, %v1192_v24  ;;  %v1191_v33 = vpack.c.bf16 %v1190_v31, %v1190_v31 }
 0x481   : > { %2368 = vmatmul.mubr.msk.bf16.vlgmr.msra.gmra.mrb[8].mxu0 %vm859_vm2, %v1193_v29 }
 0x482   : > { %2372 = vmatpush3.bf16.msra.mxu0 %v1251_v30  ;;  %2373 = vmatprep.mubr.msk.bf16.mxu0 %vm2995_vm0, %v2994_v0 }
 0x483   : > { %2389 = vmatprep.subr.bf16.mxu0 %v2994_v0 }
 0x48d   : > { %2374 = vmatmul.mubr.msk.bf16.vlgmr.msra.gmra.mrb[8].mxu0 %vm859_vm2, %v1191_v33  ;;  %v2624_v33 = vld [vmem:[%s3769_s21] sm:$0xff]  }
 0x48e   : > { %2390 = vmatpush3.bf16.msra.mxu0 %v1419_v34  ;;  %2391 = vmatprep.mubr.msk.bf16.mxu0 %vm2995_vm0, %v2994_v0  ;;  %v2625_v34 = vld [vmem:[%s3769_s21 + $0x8] sm:$0xff]  }
 0x48f   : > { %2395 = vmatprep.subr.bf16.mxu0 %v2994_v0 }
 0x4a4   : > { %v1403_v35 = vpop.xlane.xlu1 %1402 }
 0x4a7   : > { %v1619_v40 = vpop.xlane.xlu0 %1618 }
 0x4a8   : > { %v1406_v36 = vpop.xlane.xlu1 %1405 }
 0x4a9   : > { %v1407_v37 = vadd.f32 %v1406_v36, %v1403_v35  ;;  %v2627_v35 = vld [vmem:[%s3770_s2 + $0x8] sm:$0xff]  }
 0x4ab   : > { %2650 = vrcp.f32 %v1407_v37  ;;  %v1630_v47 = vpop.permute.xlu0 %1629 }
 0x4ac   : > { %v1622_v38 = vpop.xlane.xlu1 %1621  ;;  %v1635_v48 = vsel %vm977_vm3, %v1630_v47, 0  ;;  %v2629_v47 = vld [vmem:[%s3770_s2 + $0x18] sm:$0xff]  }
 0x4ad   : > { %v1623_v42 = vadd.f32 %v1622_v38, %v1619_v40  ;;  %v2248_v40 = vld [vmem:[#allocation13] ss:$0 sm:$0xff] }
 0x4af   : > { %2652 = vrcp.f32 %v1623_v42  ;;  %v2249_v42 = vld [vmem:[#allocation14] ss:$0 sm:$0xff] }
 0x4b0   : > { %v1462_v43 = vpop.permute.xlu1 %1461 }
 0x4b1   : > { %v1467_v45 = vsel %vm977_vm3, %v1462_v43, 0 }
 0x4b4   : > { %v1678_v52 = vpop.permute.xlu1 %1677 }
 0x4b5   : > { %v2651_v39 = vpop.eup %2650  ;;  %v1683_v54 = vsel %vm977_vm3, %v1678_v52, 0 }
 0x4b6   : > { %v1411_v41 = vmul.f32 %v2651_v39, %v3543_v4  ;;  %v1409_v46 = vmul.f32 %v2651_v39, %v3537_v2  ;;  %v2622_v2 = vld [vmem:[%s3768_s5] sm:$0xff]  }
 0x4b7   : > { %2426 = vmatpush3.bf16.msra.mxu1 %v2622_v2 }
 0x4b8   : > { %v1412_v44 = vpack.c.bf16 %v1411_v41, %v1411_v41  ;;  %v1410_v49 = vpack.c.bf16 %v1409_v46, %v1409_v46  ;;  %2427 = vmatprep.subr.bf16.mxu1 %v2994_v0  ;;  %v2628_v46 = vld [vmem:[%s3770_s2 + $0x10] sm:$0xff]  }
 0x4b9   : > { %v2653_v50 = vpop.eup %2652 }
 0x4ba   : > { %2392 = vmatmul.mubr.msk.bf16.vlgmr.msra.gmra.mrb[12].mxu0 %vm859_vm2, %v1412_v44  ;;  %v1627_v51 = vmul.f32 %v2653_v50, %v3549_v10  ;;  %v1625_v55 = vmul.f32 %v2653_v50, %v3539_v5 }
 0x4bb   : > { %2396 = vmatpush3.bf16.msra.mxu0 %v1467_v45  ;;  %2397 = vmatprep.mubr.msk.bf16.mxu0 %vm2995_vm0, %v2994_v0 }
 0x4bc   : > { %2413 = vmatprep.subr.bf16.mxu0 %v2994_v0  ;;  %v1628_v53 = vpack.c.bf16 %v1627_v51, %v1627_v51  ;;  %v1626_v56 = vpack.c.bf16 %v1625_v55, %v1625_v55  ;;  %2428 = vmatpush3.bf16.msra.mxu1 %v2623_v8 }
 0x4bd   : > { %2433 = vmatprep.subr.bf16.mxu1 %v2994_v0 }
 0x4c6   : > { %2398 = vmatmul.mubr.msk.bf16.vlgmr.msra.gmra.mrb[12].mxu0 %vm859_vm2, %v1410_v49 }
 0x4c7   : > { %2414 = vmatpush3.bf16.msra.mxu0 %v1635_v48  ;;  %2415 = vmatprep.mubr.msk.bf16.mxu0 %vm2995_vm0, %v2994_v0 }
 0x4c8   : > { %2419 = vmatprep.subr.bf16.mxu0 %v2994_v0 }
 0x4ce   : > { %2416 = vmatmul.mubr.msk.bf16.vlgmr.msra.gmra.mrb[16].mxu0 %vm859_vm2, %v1628_v53 }
 0x4cf   : > { %2420 = vmatpush3.bf16.msra.mxu0 %v1683_v54  ;;  %2421 = vmatprep.mubr.msk.bf16.mxu0 %vm2995_vm0, %v2994_v0 }
 0x4d0   : > { %2441 = vmatprep.subr.bf16.mxu0 %v2994_v0 }
 0x4da   : > { %2422 = vmatmul.mubr.msk.bf16.vlgmr.msra.gmra.mrb[16].mxu0 %vm859_vm2, %v1626_v56 }
 0x4db   : > { %2449 = vmatprep.mubr.msk.bf16.mxu0 %vm2995_vm0, %v2994_v0 }
 0x50e   : > { %v1064_v57 = vpop.f32.mrb[4].mxu0 }
 0x50f   : > { %v2351_v58 = vpop.f32.mrb[5].mxu0 }
 0x510   : > { %v1067_v59 = vpop.f32.mrb[6].mxu0 }
 0x511   : > { %v2352_v60 = vpop.f32.mrb[7].mxu0 }
 0x560   : > { %v1287_v61 = vpop.f32.mrb[8].mxu0 }
 0x561   : > { %1726 = vrot.lane.b32.xlu0 %v1287_v61, %s3003_s27  ;;  %v2375_v62 = vpop.f32.mrb[9].mxu0  ;;  %s3771_s27 = sld [smem:[#allocation32_spill]] }
 0x562   : > { %v1290_v63 = vpop.f32.mrb[10].mxu0 }
 0x563   : > { %v2376_v1 = vpop.f32.mrb[11].mxu0 }
 0x567   : > { %v2250_v48 = vld [vmem:[%s3771_s27] ss:$0 sm:$0xff]  ;;  %s3773_s27 = sld [smem:[#allocation35_spill]] }
 0x56d   : > { %s3774_s9 = smov %s3773_s27 }
 0x599   : > { %v1503_v5 = vpop.f32.mrb[12].mxu0 }
 0x59a   : > { %1730 = vrot.lane.b32.xlu1 %v1503_v5, %s3004_s4  ;;  %v2399_v6 = vpop.f32.mrb[13].mxu0 }
 0x59b   : > { %v1506_v4 = vpop.f32.mrb[14].mxu0 }
 0x59c   : > { %v2400_v7 = vpop.f32.mrb[15].mxu0 }
 0x5ad   : > { %v1719_v9 = vpop.f32.mrb[16].mxu0 }
 0x5ae   : > { %1734 = vrot.lane.b32.xlu0 %v1719_v9, %s3005_s30  ;;  %v2423_v10 = vpop.f32.mrb[17].mxu0  ;;  %s2261_s30 = sshll.u32 %s3762_s18, 7  ;;  %s3006_s18 = smov [#allocation16]  }
 0x5af   : > { %v1722_v11 = vpop.f32.mrb[18].mxu0  ;;  %s3653_s4 = scalar_lea.hbm %s3773_s27, %s2261_s30  ;;  %s2888_s3 = sshll.u32 %s3006_s18, 4  ;;  %s2889_s3 = int_to_ptr.vmem [resolvable:$false] %s2888_s3 }
 0x5b0   : > { %v2424_v12 = vpop.f32.mrb[19].mxu0  ;;  %s2890_s5 = scalar_lea.vmem %s2889_s3, 256  ;;  %p2891_p4 = scmp.lt.s32.totalorder %s3655_s20, %s2889_s3 }
 0x5d3   : > { %v1727_v13 = vpop.permute.xlu0 %1726 }
 0x5d4   : > { %v1737_v15 = vsel %vm859_vm2, %v1064_v57, %v1727_v13 }
 0x60c   : > { %v1731_v14 = vpop.permute.xlu1 %1730 }
 0x60d   : > { %v1739_v16 = vsel %vm1738_vm4, %v1737_v15, %v1731_v14 }
 0x620   : > { %v1735_v17 = vpop.permute.xlu0 %1734 }
 0x621   : > { %v1741_v18 = vsel %vm1740_vm5, %v1739_v16, %v1735_v17 }
 0x622   : > { %v1742_v19 = vpack.c.bf16 %v1741_v18, %v1741_v18 }
 0x624   : > { %2430 = vmatmul.mubr.msk.bf16.vlgmr.msra.gmra.mrb[36].mxu1 %vm738_vm1, %v1742_v19 }
 0x625   : > { %2437 = vmatprep.mubr.msk.bf16.mxu1 %vm2995_vm0, %v2994_v0  ;;  %2434 = vmatpush3.bf16.msra.mxu1 %v2624_v33 }
 0x626   : > { %2435 = vmatprep.subr.bf16.mxu1 %v2994_v0 }
 0x629   : > { %2436 = vmatpush3.bf16.msra.mxu1 %v2625_v34 }
 0x6f7   : > { %v1803_v21 = vpop.f32.mrb[36].mxu1 }
 0x6f8   : > { %v1804_v22 = vadd.f32 %v2244_v20, %v1803_v21  ;;  %v2431_v23 = vpop.f32.mrb[37].mxu1 }
 0x6f9   : > { %v1806_v25 = vpop.f32.mrb[38].mxu1 }
 0x6fa   : > { %v2432_v26 = vpop.f32.mrb[39].mxu1  ;;  %v1811_v27 = vadd.f32 %v1804_v22, %v3418_v3  ;;  %v2626_v3 = vld [vmem:[%s3770_s2] sm:$0xff]   ;;  %s2884_s2 = scalar_lea.vmem %s3655_s20, 128 }
 0x6fb   : > { %2442 = vmatpush3.bf16.msra.mxu0 %v2626_v3  ;;  %p2885_p5 = scmp.ne.s32.totalorder %s3655_s20, %s2884_s2  ;;  %p2892_p9 = scmp.lt.s32.totalorder %s2890_s5, %s2884_s2 }
 0x6fc   : > { %v1812_v24 = vsel %vm738_vm1, %v1811_v27, 0.0  ;;  %2443 = vmatprep.subr.bf16.mxu0 %v2994_v0 }
 0x6fd   : > { %1813 = vadd.xlane.f32.xlu1 %v1812_v24  ;;  %p2886_p1 = pnand %p2885_p5, %p3775_p10  ;;  %p2893_p8 = por %p2892_p9, %p2891_p4 }
 0x6ff   : > { %2444 = vmatpush3.bf16.msra.mxu0 %v2627_v35  ;;  %p2887_p2 = pneg %p2886_p1 }
 0x700   : > { %2445 = vmatprep.subr.bf16.mxu0 %v2994_v0 }
 0x701   : > { %p2894_p3 = pnand %p2893_p8, %p2887_p2 }
 0x703   : > { %2446 = vmatpush3.bf16.msra.mxu0 %v2628_v46 }
 0x704   : > { %2447 = vmatprep.subr.bf16.mxu0 %v2994_v0  ;;  %v2254_v0 = vld [vmem:[%s3772_s1] ss:$0 sm:$0xff]  ;;  %s2010_s1 = scalar_lea.sflag [#allocation4], %s3377_s15 }
 0x707   : > { %2448 = vmatpush3.bf16.msra.mxu0 %v2629_v47 }
 0x78a   : > { %v1814_v28 = vpop.xlane.xlu1 %1813 }
 0x78b   : > { %v1816_v29 = vmul.f32 0.03125, %v1814_v28 }
 0x78d   : > { %v1817_v30 = vsub.f32 %v1811_v27, %v1816_v29 }
 0x78f   : > { %v1818_v31 = vmul.f32 %v1817_v30, %v1817_v30 }
 0x791   : > { %v1819_v32 = vsel %vm738_vm1, %v1818_v31, 0.0 }
 0x792   : > { %1820 = vadd.xlane.f32.xlu0 %v1819_v32 }
 0x81f   : > { %v1821_v36 = vpop.xlane.xlu0 %1820 }
 0x820   : > { %v1822_v37 = vmul.f32 0.03125, %v1821_v36 }
 0x822   : > { %v1823_v38 = vadd.f32 1e-05, %v1822_v37 }
 0x824   : > { %2654 = vrsqrt.f32 %v1823_v38 }
 0x82e   : > { %v2655_v39 = vpop.eup %2654 }
 0x82f   : > { %v1825_v41 = vmul.f32 %v2655_v39, %v1817_v30 }
 0x831   : > { %v1832_v43 = vmul.f32 %v2248_v40, %v1825_v41 }
 0x833   : > { %v1839_v44 = vadd.f32 %v2249_v42, %v1832_v43 }
 0x835   : > { %v1840_v45 = vpack.c.bf16 %v1839_v44, %v1839_v44 }
 0x837   : > { %2438 = vmatmul.mubr.msk.bf16.vlgmr.msra.gmra.mrb[40].mxu1 %vm738_vm1, %v1840_v45 }
 0x90a   : > { %v1901_v49 = vpop.f32.mrb[40].mxu1 }
 0x90b   : > { %v1902_v50 = vadd.f32 %v2250_v48, %v1901_v49  ;;  %v2439_v51 = vpop.f32.mrb[41].mxu1 }
 0x90c   : > { %v1904_v52 = vpop.f32.mrb[42].mxu1 }
 0x90d   : > { %v1907_v53 = vmax.f32 %v1902_v50, 0.0  ;;  %v2440_v54 = vpop.f32.mrb[43].mxu1 }
 0x90f   : > { %v1908_v55 = vpack.c.bf16 %v1907_v53, %v1907_v53 }
 0x911   : > { %2450 = vmatmul.mubr.msk.bf16.vlgmr.msra.gmra.mrb[20].mxu0 %vm1948_vm6, %v1908_v55 }
 0x9e4   : > { %v1986_v56 = vpop.f32.mrb[20].mxu0 }
 0x9e5   : > { %v1987_v57 = vadd.f32 %v2254_v0, %v1986_v56  ;;  %v2451_v58 = vpop.f32.mrb[21].mxu0 }
 0x9e6   : > { %v1989_v59 = vpop.f32.mrb[22].mxu0 }
 0x9e7   : > { %v2452_v60 = vpop.f32.mrb[23].mxu0  ;;  %v1992_v61 = vadd.f32 %v1987_v57, %v1839_v44 }
 0x9e9   : > { %v1993_v62 = vsel %vm738_vm1, %v1992_v61, 0.0 }
 0x9ea   : > { %1994 = vadd.xlane.f32.xlu0 %v1993_v62 }
 0xa77   : > { %v1995_v63 = vpop.xlane.xlu0 %1994 }
 0xa78   : > { %v1996_v1 = vmul.f32 0.03125, %v1995_v63 }
 0xa7a   : > { %v1997_v2 = vsub.f32 %v1992_v61, %v1996_v1 }
 0xa7c   : > { %v1998_v5 = vmul.f32 %v1997_v2, %v1997_v2 }
 0xa7e   : > { %v1999_v6 = vsel %vm738_vm1, %v1998_v5, 0.0 }
 0xa7f   : > { %2000 = vadd.xlane.f32.xlu1 %v1999_v6 }
 0xb0c   : > { %v2001_v4 = vpop.xlane.xlu1 %2000 }
 0xb0d   : > { %v2002_v7 = vmul.f32 0.03125, %v2001_v4 }
 0xb0f   : > { %v2003_v8 = vadd.f32 1e-05, %v2002_v7 }
 0xb11   : > { %2656 = vrsqrt.f32 %v2003_v8 }
 0xb1b   : > { %v2657_v9 = vpop.eup %2656 }
 0xb1c   : > { %v2005_v10 = vmul.f32 %v2657_v9, %v1997_v2 }
 0xb1e   : > { %v2006_v11 = vmul.f32 %v2248_v40, %v2005_v10 }
 0xb20   : > { %v2007_v12 = vadd.f32 %v2249_v42, %v2006_v11 }
 0xb22   : > { %2008 = vst.msk [vmem:[%s698_s13] sm:$0xff] %vm738_vm1, %v2007_v12 }
 0xb23   : > { %2897 = shalt.err (!%p2894_p3)
}
 0xb24   : > { %s2898_s15 = scalar_lea.hbm %s3653_s4, 128  ;;  %s2902_s23 = scalar_lea.hbm %s3774_s9, 256 }
 0xb25   : > { %p2899_p12 = scmp.ne.s32.totalorder %s3653_s4, %s2898_s15  ;;  %p2903_p11 = scmp.lt.u32.totalorder %s3653_s4, %s3774_s9 }
 0xb26   : > { %p2904_p7 = scmp.lt.u32.totalorder %s2902_s23, %s2898_s15  ;;  %p2906_p5 = scmp.lt.u32.totalorder %s2898_s15, %s3653_s4 }
 0xb27   : > { %p2900_p13 = pnand %p2899_p12, %p3775_p10 }
 0xb28   : > { %p2905_p6 = por %p2904_p7, %p2903_p11 }
 0xb29   : > { %p2901_p0 = pneg %p2900_p13 }
 0xb2a   : > { %p2907_p1 = por %p2906_p5, %p2905_p6 }
 0xb2c   : > { %p2908_p2 = pnand %p2907_p1, %p2901_p0 }
 0xb2e   : > { %2911 = shalt.err (!%p2908_p2)
}
 0xb2f   : > { %2499 = dma.vmem_to_hbm [thread:$0]  (%p3775_p10), %s3655_s20, 128, %s3653_s4, %s2010_s1  }
 0xb30 PF: > { %s2036_s5 = sand.u32 1, %s2962_s24   ;;  %p3776_p4 = scmp.ne.s32.totalorder %s3757_s19, 0 }
 0xb31   : > { %p3777_p9 = scmp.ge.s32.totalorder %s2982_s29, 2  ;;  %s2037_s2 = scalar_lea.sflag [#allocation4], %s2036_s5 }
 0xb33   : > { %p2528_p8 = pnand %p3777_p9, %p3776_p4 }
 0xb35   : > { %2957 = dma.done.wait (!%p2528_p8), %s2037_s2, 128  }
 0xb36   : > { %2959 = vsyncadd (!%p2528_p8), %s2037_s2, 4294967168  ;;  %s37_s29 = sadd.s32 1, %s2982_s29   ;;  %s3778_s24 = smov %s2966_s25 }
 0xb37   : > { %p34_p3 = scmp.ge.s32.totalorder %s37_s29, 4   ;;  %s3779_s25 = smov %s2970_s26 }
 0xb38   : > { %s3780_s26 = smov %s3328_s17  ;;  %s3781_s27 = smov %s2978_s28 }
 0xb39   : > { %s3782_s28 = smov %s3784_s0  ;;  %36 = sbr.rel (!%p34_p3) target bundleno = 23 (0x17), region = 167 }
 0xb40   :  { %2042 = vsyncpa [#allocation3], 1 }
 0xb41   :  { %2044 = vsyncpa [#allocation3 + $0x1], 1 }
 0xb42   :  { %2045 = vsyncpa [#allocation6], 1 }
 0xb43   :  { %2046 = vsyncpa [#allocation9], 1 }
 0xb44   :  { %2047 = vsyncpa [#allocation12], 1 }
 0xb45   :  { %2048 = vsyncpa [#allocation15], 1 }
 0xb46   :  { %2049 = vsyncpa [#allocation4], 1 }
 0xb47   :  { %2051 = vsyncpa [#allocation4 + $0x1], 1 }

</bundles_post_ra>
